<compile_context>
chip_gen: v6e
topology: v6e:2x2x1
jax: 0.10.0
libtpu: 0.0.40
codegen_flags: <defaults>
</compile_context>

<pallas_src>
import functools
import math

import jax
import jax.numpy as jnp
from jax import lax
from jax.experimental import pallas as pl
from jax.experimental.pallas import tpu as pltpu


_MXU_DTYPE = jnp.bfloat16     # matmul operand dtype (accumulation is always f32)
_ACT_DTYPE = jnp.bfloat16     # residual stream / q,k,v dtype in HBM
_LN_EPS = 1e-5


def _tpu_defaults():
    """Row tile and scoped-VMEM limit per TPU generation."""
    try:
        kind = jax.devices()[0].device_kind.lower()
    except Exception:  # pragma: no cover
        kind = ""
    if ("v5" in kind) or ("v6" in kind):
        return 512, 96 * 1024 * 1024          # 128 MiB physical VMEM
    return 256, 48 * 1024 * 1024              # v7x (64 MiB) / unknown: conservative


_ROW_TILE, _VMEM_LIMIT = _tpu_defaults()


# ----------------------------------------------------------------------------
# Tiling helpers
# ----------------------------------------------------------------------------

def _row_tiling(m):
    """Rows-per-block and number of row blocks (last block may over-cover)."""
    if m <= _ROW_TILE:
        return m, 1
    return _ROW_TILE, pl.cdiv(m, _ROW_TILE)


def _hidden_tiling(hd):
    """Hidden-dim tile must divide hd exactly (it is a contraction dim)."""
    for t in (1024, 512, 256, 128):
        if hd % t == 0 and hd > t:
            return t, hd // t
    return hd, 1


def _kv_tiling(s):
    """KV tile must divide S exactly (padded keys would corrupt softmax)."""
    for t in (512, 256, 128):
        if s % t == 0 and s > t:
            return t, s // t
    return s, 1


def _q_tiling(s):
    if s <= 512:
        return s, 1
    return 256, pl.cdiv(s, 256)


def _cparams(semantics):
    return pltpu.CompilerParams(dimension_semantics=semantics,
                                vmem_limit_bytes=_VMEM_LIMIT)


def _row_spec(tm, d):
    return pl.BlockSpec((tm, d), lambda i: (i, 0))


def _const_spec(shape):
    # Whole-array block, constant across the grid -> VMEM resident.
    return pl.BlockSpec(shape, lambda *_: (0, 0))


def _ln_f32(x, g, b):
    mu = jnp.mean(x, axis=-1, keepdims=True)
    xc = x - mu
    var = jnp.mean(xc * xc, axis=-1, keepdims=True)
    return xc * lax.rsqrt(var + _LN_EPS) * g + b


# ----------------------------------------------------------------------------
# Kernels
# ----------------------------------------------------------------------------

def _ln_kernel(x_ref, g_ref, b_ref, o_ref):
    y = _ln_f32(x_ref[...].astype(jnp.float32), g_ref[...], b_ref[...])
    o_ref[...] = y.astype(o_ref.dtype)


def _matmul_kernel(x_ref, w_ref, o_ref):
    o_ref[...] = jnp.dot(
        x_ref[...].astype(w_ref.dtype), w_ref[...],
        preferred_element_type=jnp.float32).astype(o_ref.dtype)


def _ln_matmul_kernel(x_ref, g_ref, b_ref, w_ref, o_ref):
    # ln_post fused into the final (bias-free) projection; f32 output.
    y = _ln_f32(x_ref[...].astype(jnp.float32), g_ref[...], b_ref[...])
    o_ref[...] = jnp.dot(y.astype(w_ref.dtype), w_ref[...],
                         preferred_element_type=jnp.float32).astype(o_ref.dtype)


def _ln_qkv_kernel(x_ref, g_ref, b_ref, wq_ref, bq_ref, wk_ref, bk_ref,
                   wv_ref, bv_ref, q_ref, k_ref, v_ref):
    # LayerNorm (f32) fused into three projections; each output is lane-dense
    # (rows, D).  1/sqrt(Dh) is already folded into wq/bq.
    y = _ln_f32(x_ref[...].astype(jnp.float32), g_ref[...], b_ref[...])
    y = y.astype(wq_ref.dtype)
    q_ref[...] = (jnp.dot(y, wq_ref[...], preferred_element_type=jnp.float32)
                  + bq_ref[...]).astype(q_ref.dtype)
    k_ref[...] = (jnp.dot(y, wk_ref[...], preferred_element_type=jnp.float32)
                  + bk_ref[...]).astype(k_ref.dtype)
    v_ref[...] = (jnp.dot(y, wv_ref[...], preferred_element_type=jnp.float32)
                  + bv_ref[...]).astype(v_ref.dtype)


def _attention_kernel(q_ref, k_ref, v_ref, o_ref, m_sc, l_sc, acc_sc, *, heads, dh):
    # Flash-style attention, lane-dense layout.  Blocks: q (1, tq, D),
    # k/v (1, tkv, D), out (1, tq, D).  Heads split via static column slices.
    kv_i = pl.program_id(2)

    @pl.when(kv_i == 0)
    def _():
        m_sc[...] = jnp.full_like(m_sc, -jnp.inf)
        l_sc[...] = jnp.zeros_like(l_sc)
        acc_sc[...] = jnp.zeros_like(acc_sc)

    q = q_ref[0]                      # (tq, D) bf16, pre-scaled by 1/sqrt(dh)
    k = k_ref[0]                      # (tkv, D)
    v = v_ref[0]                      # (tkv, D)
    m_prev = m_sc[...]                # (tq, H) f32
    l_prev = l_sc[...]                # (tq, H) f32
    acc_prev = acc_sc[...]            # (tq, D) f32

    m_cols, l_cols, alpha_cols, pv_cols = [], [], [], []
    for h in range(heads):
        sl = slice(h * dh, (h + 1) * dh)
        s = lax.dot_general(q[:, sl], k[:, sl], (((1,), (1,)), ((), ())),
                            preferred_element_type=jnp.float32)     # (tq, tkv)
        m_h_prev = m_prev[:, h:h + 1]
        m_h = jnp.maximum(m_h_prev, jnp.max(s, axis=-1, keepdims=True))
        alpha = jnp.exp(m_h_prev - m_h)                              # (tq, 1)
        p = jnp.exp(s - m_h)                                         # f32 softmax
        l_cols.append(alpha * l_prev[:, h:h + 1] + jnp.sum(p, axis=-1, keepdims=True))
        m_cols.append(m_h)
        alpha_cols.append(jnp.broadcast_to(alpha, (alpha.shape[0], dh)))
        pv_cols.append(lax.dot_general(p.astype(v.dtype), v[:, sl],
                                       (((1,), (0,)), ((), ())),
                                       preferred_element_type=jnp.float32))

    m_sc[...] = jnp.concatenate(m_cols, axis=1)
    l_new = jnp.concatenate(l_cols, axis=1)
    l_sc[...] = l_new
    acc_new = (jnp.concatenate(alpha_cols, axis=1) * acc_prev
               + jnp.concatenate(pv_cols, axis=1))
    acc_sc[...] = acc_new

    @pl.when(kv_i == pl.num_programs(2) - 1)
    def _():
        inv = pl.reciprocal(l_new, approx=True)                      # (tq, H)
        inv_full = jnp.concatenate(
            [jnp.broadcast_to(inv[:, h:h + 1], (inv.shape[0], dh))
             for h in range(heads)], axis=1)                         # (tq, D)
        o_ref[0] = (acc_new * inv_full).astype(o_ref.dtype)          # lane-dense store


def _linear_residual_kernel(x_ref, w_ref, bias_ref, res_ref, o_ref):
    # Attention out-projection with the residual add fused into the store.
    acc = jnp.dot(x_ref[...].astype(w_ref.dtype), w_ref[...],
                  preferred_element_type=jnp.float32)
    o_ref[...] = (acc + bias_ref[...]
                  + res_ref[...].astype(jnp.float32)).astype(o_ref.dtype)


def _ln_mlp_residual_kernel(x_ref, g_ref, b_ref, w1_ref, b1_ref, w2_ref, b2_ref,
                            o_ref, y_sc, acc_sc):
    # LN2 -> c_fc -> QuickGELU -> c_proj -> +residual.  The 4*D hidden dim is a
    # grid axis ("arbitrary"): w1/w2 stream in tiles, acc stays in VMEM scratch.
    hi = pl.program_id(1)

    @pl.when(hi == 0)
    def _():
        x = x_ref[...].astype(jnp.float32)
        y_sc[...] = _ln_f32(x, g_ref[...], b_ref[...]).astype(y_sc.dtype)
        acc_sc[...] = x + b2_ref[...]                    # residual + c_proj bias

    h = jnp.dot(y_sc[...], w1_ref[...], preferred_element_type=jnp.float32)
    h = h + b1_ref[...]
    h = h * jax.nn.sigmoid(1.702 * h)                    # QuickGELU (f32)
    acc_sc[...] = acc_sc[...] + jnp.dot(h.astype(w2_ref.dtype), w2_ref[...],
                                        preferred_element_type=jnp.float32)

    @pl.when(hi == pl.num_programs(1) - 1)
    def _():
        o_ref[...] = acc_sc[...].astype(o_ref.dtype)


# ----------------------------------------------------------------------------
# Kernel wrappers
# ----------------------------------------------------------------------------

def layernorm(x2, g, b):
    m, d = x2.shape
    tm, nt = _row_tiling(m)
    return pl.pallas_call(
        _ln_kernel,
        out_shape=jax.ShapeDtypeStruct((m, d), _ACT_DTYPE),
        grid=(nt,),
        in_specs=[_row_spec(tm, d), _const_spec((1, d)), _const_spec((1, d))],
        out_specs=_row_spec(tm, d),
        compiler_params=_cparams(("parallel",)),
    )(x2, g, b)


def matmul(x2, w):
    m, k = x2.shape
    n = w.shape[1]
    tm, nt = _row_tiling(m)
    return pl.pallas_call(
        _matmul_kernel,
        out_shape=jax.ShapeDtypeStruct((m, n), _ACT_DTYPE),
        grid=(nt,),
        in_specs=[_row_spec(tm, k), _const_spec((k, n))],
        out_specs=_row_spec(tm, n),
        compiler_params=_cparams(("parallel",)),
    )(x2, w)


def ln_matmul(x2, g, b, w):
    m, d = x2.shape
    n = w.shape[1]
    tm, nt = _row_tiling(m)
    return pl.pallas_call(
        _ln_matmul_kernel,
        out_shape=jax.ShapeDtypeStruct((m, n), jnp.float32),
        grid=(nt,),
        in_specs=[_row_spec(tm, d), _const_spec((1, d)), _const_spec((1, d)),
                  _const_spec((d, n))],
        out_specs=_row_spec(tm, n),
        compiler_params=_cparams(("parallel",)),
    )(x2, g, b, w)


def ln_qkv(x2, g, b, wq, bq, wk, bk, wv, bv):
    m, d = x2.shape
    tm, nt = _row_tiling(m)
    out = jax.ShapeDtypeStruct((m, d), _ACT_DTYPE)
    return pl.pallas_call(
        _ln_qkv_kernel,
        out_shape=(out, out, out),
        grid=(nt,),
        in_specs=[_row_spec(tm, d),
                  _const_spec((1, d)), _const_spec((1, d)),
                  _const_spec((d, d)), _const_spec((1, d)),
                  _const_spec((d, d)), _const_spec((1, d)),
                  _const_spec((d, d)), _const_spec((1, d))],
        out_specs=(_row_spec(tm, d), _row_spec(tm, d), _row_spec(tm, d)),
        compiler_params=_cparams(("parallel",)),
    )(x2, g, b, wq, bq, wk, bk, wv, bv)


def attention_core(q, k, v, heads):
    """q, k, v: (N, S, D) bf16 (q pre-scaled) -> (N, S, D) bf16. No attn mask."""
    n, s, d = q.shape
    dh = d // heads
    tq, n_q = _q_tiling(s)
    tkv, n_kv = _kv_tiling(s)
    q_spec = pl.BlockSpec((1, tq, d), lambda i, qi, ki: (i, qi, 0))
    kv_spec = pl.BlockSpec((1, tkv, d), lambda i, qi, ki: (i, ki, 0))
    out_spec = pl.BlockSpec((1, tq, d), lambda i, qi, ki: (i, qi, 0))
    return pl.pallas_call(
        functools.partial(_attention_kernel, heads=heads, dh=dh),
        out_shape=jax.ShapeDtypeStruct((n, s, d), q.dtype),
        grid=(n, n_q, n_kv),
        in_specs=[q_spec, kv_spec, kv_spec],
        out_specs=out_spec,
        scratch_shapes=[pltpu.VMEM((tq, heads), jnp.float32),
                        pltpu.VMEM((tq, heads), jnp.float32),
                        pltpu.VMEM((tq, d), jnp.float32)],
        compiler_params=_cparams(("parallel", "parallel", "arbitrary")),
    )(q, k, v)


def linear_residual(x2, w, bias, res2):
    m, d = x2.shape
    n = w.shape[1]
    tm, nt = _row_tiling(m)
    return pl.pallas_call(
        _linear_residual_kernel,
        out_shape=jax.ShapeDtypeStruct((m, n), _ACT_DTYPE),
        grid=(nt,),
        in_specs=[_row_spec(tm, d), _const_spec((d, n)), _const_spec((1, n)),
                  _row_spec(tm, n)],
        out_specs=_row_spec(tm, n),
        compiler_params=_cparams(("parallel",)),
    )(x2, w, bias, res2)


def ln_mlp_residual(x2, g, b, w1, b1, w2, b2):
    m, d = x2.shape
    hd = w1.shape[1]
    tm, n_rows = _row_tiling(m)
    th, n_h = _hidden_tiling(hd)
    return pl.pallas_call(
        _ln_mlp_residual_kernel,
        out_shape=jax.ShapeDtypeStruct((m, d), _ACT_DTYPE),
        grid=(n_rows, n_h),
        in_specs=[pl.BlockSpec((tm, d), lambda i, j: (i, 0)),
                  _const_spec((1, d)), _const_spec((1, d)),
                  pl.BlockSpec((d, th), lambda i, j: (0, j)),
                  pl.BlockSpec((1, th), lambda i, j: (0, j)),
                  pl.BlockSpec((th, d), lambda i, j: (j, 0)),
                  _const_spec((1, d))],
        out_specs=pl.BlockSpec((tm, d), lambda i, j: (i, 0)),
        scratch_shapes=[pltpu.VMEM((tm, d), _MXU_DTYPE),
                        pltpu.VMEM((tm, d), jnp.float32)],
        compiler_params=_cparams(("parallel", "arbitrary")),
    )(x2, g, b, w1, b1, w2, b2)


# ----------------------------------------------------------------------------
# Model glue — batch-major (N, S, D) stream, all reshapes are free bitcasts.
# ----------------------------------------------------------------------------

def residual_block(x2, p, heads, n, s):
    """x2: (n*s, D) bf16 residual stream; attention over S per batch element."""
    d = x2.shape[-1]
    q, k, v = ln_qkv(x2, p["ln1_g"], p["ln1_b"],
                     p["wq"], p["bq"], p["wk"], p["bk"], p["wv"], p["bv"])
    o = attention_core(q.reshape(n, s, d), k.reshape(n, s, d),
                       v.reshape(n, s, d), heads)                 # (n, s, d)
    x2 = linear_residual(o.reshape(n * s, d), p["out_w"], p["out_b"], x2)
    x2 = ln_mlp_residual(x2, p["ln2_g"], p["ln2_b"],
                         p["fc_w"], p["fc_b"], p["proj_w"], p["proj_b"])
    return x2


def vvt_forward(x, pp, *, T, heads):
    """Forward pass. x: (B*T, 3, H, W) float32 NCHW."""
    bt, c, hh, ww = x.shape
    width = pp["conv1_w"].shape[1]
    patch = int(round(math.sqrt(pp["conv1_w"].shape[0] // c)))
    gh, gw = hh // patch, ww // patch
    L = gh * gw

    # Patch embedding = bias-free matmul over flattened patches.
    patches = x.reshape(bt, c, gh, patch, gw, patch)
    patches = jnp.transpose(patches, (0, 2, 4, 1, 3, 5)).reshape(bt * L, c * patch * patch)
    tok = matmul(patches, pp["conv1_w"]).reshape(bt, L, width)     # bf16

    cls = jnp.broadcast_to(pp["class_embedding"], (bt, 1, width))
    xb = jnp.concatenate([cls, tok], axis=1)                       # (bt, L+1, W)
    xb = xb + pp["positional_embedding"][None]
    s = L + 1

    x2 = layernorm(xb.reshape(bt * s, width), pp["ln_pre_g"], pp["ln_pre_b"])

    # Spatial blocks: attention over S = L+1 per frame.
    for blk in pp["spatial_blocks"]:
        x2 = residual_block(x2, blk, heads, bt, s)

    # Temporal embedding add; (bt, s, D) and (b, T*s, D) share the same flat order.
    b = bt // T
    x2 = (x2.reshape(b, T, s, width)
          + pp["temporal_embedding"][:, :, None, :]).reshape(bt * s, width)

    # Temporal blocks: attention over the T*(L+1) joint sequence per video.
    for blk in pp["temporal_blocks"]:
        x2 = residual_block(x2, blk, heads, b, T * s)

    xf = x2.reshape(bt, s, width)
    cls_x = ln_matmul(xf[:, 0, :], pp["ln_post_g"], pp["ln_post_b"], pp["proj"])
    return cls_x, xf[:, 1:, :].astype(jnp.float32)


# ----------------------------------------------------------------------------
# Parameter preparation: one-time cast to bf16, reshape, split QKV, fold scale.
# ----------------------------------------------------------------------------

def prepare_params(params, heads):
    def w(a):
        return a.astype(_MXU_DTYPE)

    def row(a):
        return a.reshape(1, -1).astype(jnp.float32)

    width = params["conv1_w"].shape[0]
    dh = width // heads
    scale = 1.0 / math.sqrt(dh)

    pp = {
        "conv1_w": w(params["conv1_w"].reshape(width, -1).T),        # (C*p*p, W)
        "class_embedding": params["class_embedding"].astype(_ACT_DTYPE),
        "positional_embedding": params["positional_embedding"].astype(_ACT_DTYPE),
        "temporal_embedding": params["temporal_embedding"].astype(_ACT_DTYPE),
        "ln_pre_g": row(params["ln_pre_g"]), "ln_pre_b": row(params["ln_pre_b"]),
        "ln_post_g": row(params["ln_post_g"]), "ln_post_b": row(params["ln_post_b"]),
        "proj": w(params["proj"]),
    }

    def blk(p):
        in_w, in_b = p["attn"]["in_w"], p["attn"]["in_b"]
        return {
            "ln1_g": row(p["ln1_g"]), "ln1_b": row(p["ln1_b"]),
            "ln2_g": row(p["ln2_g"]), "ln2_b": row(p["ln2_b"]),
            # 1/sqrt(dh) folded into the q projection once, here.
            "wq": w(in_w[:, :width] * scale), "bq": row(in_b[:width] * scale),
            "wk": w(in_w[:, width:2 * width]), "bk": row(in_b[width:2 * width]),
            "wv": w(in_w[:, 2 * width:]), "bv": row(in_b[2 * width:]),
            "out_w": w(p["attn"]["out_w"]), "out_b": row(p["attn"]["out_b"]),
            "fc_w": w(p["fc_w"]), "fc_b": row(p["fc_b"]),
            "proj_w": w(p["proj_w"]), "proj_b": row(p["proj_b"]),
        }

    pp["spatial_blocks"] = [blk(p) for p in params["spatial_blocks"]]
    pp["temporal_blocks"] = [blk(p) for p in params["temporal_blocks"]]
    return pp


# ----------------------------------------------------------------------------
# Deterministic parameter init (synthetic; shapes follow the module __init__).
# ----------------------------------------------------------------------------

def init_params(key, *, input_resolution, patch_size, width, layers, heads,
                output_dim, T):
    del heads  # shapes don't depend on head count
    scale = width ** -0.5
    L = (input_resolution // patch_size) ** 2
    keys = iter(jax.random.split(key, 64))

    def nrm(shape, std=0.02):
        return (std * jax.random.normal(next(keys), shape)).astype(jnp.float32)

    def ones(n):
        return jnp.ones((n,), jnp.float32)

    def zeros(n):
        return jnp.zeros((n,), jnp.float32)

    params = {
        "conv1_w": nrm((width, 3, patch_size, patch_size)),
        "class_embedding": (scale * jax.random.normal(next(keys), (width,))).astype(jnp.float32),
        "positional_embedding": (scale * jax.random.normal(next(keys), (L + 1, width))).astype(jnp.float32),
        "temporal_embedding": nrm((1, T, width)),
        "ln_pre_g": ones(width), "ln_pre_b": zeros(width),
        "ln_post_g": ones(width), "ln_post_b": zeros(width),
        "proj": (scale * jax.random.normal(next(keys), (width, output_dim))).astype(jnp.float32),
    }

    def block_params():
        return {
            "ln1_g": ones(width), "ln1_b": zeros(width),
            "ln2_g": ones(width), "ln2_b": zeros(width),
            "attn": {
                "in_w": nrm((width, 3 * width)), "in_b": zeros(3 * width),
                "out_w": nrm((width, width)), "out_b": zeros(width),
            },
            "fc_w": nrm((width, 4 * width)), "fc_b": zeros(4 * width),
            "proj_w": nrm((4 * width, width)), "proj_b": zeros(width),
        }

    params["spatial_blocks"] = [block_params() for _ in range(layers)]
    params["temporal_blocks"] = [block_params() for _ in range(layers // 3)]
    return params


# ----------------------------------------------------------------------------
# Main
# ----------------------------------------------------------------------------

if __name__ == "__main__":
    # Small, self-consistent configuration.
    B, T = 2, 2                       # 2 videos x 2 frames -> 4 frame-batch
    input_resolution = 16
    patch_size = 8                    # -> 2x2 = 4 patches per frame
    width = 32
    layers = 3                        # 3 spatial blocks, layers//3 = 1 temporal block
    heads = 4
    output_dim = 16

    key = jax.random.PRNGKey(0)
    kp, kx = jax.random.split(key)
    raw_params = init_params(
        kp, input_resolution=input_resolution, patch_size=patch_size,
        width=width, layers=layers, heads=heads, output_dim=output_dim, T=T)
    params = prepare_params(raw_params, heads)   # one-time bf16 cast / split / fold

    x = jax.random.normal(
        kx, (B * T, 3, input_resolution, input_resolution), dtype=jnp.float32)

    fwd = jax.jit(functools.partial(vvt_forward, T=T, heads=heads))
    cls_x, tokens = fwd(x, params)
    jax.block_until_ready((cls_x, tokens))

    L = (input_resolution // patch_size) ** 2
    assert cls_x.shape == (B * T, output_dim), cls_x.shape
    assert tokens.shape == (B * T, L, width), tokens.shape
    assert bool(jnp.all(jnp.isfinite(cls_x))) and bool(jnp.all(jnp.isfinite(tokens)))
    print("KERNEL_OK")
</pallas_src>

<mosaic_0001>
module attributes {stable_mosaic.version = 11 : i64} {
  func.func @_ln_qkv_kernel(%arg0: i32, %arg1: memref<20x32xbf16, #tpu.memory_space<vmem>>, %arg2: memref<1x32xf32, #tpu.memory_space<vmem>>, %arg3: memref<1x32xf32, #tpu.memory_space<vmem>>, %arg4: memref<32x32xbf16, #tpu.memory_space<vmem>>, %arg5: memref<1x32xf32, #tpu.memory_space<vmem>>, %arg6: memref<32x32xbf16, #tpu.memory_space<vmem>>, %arg7: memref<1x32xf32, #tpu.memory_space<vmem>>, %arg8: memref<32x32xbf16, #tpu.memory_space<vmem>>, %arg9: memref<1x32xf32, #tpu.memory_space<vmem>>, %arg10: memref<20x32xbf16, #tpu.memory_space<vmem>>, %arg11: memref<20x32xbf16, #tpu.memory_space<vmem>>, %arg12: memref<20x32xbf16, #tpu.memory_space<vmem>>) attributes {dimension_semantics = [#tpu.dimension_semantics<parallel>], iteration_bounds = array<i64: 1>, scalar_prefetch = 0 : i64, scratch_operands = 0 : i64, tpu.core_type = #tpu.core_type<tc>, window_params = [{transform_indices = @transform_0, window_bounds = array<i64: 20, 32>}, {pipeline_mode = #tpu.pipeline_mode<synchronous>, transform_indices = @transform_1, window_bounds = array<i64: 1, 32>}, {pipeline_mode = #tpu.pipeline_mode<synchronous>, transform_indices = @transform_2, window_bounds = array<i64: 1, 32>}, {pipeline_mode = #tpu.pipeline_mode<synchronous>, transform_indices = @transform_3, window_bounds = array<i64: 32, 32>}, {pipeline_mode = #tpu.pipeline_mode<synchronous>, transform_indices = @transform_4, window_bounds = array<i64: 1, 32>}, {pipeline_mode = #tpu.pipeline_mode<synchronous>, transform_indices = @transform_5, window_bounds = array<i64: 32, 32>}, {pipeline_mode = #tpu.pipeline_mode<synchronous>, transform_indices = @transform_6, window_bounds = array<i64: 1, 32>}, {pipeline_mode = #tpu.pipeline_mode<synchronous>, transform_indices = @transform_7, window_bounds = array<i64: 32, 32>}, {pipeline_mode = #tpu.pipeline_mode<synchronous>, transform_indices = @transform_8, window_bounds = array<i64: 1, 32>}, {transform_indices = @transform_9, window_bounds = array<i64: 20, 32>}, {transform_indices = @transform_10, window_bounds = array<i64: 20, 32>}, {transform_indices = @transform_11, window_bounds = array<i64: 20, 32>}]} {
    %c0 = arith.constant 0 : index
    %c0_0 = arith.constant 0 : index
    %0 = vector.load %arg1[%c0, %c0_0] : memref<20x32xbf16, #tpu.memory_space<vmem>>, vector<20x32xbf16>
    %1 = arith.extf %0 : vector<20x32xbf16> to vector<20x32xf32>
    %c0_1 = arith.constant 0 : index
    %c0_2 = arith.constant 0 : index
    %2 = vector.load %arg2[%c0_1, %c0_2] : memref<1x32xf32, #tpu.memory_space<vmem>>, vector<1x32xf32>
    %c0_3 = arith.constant 0 : index
    %c0_4 = arith.constant 0 : index
    %3 = vector.load %arg3[%c0_3, %c0_4] : memref<1x32xf32, #tpu.memory_space<vmem>>, vector<1x32xf32>
    %cst = arith.constant dense<0.000000e+00> : vector<20xf32>
    %4 = vector.multi_reduction <add>, %1, %cst [1] : vector<20x32xf32> to vector<20xf32>
    %5 = vector.shape_cast %4 : vector<20xf32> to vector<20x1xf32>
    %cst_5 = arith.constant 3.200000e+01 : f32
    %6 = vector.broadcast %cst_5 : f32 to vector<20x1xf32>
    %7 = arith.divf %5, %6 : vector<20x1xf32>
    %8 = vector.broadcast %7 : vector<20x1xf32> to vector<20x32xf32>
    %9 = arith.subf %1, %8 : vector<20x32xf32>
    %10 = arith.mulf %9, %9 : vector<20x32xf32>
    %cst_6 = arith.constant dense<0.000000e+00> : vector<20xf32>
    %11 = vector.multi_reduction <add>, %10, %cst_6 [1] : vector<20x32xf32> to vector<20xf32>
    %12 = vector.shape_cast %11 : vector<20xf32> to vector<20x1xf32>
    %cst_7 = arith.constant 3.200000e+01 : f32
    %13 = vector.broadcast %cst_7 : f32 to vector<20x1xf32>
    %14 = arith.divf %12, %13 : vector<20x1xf32>
    %cst_8 = arith.constant 9.99999974E-6 : f32
    %15 = vector.broadcast %cst_8 : f32 to vector<20x1xf32>
    %16 = arith.addf %14, %15 : vector<20x1xf32>
    %17 = math.rsqrt %16 : vector<20x1xf32>
    %18 = vector.broadcast %17 : vector<20x1xf32> to vector<20x32xf32>
    %19 = arith.mulf %9, %18 : vector<20x32xf32>
    %20 = vector.broadcast %2 : vector<1x32xf32> to vector<20x32xf32>
    %21 = arith.mulf %19, %20 : vector<20x32xf32>
    %22 = vector.broadcast %3 : vector<1x32xf32> to vector<20x32xf32>
    %23 = arith.addf %21, %22 : vector<20x32xf32>
    %24 = arith.truncf %23 : vector<20x32xf32> to vector<20x32xbf16>
    %c0_9 = arith.constant 0 : index
    %c0_10 = arith.constant 0 : index
    %25 = vector.load %arg4[%c0_9, %c0_10] : memref<32x32xbf16, #tpu.memory_space<vmem>>, vector<32x32xbf16>
    %cst_11 = arith.constant dense<0.000000e+00> : vector<20x32xf32>
    %26 = tpu.matmul %24, %25, %cst_11 {dimension_numbers = #tpu.dot_dimension_numbers<[1], [0], [0], [1], [0, 0, 1, 1], [], []>} : vector<20x32xbf16>, vector<32x32xbf16>, vector<20x32xf32> -> vector<20x32xf32>
    %c0_12 = arith.constant 0 : index
    %c0_13 = arith.constant 0 : index
    %27 = vector.load %arg5[%c0_12, %c0_13] : memref<1x32xf32, #tpu.memory_space<vmem>>, vector<1x32xf32>
    %28 = vector.broadcast %27 : vector<1x32xf32> to vector<20x32xf32>
    %29 = arith.addf %26, %28 : vector<20x32xf32>
    %30 = arith.truncf %29 : vector<20x32xf32> to vector<20x32xbf16>
    %c0_14 = arith.constant 0 : index
    %c0_15 = arith.constant 0 : index
    %31 = vector.load %arg10[%c0_14, %c0_15] : memref<20x32xbf16, #tpu.memory_space<vmem>>, vector<20x32xbf16>
    tpu.vector_store %arg10[%c0_14, %c0_15], %30 {strides = array<i32>} : memref<20x32xbf16, #tpu.memory_space<vmem>>, vector<20x32xbf16>,
    %c0_16 = arith.constant 0 : index
    %c0_17 = arith.constant 0 : index
    %32 = vector.load %arg6[%c0_16, %c0_17] : memref<32x32xbf16, #tpu.memory_space<vmem>>, vector<32x32xbf16>
    %cst_18 = arith.constant dense<0.000000e+00> : vector<20x32xf32>
    %33 = tpu.matmul %24, %32, %cst_18 {dimension_numbers = #tpu.dot_dimension_numbers<[1], [0], [0], [1], [0, 0, 1, 1], [], []>} : vector<20x32xbf16>, vector<32x32xbf16>, vector<20x32xf32> -> vector<20x32xf32>
    %c0_19 = arith.constant 0 : index
    %c0_20 = arith.constant 0 : index
    %34 = vector.load %arg7[%c0_19, %c0_20] : memref<1x32xf32, #tpu.memory_space<vmem>>, vector<1x32xf32>
    %35 = vector.broadcast %34 : vector<1x32xf32> to vector<20x32xf32>
    %36 = arith.addf %33, %35 : vector<20x32xf32>
    %37 = arith.truncf %36 : vector<20x32xf32> to vector<20x32xbf16>
    %c0_21 = arith.constant 0 : index
    %c0_22 = arith.constant 0 : index
    %38 = vector.load %arg11[%c0_21, %c0_22] : memref<20x32xbf16, #tpu.memory_space<vmem>>, vector<20x32xbf16>
    tpu.vector_store %arg11[%c0_21, %c0_22], %37 {strides = array<i32>} : memref<20x32xbf16, #tpu.memory_space<vmem>>, vector<20x32xbf16>,
    %c0_23 = arith.constant 0 : index
    %c0_24 = arith.constant 0 : index
    %39 = vector.load %arg8[%c0_23, %c0_24] : memref<32x32xbf16, #tpu.memory_space<vmem>>, vector<32x32xbf16>
    %cst_25 = arith.constant dense<0.000000e+00> : vector<20x32xf32>
    %40 = tpu.matmul %24, %39, %cst_25 {dimension_numbers = #tpu.dot_dimension_numbers<[1], [0], [0], [1], [0, 0, 1, 1], [], []>} : vector<20x32xbf16>, vector<32x32xbf16>, vector<20x32xf32> -> vector<20x32xf32>
    %c0_26 = arith.constant 0 : index
    %c0_27 = arith.constant 0 : index
    %41 = vector.load %arg9[%c0_26, %c0_27] : memref<1x32xf32, #tpu.memory_space<vmem>>, vector<1x32xf32>
    %42 = vector.broadcast %41 : vector<1x32xf32> to vector<20x32xf32>
    %43 = arith.addf %40, %42 : vector<20x32xf32>
    %44 = arith.truncf %43 : vector<20x32xf32> to vector<20x32xbf16>
    %c0_28 = arith.constant 0 : index
    %c0_29 = arith.constant 0 : index
    %45 = vector.load %arg12[%c0_28, %c0_29] : memref<20x32xbf16, #tpu.memory_space<vmem>>, vector<20x32xbf16>
    tpu.vector_store %arg12[%c0_28, %c0_29], %44 {strides = array<i32>} : memref<20x32xbf16, #tpu.memory_space<vmem>>, vector<20x32xbf16>,
    return
  }
  func.func @transform_0(%arg0: i32) -> (i32, i32) {
    %c0_i32 = arith.constant 0 : i32
    %c0_i32_0 = arith.constant 0 : i32
    return %arg0, %c0_i32 : i32, i32
  }
  func.func @transform_1(%arg0: i32) -> (i32, i32) {
    %c0_i32 = arith.constant 0 : i32
    %c0_i32_0 = arith.constant 0 : i32
    %c0_i32_1 = arith.constant 0 : i32
    return %c0_i32, %c0_i32_0 : i32, i32
  }
  func.func @transform_2(%arg0: i32) -> (i32, i32) {
    %c0_i32 = arith.constant 0 : i32
    %c0_i32_0 = arith.constant 0 : i32
    %c0_i32_1 = arith.constant 0 : i32
    return %c0_i32, %c0_i32_0 : i32, i32
  }
  func.func @transform_3(%arg0: i32) -> (i32, i32) {
    %c0_i32 = arith.constant 0 : i32
    %c0_i32_0 = arith.constant 0 : i32
    %c0_i32_1 = arith.constant 0 : i32
    return %c0_i32, %c0_i32_0 : i32, i32
  }
  func.func @transform_4(%arg0: i32) -> (i32, i32) {
    %c0_i32 = arith.constant 0 : i32
    %c0_i32_0 = arith.constant 0 : i32
    %c0_i32_1 = arith.constant 0 : i32
    return %c0_i32, %c0_i32_0 : i32, i32
  }
  func.func @transform_5(%arg0: i32) -> (i32, i32) {
    %c0_i32 = arith.constant 0 : i32
    %c0_i32_0 = arith.constant 0 : i32
    %c0_i32_1 = arith.constant 0 : i32
    return %c0_i32, %c0_i32_0 : i32, i32
  }
  func.func @transform_6(%arg0: i32) -> (i32, i32) {
    %c0_i32 = arith.constant 0 : i32
    %c0_i32_0 = arith.constant 0 : i32
    %c0_i32_1 = arith.constant 0 : i32
    return %c0_i32, %c0_i32_0 : i32, i32
  }
  func.func @transform_7(%arg0: i32) -> (i32, i32) {
    %c0_i32 = arith.constant 0 : i32
    %c0_i32_0 = arith.constant 0 : i32
    %c0_i32_1 = arith.constant 0 : i32
    return %c0_i32, %c0_i32_0 : i32, i32
  }
  func.func @transform_8(%arg0: i32) -> (i32, i32) {
    %c0_i32 = arith.constant 0 : i32
    %c0_i32_0 = arith.constant 0 : i32
    %c0_i32_1 = arith.constant 0 : i32
    return %c0_i32, %c0_i32_0 : i32, i32
  }
  func.func @transform_9(%arg0: i32) -> (i32, i32) {
    %c0_i32 = arith.constant 0 : i32
    %c0_i32_0 = arith.constant 0 : i32
    return %arg0, %c0_i32 : i32, i32
  }
  func.func @transform_10(%arg0: i32) -> (i32, i32) {
    %c0_i32 = arith.constant 0 : i32
    %c0_i32_0 = arith.constant 0 : i32
    return %arg0, %c0_i32 : i32, i32
  }
  func.func @transform_11(%arg0: i32) -> (i32, i32) {
    %c0_i32 = arith.constant 0 : i32
    %c0_i32_0 = arith.constant 0 : i32
    return %arg0, %c0_i32 : i32, i32
  }
}

module attributes {stable_mosaic.version = 11 : i64} {
  func.func @_matmul_kernel(%arg0: i32, %arg1: memref<16x192xf32, #tpu.memory_space<vmem>>, %arg2: memref<192x32xbf16, #tpu.memory_space<vmem>>, %arg3: memref<16x32xbf16, #tpu.memory_space<vmem>>) attributes {dimension_semantics = [#tpu.dimension_semantics<parallel>], iteration_bounds = array<i64: 1>, scalar_prefetch = 0 : i64, scratch_operands = 0 : i64, tpu.core_type = #tpu.core_type<tc>, window_params = [{transform_indices = @transform_0, window_bounds = array<i64: 16, 192>}, {pipeline_mode = #tpu.pipeline_mode<synchronous>, transform_indices = @transform_1, window_bounds = array<i64: 192, 32>}, {transform_indices = @transform_2, window_bounds = array<i64: 16, 32>}]} {
    %c0 = arith.constant 0 : index
    %c0_0 = arith.constant 0 : index
    %0 = vector.load %arg1[%c0, %c0_0] : memref<16x192xf32, #tpu.memory_space<vmem>>, vector<16x192xf32>
    %1 = arith.truncf %0 : vector<16x192xf32> to vector<16x192xbf16>
    %c0_1 = arith.constant 0 : index
    %c0_2 = arith.constant 0 : index
    %2 = vector.load %arg2[%c0_1, %c0_2] : memref<192x32xbf16, #tpu.memory_space<vmem>>, vector<192x32xbf16>
    %cst = arith.constant dense<0.000000e+00> : vector<16x32xf32>
    %3 = tpu.matmul %1, %2, %cst {dimension_numbers = #tpu.dot_dimension_numbers<[1], [0], [0], [1], [0, 0, 1, 1], [], []>} : vector<16x192xbf16>, vector<192x32xbf16>, vector<16x32xf32> -> vector<16x32xf32>
    %4 = arith.truncf %3 : vector<16x32xf32> to vector<16x32xbf16>
    %c0_3 = arith.constant 0 : index
    %c0_4 = arith.constant 0 : index
    %5 = vector.load %arg3[%c0_3, %c0_4] : memref<16x32xbf16, #tpu.memory_space<vmem>>, vector<16x32xbf16>
    tpu.vector_store %arg3[%c0_3, %c0_4], %4 {strides = array<i32>} : memref<16x32xbf16, #tpu.memory_space<vmem>>, vector<16x32xbf16>,
    return
  }
  func.func @transform_0(%arg0: i32) -> (i32, i32) {
    %c0_i32 = arith.constant 0 : i32
    %c0_i32_0 = arith.constant 0 : i32
    return %arg0, %c0_i32 : i32, i32
  }
  func.func @transform_1(%arg0: i32) -> (i32, i32) {
    %c0_i32 = arith.constant 0 : i32
    %c0_i32_0 = arith.constant 0 : i32
    %c0_i32_1 = arith.constant 0 : i32
    return %c0_i32, %c0_i32_0 : i32, i32
  }
  func.func @transform_2(%arg0: i32) -> (i32, i32) {
    %c0_i32 = arith.constant 0 : i32
    %c0_i32_0 = arith.constant 0 : i32
    return %arg0, %c0_i32 : i32, i32
  }
}

module attributes {stable_mosaic.version = 11 : i64} {
  func.func @_ln_kernel(%arg0: i32, %arg1: memref<20x32xbf16, #tpu.memory_space<vmem>>, %arg2: memref<1x32xf32, #tpu.memory_space<vmem>>, %arg3: memref<1x32xf32, #tpu.memory_space<vmem>>, %arg4: memref<20x32xbf16, #tpu.memory_space<vmem>>) attributes {dimension_semantics = [#tpu.dimension_semantics<parallel>], iteration_bounds = array<i64: 1>, scalar_prefetch = 0 : i64, scratch_operands = 0 : i64, tpu.core_type = #tpu.core_type<tc>, window_params = [{transform_indices = @transform_0, window_bounds = array<i64: 20, 32>}, {pipeline_mode = #tpu.pipeline_mode<synchronous>, transform_indices = @transform_1, window_bounds = array<i64: 1, 32>}, {pipeline_mode = #tpu.pipeline_mode<synchronous>, transform_indices = @transform_2, window_bounds = array<i64: 1, 32>}, {transform_indices = @transform_3, window_bounds = array<i64: 20, 32>}]} {
    %c0 = arith.constant 0 : index
    %c0_0 = arith.constant 0 : index
    %0 = vector.load %arg1[%c0, %c0_0] : memref<20x32xbf16, #tpu.memory_space<vmem>>, vector<20x32xbf16>
    %1 = arith.extf %0 : vector<20x32xbf16> to vector<20x32xf32>
    %c0_1 = arith.constant 0 : index
    %c0_2 = arith.constant 0 : index
    %2 = vector.load %arg2[%c0_1, %c0_2] : memref<1x32xf32, #tpu.memory_space<vmem>>, vector<1x32xf32>
    %c0_3 = arith.constant 0 : index
    %c0_4 = arith.constant 0 : index
    %3 = vector.load %arg3[%c0_3, %c0_4] : memref<1x32xf32, #tpu.memory_space<vmem>>, vector<1x32xf32>
    %cst = arith.constant dense<0.000000e+00> : vector<20xf32>
    %4 = vector.multi_reduction <add>, %1, %cst [1] : vector<20x32xf32> to vector<20xf32>
    %5 = vector.shape_cast %4 : vector<20xf32> to vector<20x1xf32>
    %cst_5 = arith.constant 3.200000e+01 : f32
    %6 = vector.broadcast %cst_5 : f32 to vector<20x1xf32>
    %7 = arith.divf %5, %6 : vector<20x1xf32>
    %8 = vector.broadcast %7 : vector<20x1xf32> to vector<20x32xf32>
    %9 = arith.subf %1, %8 : vector<20x32xf32>
    %10 = arith.mulf %9, %9 : vector<20x32xf32>
    %cst_6 = arith.constant dense<0.000000e+00> : vector<20xf32>
    %11 = vector.multi_reduction <add>, %10, %cst_6 [1] : vector<20x32xf32> to vector<20xf32>
    %12 = vector.shape_cast %11 : vector<20xf32> to vector<20x1xf32>
    %cst_7 = arith.constant 3.200000e+01 : f32
    %13 = vector.broadcast %cst_7 : f32 to vector<20x1xf32>
    %14 = arith.divf %12, %13 : vector<20x1xf32>
    %cst_8 = arith.constant 9.99999974E-6 : f32
    %15 = vector.broadcast %cst_8 : f32 to vector<20x1xf32>
    %16 = arith.addf %14, %15 : vector<20x1xf32>
    %17 = math.rsqrt %16 : vector<20x1xf32>
    %18 = vector.broadcast %17 : vector<20x1xf32> to vector<20x32xf32>
    %19 = arith.mulf %9, %18 : vector<20x32xf32>
    %20 = vector.broadcast %2 : vector<1x32xf32> to vector<20x32xf32>
    %21 = arith.mulf %19, %20 : vector<20x32xf32>
    %22 = vector.broadcast %3 : vector<1x32xf32> to vector<20x32xf32>
    %23 = arith.addf %21, %22 : vector<20x32xf32>
    %24 = arith.truncf %23 : vector<20x32xf32> to vector<20x32xbf16>
    %c0_9 = arith.constant 0 : index
    %c0_10 = arith.constant 0 : index
    %25 = vector.load %arg4[%c0_9, %c0_10] : memref<20x32xbf16, #tpu.memory_space<vmem>>, vector<20x32xbf16>
    tpu.vector_store %arg4[%c0_9, %c0_10], %24 {strides = array<i32>} : memref<20x32xbf16, #tpu.memory_space<vmem>>, vector<20x32xbf16>,
    return
  }
  func.func @transform_0(%arg0: i32) -> (i32, i32) {
    %c0_i32 = arith.constant 0 : i32
    %c0_i32_0 = arith.constant 0 : i32
    return %arg0, %c0_i32 : i32, i32
  }
  func.func @transform_1(%arg0: i32) -> (i32, i32) {
    %c0_i32 = arith.constant 0 : i32
    %c0_i32_0 = arith.constant 0 : i32
    %c0_i32_1 = arith.constant 0 : i32
    return %c0_i32, %c0_i32_0 : i32, i32
  }
  func.func @transform_2(%arg0: i32) -> (i32, i32) {
    %c0_i32 = arith.constant 0 : i32
    %c0_i32_0 = arith.constant 0 : i32
    %c0_i32_1 = arith.constant 0 : i32
    return %c0_i32, %c0_i32_0 : i32, i32
  }
  func.func @transform_3(%arg0: i32) -> (i32, i32) {
    %c0_i32 = arith.constant 0 : i32
    %c0_i32_0 = arith.constant 0 : i32
    return %arg0, %c0_i32 : i32, i32
  }
}

module attributes {stable_mosaic.version = 11 : i64} {
  func.func @_attention_kernel(%arg0: i32, %arg1: i32, %arg2: i32, %arg3: memref<1x5x32xbf16, #tpu.memory_space<vmem>>, %arg4: memref<1x5x32xbf16, #tpu.memory_space<vmem>>, %arg5: memref<1x5x32xbf16, #tpu.memory_space<vmem>>, %arg6: memref<1x5x32xbf16, #tpu.memory_space<vmem>>, %arg7: memref<5x4xf32, #tpu.memory_space<vmem>>, %arg8: memref<5x4xf32, #tpu.memory_space<vmem>>, %arg9: memref<5x32xf32, #tpu.memory_space<vmem>>) attributes {dimension_semantics = [#tpu.dimension_semantics<parallel>, #tpu.dimension_semantics<parallel>, #tpu.dimension_semantics<arbitrary>], iteration_bounds = array<i64: 4, 1, 1>, scalar_prefetch = 0 : i64, scratch_operands = 3 : i64, tpu.core_type = #tpu.core_type<tc>, window_params = [{transform_indices = @transform_0, window_bounds = array<i64: 1, 5, 32>}, {transform_indices = @transform_1, window_bounds = array<i64: 1, 5, 32>}, {transform_indices = @transform_2, window_bounds = array<i64: 1, 5, 32>}, {transform_indices = @transform_3, window_bounds = array<i64: 1, 5, 32>}]} {
    %c0_i32 = arith.constant 0 : i32
    %0 = arith.cmpi eq, %arg2, %c0_i32 : i32
    %1 = arith.extui %0 : i1 to i32
    %c0_i32_0 = arith.constant 0 : i32
    %2 = arith.cmpi ne, %1, %c0_i32_0 : i32
    scf.if %2 {
      %cst_38 = arith.constant 0xFF800000 : f32
      %112 = vector.broadcast %cst_38 : f32 to vector<5x4xf32>
      %c0_39 = arith.constant 0 : index
      %c0_40 = arith.constant 0 : index
      %113 = vector.load %arg7[%c0_39, %c0_40] : memref<5x4xf32, #tpu.memory_space<vmem>>, vector<5x4xf32>
      tpu.vector_store %arg7[%c0_39, %c0_40], %112 {strides = array<i32>} : memref<5x4xf32, #tpu.memory_space<vmem>>, vector<5x4xf32>,
      %cst_41 = arith.constant 0.000000e+00 : f32
      %114 = vector.broadcast %cst_41 : f32 to vector<5x4xf32>
      %c0_42 = arith.constant 0 : index
      %c0_43 = arith.constant 0 : index
      %115 = vector.load %arg8[%c0_42, %c0_43] : memref<5x4xf32, #tpu.memory_space<vmem>>, vector<5x4xf32>
      tpu.vector_store %arg8[%c0_42, %c0_43], %114 {strides = array<i32>} : memref<5x4xf32, #tpu.memory_space<vmem>>, vector<5x4xf32>,
      %cst_44 = arith.constant 0.000000e+00 : f32
      %116 = vector.broadcast %cst_44 : f32 to vector<5x32xf32>
      %c0_45 = arith.constant 0 : index
      %c0_46 = arith.constant 0 : index
      %117 = vector.load %arg9[%c0_45, %c0_46] : memref<5x32xf32, #tpu.memory_space<vmem>>, vector<5x32xf32>
      tpu.vector_store %arg9[%c0_45, %c0_46], %116 {strides = array<i32>} : memref<5x32xf32, #tpu.memory_space<vmem>>, vector<5x32xf32>,
    } else {
    }
    %c0 = arith.constant 0 : index
    %c0_1 = arith.constant 0 : index
    %c0_2 = arith.constant 0 : index
    %3 = vector.load %arg3[%c0, %c0_1, %c0_2] : memref<1x5x32xbf16, #tpu.memory_space<vmem>>, vector<1x5x32xbf16>
    %4 = vector.shape_cast %3 : vector<1x5x32xbf16> to vector<5x32xbf16>
    %c0_3 = arith.constant 0 : index
    %c0_4 = arith.constant 0 : index
    %c0_5 = arith.constant 0 : index
    %5 = vector.load %arg4[%c0_3, %c0_4, %c0_5] : memref<1x5x32xbf16, #tpu.memory_space<vmem>>, vector<1x5x32xbf16>
    %6 = vector.shape_cast %5 : vector<1x5x32xbf16> to vector<5x32xbf16>
    %c0_6 = arith.constant 0 : index
    %c0_7 = arith.constant 0 : index
    %c0_8 = arith.constant 0 : index
    %7 = vector.load %arg5[%c0_6, %c0_7, %c0_8] : memref<1x5x32xbf16, #tpu.memory_space<vmem>>, vector<1x5x32xbf16>
    %8 = vector.shape_cast %7 : vector<1x5x32xbf16> to vector<5x32xbf16>
    %c0_9 = arith.constant 0 : index
    %c0_10 = arith.constant 0 : index
    %9 = vector.load %arg7[%c0_9, %c0_10] : memref<5x4xf32, #tpu.memory_space<vmem>>, vector<5x4xf32>
    %c0_11 = arith.constant 0 : index
    %c0_12 = arith.constant 0 : index
    %10 = vector.load %arg8[%c0_11, %c0_12] : memref<5x4xf32, #tpu.memory_space<vmem>>, vector<5x4xf32>
    %c0_13 = arith.constant 0 : index
    %c0_14 = arith.constant 0 : index
    %11 = vector.load %arg9[%c0_13, %c0_14] : memref<5x32xf32, #tpu.memory_space<vmem>>, vector<5x32xf32>
    %12 = vector.extract_strided_slice %4 {offsets = [0, 0], sizes = [5, 8], strides = [1, 1]} : vector<5x32xbf16> to vector<5x8xbf16>
    %13 = vector.extract_strided_slice %6 {offsets = [0, 0], sizes = [5, 8], strides = [1, 1]} : vector<5x32xbf16> to vector<5x8xbf16>
    %cst = arith.constant dense<0.000000e+00> : vector<5x5xf32>
    %14 = tpu.matmul %12, %13, %cst {dimension_numbers = #tpu.dot_dimension_numbers<[1], [1], [0], [0], [0, 0, 1, 0], [], []>} : vector<5x8xbf16>, vector<5x8xbf16>, vector<5x5xf32> -> vector<5x5xf32>
    %15 = vector.extract_strided_slice %9 {offsets = [0, 0], sizes = [5, 1], strides = [1, 1]} : vector<5x4xf32> to vector<5x1xf32>
    %cst_15 = arith.constant dense<0xFF800000> : vector<5xf32>
    %16 = vector.multi_reduction <maximumf>, %14, %cst_15 [1] : vector<5x5xf32> to vector<5xf32>
    %17 = vector.shape_cast %16 : vector<5xf32> to vector<5x1xf32>
    %18 = arith.maximumf %15, %17 : vector<5x1xf32>
    %19 = arith.subf %15, %18 : vector<5x1xf32>
    %20 = math.exp %19 : vector<5x1xf32>
    %21 = vector.broadcast %18 : vector<5x1xf32> to vector<5x5xf32>
    %22 = arith.subf %14, %21 : vector<5x5xf32>
    %23 = math.exp %22 : vector<5x5xf32>
    %24 = vector.extract_strided_slice %10 {offsets = [0, 0], sizes = [5, 1], strides = [1, 1]} : vector<5x4xf32> to vector<5x1xf32>
    %25 = arith.mulf %20, %24 : vector<5x1xf32>
    %cst_16 = arith.constant dense<0.000000e+00> : vector<5xf32>
    %26 = vector.multi_reduction <add>, %23, %cst_16 [1] : vector<5x5xf32> to vector<5xf32>
    %27 = vector.shape_cast %26 : vector<5xf32> to vector<5x1xf32>
    %28 = arith.addf %25, %27 : vector<5x1xf32>
    %29 = vector.shape_cast %20 : vector<5x1xf32> to vector<5x1xf32>
    %30 = vector.broadcast %29 : vector<5x1xf32> to vector<5x8xf32>
    %31 = arith.truncf %23 : vector<5x5xf32> to vector<5x5xbf16>
    %32 = vector.extract_strided_slice %8 {offsets = [0, 0], sizes = [5, 8], strides = [1, 1]} : vector<5x32xbf16> to vector<5x8xbf16>
    %cst_17 = arith.constant dense<0.000000e+00> : vector<5x8xf32>
    %33 = tpu.matmul %31, %32, %cst_17 {dimension_numbers = #tpu.dot_dimension_numbers<[1], [0], [0], [1], [0, 0, 1, 1], [], []>} : vector<5x5xbf16>, vector<5x8xbf16>, vector<5x8xf32> -> vector<5x8xf32>
    %34 = vector.extract_strided_slice %4 {offsets = [0, 8], sizes = [5, 8], strides = [1, 1]} : vector<5x32xbf16> to vector<5x8xbf16>
    %35 = vector.extract_strided_slice %6 {offsets = [0, 8], sizes = [5, 8], strides = [1, 1]} : vector<5x32xbf16> to vector<5x8xbf16>
    %cst_18 = arith.constant dense<0.000000e+00> : vector<5x5xf32>
    %36 = tpu.matmul %34, %35, %cst_18 {dimension_numbers = #tpu.dot_dimension_numbers<[1], [1], [0], [0], [0, 0, 1, 0], [], []>} : vector<5x8xbf16>, vector<5x8xbf16>, vector<5x5xf32> -> vector<5x5xf32>
    %37 = vector.extract_strided_slice %9 {offsets = [0, 1], sizes = [5, 1], strides = [1, 1]} : vector<5x4xf32> to vector<5x1xf32>
    %cst_19 = arith.constant dense<0xFF800000> : vector<5xf32>
    %38 = vector.multi_reduction <maximumf>, %36, %cst_19 [1] : vector<5x5xf32> to vector<5xf32>
    %39 = vector.shape_cast %38 : vector<5xf32> to vector<5x1xf32>
    %40 = arith.maximumf %37, %39 : vector<5x1xf32>
    %41 = arith.subf %37, %40 : vector<5x1xf32>
    %42 = math.exp %41 : vector<5x1xf32>
    %43 = vector.broadcast %40 : vector<5x1xf32> to vector<5x5xf32>
    %44 = arith.subf %36, %43 : vector<5x5xf32>
    %45 = math.exp %44 : vector<5x5xf32>
    %46 = vector.extract_strided_slice %10 {offsets = [0, 1], sizes = [5, 1], strides = [1, 1]} : vector<5x4xf32> to vector<5x1xf32>
    %47 = arith.mulf %42, %46 : vector<5x1xf32>
    %cst_20 = arith.constant dense<0.000000e+00> : vector<5xf32>
    %48 = vector.multi_reduction <add>, %45, %cst_20 [1] : vector<5x5xf32> to vector<5xf32>
    %49 = vector.shape_cast %48 : vector<5xf32> to vector<5x1xf32>
    %50 = arith.addf %47, %49 : vector<5x1xf32>
    %51 = vector.shape_cast %42 : vector<5x1xf32> to vector<5x1xf32>
    %52 = vector.broadcast %51 : vector<5x1xf32> to vector<5x8xf32>
    %53 = arith.truncf %45 : vector<5x5xf32> to vector<5x5xbf16>
    %54 = vector.extract_strided_slice %8 {offsets = [0, 8], sizes = [5, 8], strides = [1, 1]} : vector<5x32xbf16> to vector<5x8xbf16>
    %cst_21 = arith.constant dense<0.000000e+00> : vector<5x8xf32>
    %55 = tpu.matmul %53, %54, %cst_21 {dimension_numbers = #tpu.dot_dimension_numbers<[1], [0], [0], [1], [0, 0, 1, 1], [], []>} : vector<5x5xbf16>, vector<5x8xbf16>, vector<5x8xf32> -> vector<5x8xf32>
    %56 = vector.extract_strided_slice %4 {offsets = [0, 16], sizes = [5, 8], strides = [1, 1]} : vector<5x32xbf16> to vector<5x8xbf16>
    %57 = vector.extract_strided_slice %6 {offsets = [0, 16], sizes = [5, 8], strides = [1, 1]} : vector<5x32xbf16> to vector<5x8xbf16>
    %cst_22 = arith.constant dense<0.000000e+00> : vector<5x5xf32>
    %58 = tpu.matmul %56, %57, %cst_22 {dimension_numbers = #tpu.dot_dimension_numbers<[1], [1], [0], [0], [0, 0, 1, 0], [], []>} : vector<5x8xbf16>, vector<5x8xbf16>, vector<5x5xf32> -> vector<5x5xf32>
    %59 = vector.extract_strided_slice %9 {offsets = [0, 2], sizes = [5, 1], strides = [1, 1]} : vector<5x4xf32> to vector<5x1xf32>
    %cst_23 = arith.constant dense<0xFF800000> : vector<5xf32>
    %60 = vector.multi_reduction <maximumf>, %58, %cst_23 [1] : vector<5x5xf32> to vector<5xf32>
    %61 = vector.shape_cast %60 : vector<5xf32> to vector<5x1xf32>
    %62 = arith.maximumf %59, %61 : vector<5x1xf32>
    %63 = arith.subf %59, %62 : vector<5x1xf32>
    %64 = math.exp %63 : vector<5x1xf32>
    %65 = vector.broadcast %62 : vector<5x1xf32> to vector<5x5xf32>
    %66 = arith.subf %58, %65 : vector<5x5xf32>
    %67 = math.exp %66 : vector<5x5xf32>
    %68 = vector.extract_strided_slice %10 {offsets = [0, 2], sizes = [5, 1], strides = [1, 1]} : vector<5x4xf32> to vector<5x1xf32>
    %69 = arith.mulf %64, %68 : vector<5x1xf32>
    %cst_24 = arith.constant dense<0.000000e+00> : vector<5xf32>
    %70 = vector.multi_reduction <add>, %67, %cst_24 [1] : vector<5x5xf32> to vector<5xf32>
    %71 = vector.shape_cast %70 : vector<5xf32> to vector<5x1xf32>
    %72 = arith.addf %69, %71 : vector<5x1xf32>
    %73 = vector.shape_cast %64 : vector<5x1xf32> to vector<5x1xf32>
    %74 = vector.broadcast %73 : vector<5x1xf32> to vector<5x8xf32>
    %75 = arith.truncf %67 : vector<5x5xf32> to vector<5x5xbf16>
    %76 = vector.extract_strided_slice %8 {offsets = [0, 16], sizes = [5, 8], strides = [1, 1]} : vector<5x32xbf16> to vector<5x8xbf16>
    %cst_25 = arith.constant dense<0.000000e+00> : vector<5x8xf32>
    %77 = tpu.matmul %75, %76, %cst_25 {dimension_numbers = #tpu.dot_dimension_numbers<[1], [0], [0], [1], [0, 0, 1, 1], [], []>} : vector<5x5xbf16>, vector<5x8xbf16>, vector<5x8xf32> -> vector<5x8xf32>
    %78 = vector.extract_strided_slice %4 {offsets = [0, 24], sizes = [5, 8], strides = [1, 1]} : vector<5x32xbf16> to vector<5x8xbf16>
    %79 = vector.extract_strided_slice %6 {offsets = [0, 24], sizes = [5, 8], strides = [1, 1]} : vector<5x32xbf16> to vector<5x8xbf16>
    %cst_26 = arith.constant dense<0.000000e+00> : vector<5x5xf32>
    %80 = tpu.matmul %78, %79, %cst_26 {dimension_numbers = #tpu.dot_dimension_numbers<[1], [1], [0], [0], [0, 0, 1, 0], [], []>} : vector<5x8xbf16>, vector<5x8xbf16>, vector<5x5xf32> -> vector<5x5xf32>
    %81 = vector.extract_strided_slice %9 {offsets = [0, 3], sizes = [5, 1], strides = [1, 1]} : vector<5x4xf32> to vector<5x1xf32>
    %cst_27 = arith.constant dense<0xFF800000> : vector<5xf32>
    %82 = vector.multi_reduction <maximumf>, %80, %cst_27 [1] : vector<5x5xf32> to vector<5xf32>
    %83 = vector.shape_cast %82 : vector<5xf32> to vector<5x1xf32>
    %84 = arith.maximumf %81, %83 : vector<5x1xf32>
    %85 = arith.subf %81, %84 : vector<5x1xf32>
    %86 = math.exp %85 : vector<5x1xf32>
    %87 = vector.broadcast %84 : vector<5x1xf32> to vector<5x5xf32>
    %88 = arith.subf %80, %87 : vector<5x5xf32>
    %89 = math.exp %88 : vector<5x5xf32>
    %90 = vector.extract_strided_slice %10 {offsets = [0, 3], sizes = [5, 1], strides = [1, 1]} : vector<5x4xf32> to vector<5x1xf32>
    %91 = arith.mulf %86, %90 : vector<5x1xf32>
    %cst_28 = arith.constant dense<0.000000e+00> : vector<5xf32>
    %92 = vector.multi_reduction <add>, %89, %cst_28 [1] : vector<5x5xf32> to vector<5xf32>
    %93 = vector.shape_cast %92 : vector<5xf32> to vector<5x1xf32>
    %94 = arith.addf %91, %93 : vector<5x1xf32>
    %95 = vector.shape_cast %86 : vector<5x1xf32> to vector<5x1xf32>
    %96 = vector.broadcast %95 : vector<5x1xf32> to vector<5x8xf32>
    %97 = arith.truncf %89 : vector<5x5xf32> to vector<5x5xbf16>
    %98 = vector.extract_strided_slice %8 {offsets = [0, 24], sizes = [5, 8], strides = [1, 1]} : vector<5x32xbf16> to vector<5x8xbf16>
    %cst_29 = arith.constant dense<0.000000e+00> : vector<5x8xf32>
    %99 = tpu.matmul %97, %98, %cst_29 {dimension_numbers = #tpu.dot_dimension_numbers<[1], [0], [0], [1], [0, 0, 1, 1], [], []>} : vector<5x5xbf16>, vector<5x8xbf16>, vector<5x8xf32> -> vector<5x8xf32>
    %100 = tpu.concatenate %18, %40, %62, %84 in 1 : vector<5x1xf32>, vector<5x1xf32>, vector<5x1xf32>, vector<5x1xf32> -> vector<5x4xf32>
    %c0_30 = arith.constant 0 : index
    %c0_31 = arith.constant 0 : index
    %101 = vector.load %arg7[%c0_30, %c0_31] : memref<5x4xf32, #tpu.memory_space<vmem>>, vector<5x4xf32>
    tpu.vector_store %arg7[%c0_30, %c0_31], %100 {strides = array<i32>} : memref<5x4xf32, #tpu.memory_space<vmem>>, vector<5x4xf32>,
    %102 = tpu.concatenate %28, %50, %72, %94 in 1 : vector<5x1xf32>, vector<5x1xf32>, vector<5x1xf32>, vector<5x1xf32> -> vector<5x4xf32>
    %c0_32 = arith.constant 0 : index
    %c0_33 = arith.constant 0 : index
    %103 = vector.load %arg8[%c0_32, %c0_33] : memref<5x4xf32, #tpu.memory_space<vmem>>, vector<5x4xf32>
    tpu.vector_store %arg8[%c0_32, %c0_33], %102 {strides = array<i32>} : memref<5x4xf32, #tpu.memory_space<vmem>>, vector<5x4xf32>,
    %104 = tpu.concatenate %30, %52, %74, %96 in 1 : vector<5x8xf32>, vector<5x8xf32>, vector<5x8xf32>, vector<5x8xf32> -> vector<5x32xf32>
    %105 = arith.mulf %104, %11 : vector<5x32xf32>
    %106 = tpu.concatenate %33, %55, %77, %99 in 1 : vector<5x8xf32>, vector<5x8xf32>, vector<5x8xf32>, vector<5x8xf32> -> vector<5x32xf32>
    %107 = arith.addf %105, %106 : vector<5x32xf32>
    %c0_34 = arith.constant 0 : index
    %c0_35 = arith.constant 0 : index
    %108 = vector.load %arg9[%c0_34, %c0_35] : memref<5x32xf32, #tpu.memory_space<vmem>>, vector<5x32xf32>
    tpu.vector_store %arg9[%c0_34, %c0_35], %107 {strides = array<i32>} : memref<5x32xf32, #tpu.memory_space<vmem>>, vector<5x32xf32>,
    %c0_i32_36 = arith.constant 0 : i32
    %109 = arith.cmpi eq, %arg2, %c0_i32_36 : i32
    %110 = arith.extui %109 : i1 to i32
    %c0_i32_37 = arith.constant 0 : i32
    %111 = arith.cmpi ne, %110, %c0_i32_37 : i32
    scf.if %111 {
      %112 = tpu.reciprocal %102 {approx = true} : vector<5x4xf32> -> vector<5x4xf32>
      %113 = vector.extract_strided_slice %112 {offsets = [0, 0], sizes = [5, 1], strides = [1, 1]} : vector<5x4xf32> to vector<5x1xf32>
      %114 = vector.shape_cast %113 : vector<5x1xf32> to vector<5x1xf32>
      %115 = vector.broadcast %114 : vector<5x1xf32> to vector<5x8xf32>
      %116 = vector.extract_strided_slice %112 {offsets = [0, 1], sizes = [5, 1], strides = [1, 1]} : vector<5x4xf32> to vector<5x1xf32>
      %117 = vector.shape_cast %116 : vector<5x1xf32> to vector<5x1xf32>
      %118 = vector.broadcast %117 : vector<5x1xf32> to vector<5x8xf32>
      %119 = vector.extract_strided_slice %112 {offsets = [0, 2], sizes = [5, 1], strides = [1, 1]} : vector<5x4xf32> to vector<5x1xf32>
      %120 = vector.shape_cast %119 : vector<5x1xf32> to vector<5x1xf32>
      %121 = vector.broadcast %120 : vector<5x1xf32> to vector<5x8xf32>
      %122 = vector.extract_strided_slice %112 {offsets = [0, 3], sizes = [5, 1], strides = [1, 1]} : vector<5x4xf32> to vector<5x1xf32>
      %123 = vector.shape_cast %122 : vector<5x1xf32> to vector<5x1xf32>
      %124 = vector.broadcast %123 : vector<5x1xf32> to vector<5x8xf32>
      %125 = tpu.concatenate %115, %118, %121, %124 in 1 : vector<5x8xf32>, vector<5x8xf32>, vector<5x8xf32>, vector<5x8xf32> -> vector<5x32xf32>
      %126 = arith.mulf %107, %125 : vector<5x32xf32>
      %127 = arith.truncf %126 : vector<5x32xf32> to vector<5x32xbf16>
      %c0_38 = arith.constant 0 : index
      %c0_39 = arith.constant 0 : index
      %c0_40 = arith.constant 0 : index
      %128 = vector.load %arg6[%c0_38, %c0_39, %c0_40] : memref<1x5x32xbf16, #tpu.memory_space<vmem>>, vector<1x5x32xbf16>
      %129 = vector.shape_cast %128 : vector<1x5x32xbf16> to vector<5x32xbf16>
      %130 = vector.shape_cast %127 : vector<5x32xbf16> to vector<1x5x32xbf16>
      tpu.vector_store %arg6[%c0_38, %c0_39, %c0_40], %130 {strides = array<i32>} : memref<1x5x32xbf16, #tpu.memory_space<vmem>>, vector<1x5x32xbf16>,
    } else {
    }
    return
  }
  func.func @transform_0(%arg0: i32, %arg1: i32, %arg2: i32) -> (i32, i32, i32) {
    %c0_i32 = arith.constant 0 : i32
    %c0_i32_0 = arith.constant 0 : i32
    return %arg0, %arg1, %c0_i32 : i32, i32, i32
  }
  func.func @transform_1(%arg0: i32, %arg1: i32, %arg2: i32) -> (i32, i32, i32) {
    %c0_i32 = arith.constant 0 : i32
    %c0_i32_0 = arith.constant 0 : i32
    return %arg0, %arg2, %c0_i32 : i32, i32, i32
  }
  func.func @transform_2(%arg0: i32, %arg1: i32, %arg2: i32) -> (i32, i32, i32) {
    %c0_i32 = arith.constant 0 : i32
    %c0_i32_0 = arith.constant 0 : i32
    return %arg0, %arg2, %c0_i32 : i32, i32, i32
  }
  func.func @transform_3(%arg0: i32, %arg1: i32, %arg2: i32) -> (i32, i32, i32) {
    %c0_i32 = arith.constant 0 : i32
    %c0_i32_0 = arith.constant 0 : i32
    return %arg0, %arg1, %c0_i32 : i32, i32, i32
  }
}

module attributes {stable_mosaic.version = 11 : i64} {
  func.func @_ln_mlp_residual_kernel(%arg0: i32, %arg1: i32, %arg2: memref<20x32xbf16, #tpu.memory_space<vmem>>, %arg3: memref<1x32xf32, #tpu.memory_space<vmem>>, %arg4: memref<1x32xf32, #tpu.memory_space<vmem>>, %arg5: memref<32x128xbf16, #tpu.memory_space<vmem>>, %arg6: memref<1x128xf32, #tpu.memory_space<vmem>>, %arg7: memref<128x32xbf16, #tpu.memory_space<vmem>>, %arg8: memref<1x32xf32, #tpu.memory_space<vmem>>, %arg9: memref<20x32xbf16, #tpu.memory_space<vmem>>, %arg10: memref<20x32xbf16, #tpu.memory_space<vmem>>, %arg11: memref<20x32xf32, #tpu.memory_space<vmem>>) attributes {dimension_semantics = [#tpu.dimension_semantics<parallel>, #tpu.dimension_semantics<arbitrary>], iteration_bounds = array<i64: 1, 1>, scalar_prefetch = 0 : i64, scratch_operands = 2 : i64, tpu.core_type = #tpu.core_type<tc>, window_params = [{transform_indices = @transform_0, window_bounds = array<i64: 20, 32>}, {pipeline_mode = #tpu.pipeline_mode<synchronous>, transform_indices = @transform_1, window_bounds = array<i64: 1, 32>}, {pipeline_mode = #tpu.pipeline_mode<synchronous>, transform_indices = @transform_2, window_bounds = array<i64: 1, 32>}, {transform_indices = @transform_3, window_bounds = array<i64: 32, 128>}, {transform_indices = @transform_4, window_bounds = array<i64: 1, 128>}, {transform_indices = @transform_5, window_bounds = array<i64: 128, 32>}, {pipeline_mode = #tpu.pipeline_mode<synchronous>, transform_indices = @transform_6, window_bounds = array<i64: 1, 32>}, {transform_indices = @transform_7, window_bounds = array<i64: 20, 32>}]} {
    %c0_i32 = arith.constant 0 : i32
    %0 = arith.cmpi eq, %arg1, %c0_i32 : i32
    %1 = arith.extui %0 : i1 to i32
    %c0_i32_0 = arith.constant 0 : i32
    %2 = arith.cmpi ne, %1, %c0_i32_0 : i32
    scf.if %2 {
      %c0_17 = arith.constant 0 : index
      %c0_18 = arith.constant 0 : index
      %26 = vector.load %arg2[%c0_17, %c0_18] : memref<20x32xbf16, #tpu.memory_space<vmem>>, vector<20x32xbf16>
      %27 = arith.extf %26 : vector<20x32xbf16> to vector<20x32xf32>
      %c0_19 = arith.constant 0 : index
      %c0_20 = arith.constant 0 : index
      %28 = vector.load %arg3[%c0_19, %c0_20] : memref<1x32xf32, #tpu.memory_space<vmem>>, vector<1x32xf32>
      %c0_21 = arith.constant 0 : index
      %c0_22 = arith.constant 0 : index
      %29 = vector.load %arg4[%c0_21, %c0_22] : memref<1x32xf32, #tpu.memory_space<vmem>>, vector<1x32xf32>
      %cst_23 = arith.constant dense<0.000000e+00> : vector<20xf32>
      %30 = vector.multi_reduction <add>, %27, %cst_23 [1] : vector<20x32xf32> to vector<20xf32>
      %31 = vector.shape_cast %30 : vector<20xf32> to vector<20x1xf32>
      %cst_24 = arith.constant 3.200000e+01 : f32
      %32 = vector.broadcast %cst_24 : f32 to vector<20x1xf32>
      %33 = arith.divf %31, %32 : vector<20x1xf32>
      %34 = vector.broadcast %33 : vector<20x1xf32> to vector<20x32xf32>
      %35 = arith.subf %27, %34 : vector<20x32xf32>
      %36 = arith.mulf %35, %35 : vector<20x32xf32>
      %cst_25 = arith.constant dense<0.000000e+00> : vector<20xf32>
      %37 = vector.multi_reduction <add>, %36, %cst_25 [1] : vector<20x32xf32> to vector<20xf32>
      %38 = vector.shape_cast %37 : vector<20xf32> to vector<20x1xf32>
      %cst_26 = arith.constant 3.200000e+01 : f32
      %39 = vector.broadcast %cst_26 : f32 to vector<20x1xf32>
      %40 = arith.divf %38, %39 : vector<20x1xf32>
      %cst_27 = arith.constant 9.99999974E-6 : f32
      %41 = vector.broadcast %cst_27 : f32 to vector<20x1xf32>
      %42 = arith.addf %40, %41 : vector<20x1xf32>
      %43 = math.rsqrt %42 : vector<20x1xf32>
      %44 = vector.broadcast %43 : vector<20x1xf32> to vector<20x32xf32>
      %45 = arith.mulf %35, %44 : vector<20x32xf32>
      %46 = vector.broadcast %28 : vector<1x32xf32> to vector<20x32xf32>
      %47 = arith.mulf %45, %46 : vector<20x32xf32>
      %48 = vector.broadcast %29 : vector<1x32xf32> to vector<20x32xf32>
      %49 = arith.addf %47, %48 : vector<20x32xf32>
      %50 = arith.truncf %49 : vector<20x32xf32> to vector<20x32xbf16>
      %c0_28 = arith.constant 0 : index
      %c0_29 = arith.constant 0 : index
      %51 = vector.load %arg10[%c0_28, %c0_29] : memref<20x32xbf16, #tpu.memory_space<vmem>>, vector<20x32xbf16>
      tpu.vector_store %arg10[%c0_28, %c0_29], %50 {strides = array<i32>} : memref<20x32xbf16, #tpu.memory_space<vmem>>, vector<20x32xbf16>,
      %c0_30 = arith.constant 0 : index
      %c0_31 = arith.constant 0 : index
      %52 = vector.load %arg8[%c0_30, %c0_31] : memref<1x32xf32, #tpu.memory_space<vmem>>, vector<1x32xf32>
      %53 = vector.broadcast %52 : vector<1x32xf32> to vector<20x32xf32>
      %54 = arith.addf %27, %53 : vector<20x32xf32>
      %c0_32 = arith.constant 0 : index
      %c0_33 = arith.constant 0 : index
      %55 = vector.load %arg11[%c0_32, %c0_33] : memref<20x32xf32, #tpu.memory_space<vmem>>, vector<20x32xf32>
      tpu.vector_store %arg11[%c0_32, %c0_33], %54 {strides = array<i32>} : memref<20x32xf32, #tpu.memory_space<vmem>>, vector<20x32xf32>,
    } else {
    }
    %c0 = arith.constant 0 : index
    %c0_1 = arith.constant 0 : index
    %3 = vector.load %arg10[%c0, %c0_1] : memref<20x32xbf16, #tpu.memory_space<vmem>>, vector<20x32xbf16>
    %c0_2 = arith.constant 0 : index
    %c0_3 = arith.constant 0 : index
    %4 = vector.load %arg5[%c0_2, %c0_3] : memref<32x128xbf16, #tpu.memory_space<vmem>>, vector<32x128xbf16>
    %cst = arith.constant dense<0.000000e+00> : vector<20x128xf32>
    %5 = tpu.matmul %3, %4, %cst {dimension_numbers = #tpu.dot_dimension_numbers<[1], [0], [0], [1], [0, 0, 1, 1], [], []>} : vector<20x32xbf16>, vector<32x128xbf16>, vector<20x128xf32> -> vector<20x128xf32>
    %c0_4 = arith.constant 0 : index
    %c0_5 = arith.constant 0 : index
    %6 = vector.load %arg6[%c0_4, %c0_5] : memref<1x128xf32, #tpu.memory_space<vmem>>, vector<1x128xf32>
    %7 = vector.broadcast %6 : vector<1x128xf32> to vector<20x128xf32>
    %8 = arith.addf %5, %7 : vector<20x128xf32>
    %cst_6 = arith.constant 1.702000e+00 : f32
    %9 = vector.broadcast %cst_6 : f32 to vector<20x128xf32>
    %10 = arith.mulf %9, %8 : vector<20x128xf32>
    %11 = arith.negf %10 : vector<20x128xf32>
    %12 = math.exp %11 : vector<20x128xf32>
    %cst_7 = arith.constant 1.000000e+00 : f32
    %13 = vector.broadcast %cst_7 : f32 to vector<20x128xf32>
    %14 = arith.addf %13, %12 : vector<20x128xf32>
    %15 = arith.divf %13, %14 : vector<20x128xf32>
    %16 = arith.mulf %8, %15 : vector<20x128xf32>
    %c0_8 = arith.constant 0 : index
    %c0_9 = arith.constant 0 : index
    %17 = vector.load %arg11[%c0_8, %c0_9] : memref<20x32xf32, #tpu.memory_space<vmem>>, vector<20x32xf32>
    %18 = arith.truncf %16 : vector<20x128xf32> to vector<20x128xbf16>
    %c0_10 = arith.constant 0 : index
    %c0_11 = arith.constant 0 : index
    %19 = vector.load %arg7[%c0_10, %c0_11] : memref<128x32xbf16, #tpu.memory_space<vmem>>, vector<128x32xbf16>
    %cst_12 = arith.constant dense<0.000000e+00> : vector<20x32xf32>
    %20 = tpu.matmul %18, %19, %cst_12 {dimension_numbers = #tpu.dot_dimension_numbers<[1], [0], [0], [1], [0, 0, 1, 1], [], []>} : vector<20x128xbf16>, vector<128x32xbf16>, vector<20x32xf32> -> vector<20x32xf32>
    %21 = arith.addf %17, %20 : vector<20x32xf32>
    %c0_13 = arith.constant 0 : index
    %c0_14 = arith.constant 0 : index
    %22 = vector.load %arg11[%c0_13, %c0_14] : memref<20x32xf32, #tpu.memory_space<vmem>>, vector<20x32xf32>
    tpu.vector_store %arg11[%c0_13, %c0_14], %21 {strides = array<i32>} : memref<20x32xf32, #tpu.memory_space<vmem>>, vector<20x32xf32>,
    %c0_i32_15 = arith.constant 0 : i32
    %23 = arith.cmpi eq, %arg1, %c0_i32_15 : i32
    %24 = arith.extui %23 : i1 to i32
    %c0_i32_16 = arith.constant 0 : i32
    %25 = arith.cmpi ne, %24, %c0_i32_16 : i32
    scf.if %25 {
      %c0_17 = arith.constant 0 : index
      %c0_18 = arith.constant 0 : index
      %26 = vector.load %arg11[%c0_17, %c0_18] : memref<20x32xf32, #tpu.memory_space<vmem>>, vector<20x32xf32>
      %27 = arith.truncf %26 : vector<20x32xf32> to vector<20x32xbf16>
      %c0_19 = arith.constant 0 : index
      %c0_20 = arith.constant 0 : index
      %28 = vector.load %arg9[%c0_19, %c0_20] : memref<20x32xbf16, #tpu.memory_space<vmem>>, vector<20x32xbf16>
      tpu.vector_store %arg9[%c0_19, %c0_20], %27 {strides = array<i32>} : memref<20x32xbf16, #tpu.memory_space<vmem>>, vector<20x32xbf16>,
    } else {
    }
    return
  }
  func.func @transform_0(%arg0: i32, %arg1: i32) -> (i32, i32) {
    %c0_i32 = arith.constant 0 : i32
    %c0_i32_0 = arith.constant 0 : i32
    return %arg0, %c0_i32 : i32, i32
  }
  func.func @transform_1(%arg0: i32, %arg1: i32) -> (i32, i32) {
    %c0_i32 = arith.constant 0 : i32
    %c0_i32_0 = arith.constant 0 : i32
    %c0_i32_1 = arith.constant 0 : i32
    return %c0_i32, %c0_i32_0 : i32, i32
  }
  func.func @transform_2(%arg0: i32, %arg1: i32) -> (i32, i32) {
    %c0_i32 = arith.constant 0 : i32
    %c0_i32_0 = arith.constant 0 : i32
    %c0_i32_1 = arith.constant 0 : i32
    return %c0_i32, %c0_i32_0 : i32, i32
  }
  func.func @transform_3(%arg0: i32, %arg1: i32) -> (i32, i32) {
    %c0_i32 = arith.constant 0 : i32
    %c0_i32_0 = arith.constant 0 : i32
    return %c0_i32, %arg1 : i32, i32
  }
  func.func @transform_4(%arg0: i32, %arg1: i32) -> (i32, i32) {
    %c0_i32 = arith.constant 0 : i32
    %c0_i32_0 = arith.constant 0 : i32
    return %c0_i32, %arg1 : i32, i32
  }
  func.func @transform_5(%arg0: i32, %arg1: i32) -> (i32, i32) {
    %c0_i32 = arith.constant 0 : i32
    %c0_i32_0 = arith.constant 0 : i32
    return %arg1, %c0_i32 : i32, i32
  }
  func.func @transform_6(%arg0: i32, %arg1: i32) -> (i32, i32) {
    %c0_i32 = arith.constant 0 : i32
    %c0_i32_0 = arith.constant 0 : i32
    %c0_i32_1 = arith.constant 0 : i32
    return %c0_i32, %c0_i32_0 : i32, i32
  }
  func.func @transform_7(%arg0: i32, %arg1: i32) -> (i32, i32) {
    %c0_i32 = arith.constant 0 : i32
    %c0_i32_0 = arith.constant 0 : i32
    return %arg0, %c0_i32 : i32, i32
  }
}

module attributes {stable_mosaic.version = 11 : i64} {
  func.func @_linear_residual_kernel(%arg0: i32, %arg1: memref<20x32xbf16, #tpu.memory_space<vmem>>, %arg2: memref<32x32xbf16, #tpu.memory_space<vmem>>, %arg3: memref<1x32xf32, #tpu.memory_space<vmem>>, %arg4: memref<20x32xbf16, #tpu.memory_space<vmem>>, %arg5: memref<20x32xbf16, #tpu.memory_space<vmem>>) attributes {dimension_semantics = [#tpu.dimension_semantics<parallel>], iteration_bounds = array<i64: 1>, scalar_prefetch = 0 : i64, scratch_operands = 0 : i64, tpu.core_type = #tpu.core_type<tc>, window_params = [{transform_indices = @transform_0, window_bounds = array<i64: 20, 32>}, {pipeline_mode = #tpu.pipeline_mode<synchronous>, transform_indices = @transform_1, window_bounds = array<i64: 32, 32>}, {pipeline_mode = #tpu.pipeline_mode<synchronous>, transform_indices = @transform_2, window_bounds = array<i64: 1, 32>}, {transform_indices = @transform_3, window_bounds = array<i64: 20, 32>}, {transform_indices = @transform_4, window_bounds = array<i64: 20, 32>}]} {
    %c0 = arith.constant 0 : index
    %c0_0 = arith.constant 0 : index
    %0 = vector.load %arg1[%c0, %c0_0] : memref<20x32xbf16, #tpu.memory_space<vmem>>, vector<20x32xbf16>
    %c0_1 = arith.constant 0 : index
    %c0_2 = arith.constant 0 : index
    %1 = vector.load %arg2[%c0_1, %c0_2] : memref<32x32xbf16, #tpu.memory_space<vmem>>, vector<32x32xbf16>
    %cst = arith.constant dense<0.000000e+00> : vector<20x32xf32>
    %2 = tpu.matmul %0, %1, %cst {dimension_numbers = #tpu.dot_dimension_numbers<[1], [0], [0], [1], [0, 0, 1, 1], [], []>} : vector<20x32xbf16>, vector<32x32xbf16>, vector<20x32xf32> -> vector<20x32xf32>
    %c0_3 = arith.constant 0 : index
    %c0_4 = arith.constant 0 : index
    %3 = vector.load %arg3[%c0_3, %c0_4] : memref<1x32xf32, #tpu.memory_space<vmem>>, vector<1x32xf32>
    %4 = vector.broadcast %3 : vector<1x32xf32> to vector<20x32xf32>
    %5 = arith.addf %2, %4 : vector<20x32xf32>
    %c0_5 = arith.constant 0 : index
    %c0_6 = arith.constant 0 : index
    %6 = vector.load %arg4[%c0_5, %c0_6] : memref<20x32xbf16, #tpu.memory_space<vmem>>, vector<20x32xbf16>
    %7 = arith.extf %6 : vector<20x32xbf16> to vector<20x32xf32>
    %8 = arith.addf %5, %7 : vector<20x32xf32>
    %9 = arith.truncf %8 : vector<20x32xf32> to vector<20x32xbf16>
    %c0_7 = arith.constant 0 : index
    %c0_8 = arith.constant 0 : index
    %10 = vector.load %arg5[%c0_7, %c0_8] : memref<20x32xbf16, #tpu.memory_space<vmem>>, vector<20x32xbf16>
    tpu.vector_store %arg5[%c0_7, %c0_8], %9 {strides = array<i32>} : memref<20x32xbf16, #tpu.memory_space<vmem>>, vector<20x32xbf16>,
    return
  }
  func.func @transform_0(%arg0: i32) -> (i32, i32) {
    %c0_i32 = arith.constant 0 : i32
    %c0_i32_0 = arith.constant 0 : i32
    return %arg0, %c0_i32 : i32, i32
  }
  func.func @transform_1(%arg0: i32) -> (i32, i32) {
    %c0_i32 = arith.constant 0 : i32
    %c0_i32_0 = arith.constant 0 : i32
    %c0_i32_1 = arith.constant 0 : i32
    return %c0_i32, %c0_i32_0 : i32, i32
  }
  func.func @transform_2(%arg0: i32) -> (i32, i32) {
    %c0_i32 = arith.constant 0 : i32
    %c0_i32_0 = arith.constant 0 : i32
    %c0_i32_1 = arith.constant 0 : i32
    return %c0_i32, %c0_i32_0 : i32, i32
  }
  func.func @transform_3(%arg0: i32) -> (i32, i32) {
    %c0_i32 = arith.constant 0 : i32
    %c0_i32_0 = arith.constant 0 : i32
    return %arg0, %c0_i32 : i32, i32
  }
  func.func @transform_4(%arg0: i32) -> (i32, i32) {
    %c0_i32 = arith.constant 0 : i32
    %c0_i32_0 = arith.constant 0 : i32
    return %arg0, %c0_i32 : i32, i32
  }
}

module attributes {stable_mosaic.version = 11 : i64} {
  func.func @_attention_kernel(%arg0: i32, %arg1: i32, %arg2: i32, %arg3: memref<1x10x32xbf16, #tpu.memory_space<vmem>>, %arg4: memref<1x10x32xbf16, #tpu.memory_space<vmem>>, %arg5: memref<1x10x32xbf16, #tpu.memory_space<vmem>>, %arg6: memref<1x10x32xbf16, #tpu.memory_space<vmem>>, %arg7: memref<10x4xf32, #tpu.memory_space<vmem>>, %arg8: memref<10x4xf32, #tpu.memory_space<vmem>>, %arg9: memref<10x32xf32, #tpu.memory_space<vmem>>) attributes {dimension_semantics = [#tpu.dimension_semantics<parallel>, #tpu.dimension_semantics<parallel>, #tpu.dimension_semantics<arbitrary>], iteration_bounds = array<i64: 2, 1, 1>, scalar_prefetch = 0 : i64, scratch_operands = 3 : i64, tpu.core_type = #tpu.core_type<tc>, window_params = [{transform_indices = @transform_0, window_bounds = array<i64: 1, 10, 32>}, {transform_indices = @transform_1, window_bounds = array<i64: 1, 10, 32>}, {transform_indices = @transform_2, window_bounds = array<i64: 1, 10, 32>}, {transform_indices = @transform_3, window_bounds = array<i64: 1, 10, 32>}]} {
    %c0_i32 = arith.constant 0 : i32
    %0 = arith.cmpi eq, %arg2, %c0_i32 : i32
    %1 = arith.extui %0 : i1 to i32
    %c0_i32_0 = arith.constant 0 : i32
    %2 = arith.cmpi ne, %1, %c0_i32_0 : i32
    scf.if %2 {
      %cst_38 = arith.constant 0xFF800000 : f32
      %112 = vector.broadcast %cst_38 : f32 to vector<10x4xf32>
      %c0_39 = arith.constant 0 : index
      %c0_40 = arith.constant 0 : index
      %113 = vector.load %arg7[%c0_39, %c0_40] : memref<10x4xf32, #tpu.memory_space<vmem>>, vector<10x4xf32>
      tpu.vector_store %arg7[%c0_39, %c0_40], %112 {strides = array<i32>} : memref<10x4xf32, #tpu.memory_space<vmem>>, vector<10x4xf32>,
      %cst_41 = arith.constant 0.000000e+00 : f32
      %114 = vector.broadcast %cst_41 : f32 to vector<10x4xf32>
      %c0_42 = arith.constant 0 : index
      %c0_43 = arith.constant 0 : index
      %115 = vector.load %arg8[%c0_42, %c0_43] : memref<10x4xf32, #tpu.memory_space<vmem>>, vector<10x4xf32>
      tpu.vector_store %arg8[%c0_42, %c0_43], %114 {strides = array<i32>} : memref<10x4xf32, #tpu.memory_space<vmem>>, vector<10x4xf32>,
      %cst_44 = arith.constant 0.000000e+00 : f32
      %116 = vector.broadcast %cst_44 : f32 to vector<10x32xf32>
      %c0_45 = arith.constant 0 : index
      %c0_46 = arith.constant 0 : index
      %117 = vector.load %arg9[%c0_45, %c0_46] : memref<10x32xf32, #tpu.memory_space<vmem>>, vector<10x32xf32>
      tpu.vector_store %arg9[%c0_45, %c0_46], %116 {strides = array<i32>} : memref<10x32xf32, #tpu.memory_space<vmem>>, vector<10x32xf32>,
    } else {
    }
    %c0 = arith.constant 0 : index
    %c0_1 = arith.constant 0 : index
    %c0_2 = arith.constant 0 : index
    %3 = vector.load %arg3[%c0, %c0_1, %c0_2] : memref<1x10x32xbf16, #tpu.memory_space<vmem>>, vector<1x10x32xbf16>
    %4 = vector.shape_cast %3 : vector<1x10x32xbf16> to vector<10x32xbf16>
    %c0_3 = arith.constant 0 : index
    %c0_4 = arith.constant 0 : index
    %c0_5 = arith.constant 0 : index
    %5 = vector.load %arg4[%c0_3, %c0_4, %c0_5] : memref<1x10x32xbf16, #tpu.memory_space<vmem>>, vector<1x10x32xbf16>
    %6 = vector.shape_cast %5 : vector<1x10x32xbf16> to vector<10x32xbf16>
    %c0_6 = arith.constant 0 : index
    %c0_7 = arith.constant 0 : index
    %c0_8 = arith.constant 0 : index
    %7 = vector.load %arg5[%c0_6, %c0_7, %c0_8] : memref<1x10x32xbf16, #tpu.memory_space<vmem>>, vector<1x10x32xbf16>
    %8 = vector.shape_cast %7 : vector<1x10x32xbf16> to vector<10x32xbf16>
    %c0_9 = arith.constant 0 : index
    %c0_10 = arith.constant 0 : index
    %9 = vector.load %arg7[%c0_9, %c0_10] : memref<10x4xf32, #tpu.memory_space<vmem>>, vector<10x4xf32>
    %c0_11 = arith.constant 0 : index
    %c0_12 = arith.constant 0 : index
    %10 = vector.load %arg8[%c0_11, %c0_12] : memref<10x4xf32, #tpu.memory_space<vmem>>, vector<10x4xf32>
    %c0_13 = arith.constant 0 : index
    %c0_14 = arith.constant 0 : index
    %11 = vector.load %arg9[%c0_13, %c0_14] : memref<10x32xf32, #tpu.memory_space<vmem>>, vector<10x32xf32>
    %12 = vector.extract_strided_slice %4 {offsets = [0, 0], sizes = [10, 8], strides = [1, 1]} : vector<10x32xbf16> to vector<10x8xbf16>
    %13 = vector.extract_strided_slice %6 {offsets = [0, 0], sizes = [10, 8], strides = [1, 1]} : vector<10x32xbf16> to vector<10x8xbf16>
    %cst = arith.constant dense<0.000000e+00> : vector<10x10xf32>
    %14 = tpu.matmul %12, %13, %cst {dimension_numbers = #tpu.dot_dimension_numbers<[1], [1], [0], [0], [0, 0, 1, 0], [], []>} : vector<10x8xbf16>, vector<10x8xbf16>, vector<10x10xf32> -> vector<10x10xf32>
    %15 = vector.extract_strided_slice %9 {offsets = [0, 0], sizes = [10, 1], strides = [1, 1]} : vector<10x4xf32> to vector<10x1xf32>
    %cst_15 = arith.constant dense<0xFF800000> : vector<10xf32>
    %16 = vector.multi_reduction <maximumf>, %14, %cst_15 [1] : vector<10x10xf32> to vector<10xf32>
    %17 = vector.shape_cast %16 : vector<10xf32> to vector<10x1xf32>
    %18 = arith.maximumf %15, %17 : vector<10x1xf32>
    %19 = arith.subf %15, %18 : vector<10x1xf32>
    %20 = math.exp %19 : vector<10x1xf32>
    %21 = vector.broadcast %18 : vector<10x1xf32> to vector<10x10xf32>
    %22 = arith.subf %14, %21 : vector<10x10xf32>
    %23 = math.exp %22 : vector<10x10xf32>
    %24 = vector.extract_strided_slice %10 {offsets = [0, 0], sizes = [10, 1], strides = [1, 1]} : vector<10x4xf32> to vector<10x1xf32>
    %25 = arith.mulf %20, %24 : vector<10x1xf32>
    %cst_16 = arith.constant dense<0.000000e+00> : vector<10xf32>
    %26 = vector.multi_reduction <add>, %23, %cst_16 [1] : vector<10x10xf32> to vector<10xf32>
    %27 = vector.shape_cast %26 : vector<10xf32> to vector<10x1xf32>
    %28 = arith.addf %25, %27 : vector<10x1xf32>
    %29 = vector.shape_cast %20 : vector<10x1xf32> to vector<10x1xf32>
    %30 = vector.broadcast %29 : vector<10x1xf32> to vector<10x8xf32>
    %31 = arith.truncf %23 : vector<10x10xf32> to vector<10x10xbf16>
    %32 = vector.extract_strided_slice %8 {offsets = [0, 0], sizes = [10, 8], strides = [1, 1]} : vector<10x32xbf16> to vector<10x8xbf16>
    %cst_17 = arith.constant dense<0.000000e+00> : vector<10x8xf32>
    %33 = tpu.matmul %31, %32, %cst_17 {dimension_numbers = #tpu.dot_dimension_numbers<[1], [0], [0], [1], [0, 0, 1, 1], [], []>} : vector<10x10xbf16>, vector<10x8xbf16>, vector<10x8xf32> -> vector<10x8xf32>
    %34 = vector.extract_strided_slice %4 {offsets = [0, 8], sizes = [10, 8], strides = [1, 1]} : vector<10x32xbf16> to vector<10x8xbf16>
    %35 = vector.extract_strided_slice %6 {offsets = [0, 8], sizes = [10, 8], strides = [1, 1]} : vector<10x32xbf16> to vector<10x8xbf16>
    %cst_18 = arith.constant dense<0.000000e+00> : vector<10x10xf32>
    %36 = tpu.matmul %34, %35, %cst_18 {dimension_numbers = #tpu.dot_dimension_numbers<[1], [1], [0], [0], [0, 0, 1, 0], [], []>} : vector<10x8xbf16>, vector<10x8xbf16>, vector<10x10xf32> -> vector<10x10xf32>
    %37 = vector.extract_strided_slice %9 {offsets = [0, 1], sizes = [10, 1], strides = [1, 1]} : vector<10x4xf32> to vector<10x1xf32>
    %cst_19 = arith.constant dense<0xFF800000> : vector<10xf32>
    %38 = vector.multi_reduction <maximumf>, %36, %cst_19 [1] : vector<10x10xf32> to vector<10xf32>
    %39 = vector.shape_cast %38 : vector<10xf32> to vector<10x1xf32>
    %40 = arith.maximumf %37, %39 : vector<10x1xf32>
    %41 = arith.subf %37, %40 : vector<10x1xf32>
    %42 = math.exp %41 : vector<10x1xf32>
    %43 = vector.broadcast %40 : vector<10x1xf32> to vector<10x10xf32>
    %44 = arith.subf %36, %43 : vector<10x10xf32>
    %45 = math.exp %44 : vector<10x10xf32>
    %46 = vector.extract_strided_slice %10 {offsets = [0, 1], sizes = [10, 1], strides = [1, 1]} : vector<10x4xf32> to vector<10x1xf32>
    %47 = arith.mulf %42, %46 : vector<10x1xf32>
    %cst_20 = arith.constant dense<0.000000e+00> : vector<10xf32>
    %48 = vector.multi_reduction <add>, %45, %cst_20 [1] : vector<10x10xf32> to vector<10xf32>
    %49 = vector.shape_cast %48 : vector<10xf32> to vector<10x1xf32>
    %50 = arith.addf %47, %49 : vector<10x1xf32>
    %51 = vector.shape_cast %42 : vector<10x1xf32> to vector<10x1xf32>
    %52 = vector.broadcast %51 : vector<10x1xf32> to vector<10x8xf32>
    %53 = arith.truncf %45 : vector<10x10xf32> to vector<10x10xbf16>
    %54 = vector.extract_strided_slice %8 {offsets = [0, 8], sizes = [10, 8], strides = [1, 1]} : vector<10x32xbf16> to vector<10x8xbf16>
    %cst_21 = arith.constant dense<0.000000e+00> : vector<10x8xf32>
    %55 = tpu.matmul %53, %54, %cst_21 {dimension_numbers = #tpu.dot_dimension_numbers<[1], [0], [0], [1], [0, 0, 1, 1], [], []>} : vector<10x10xbf16>, vector<10x8xbf16>, vector<10x8xf32> -> vector<10x8xf32>
    %56 = vector.extract_strided_slice %4 {offsets = [0, 16], sizes = [10, 8], strides = [1, 1]} : vector<10x32xbf16> to vector<10x8xbf16>
    %57 = vector.extract_strided_slice %6 {offsets = [0, 16], sizes = [10, 8], strides = [1, 1]} : vector<10x32xbf16> to vector<10x8xbf16>
    %cst_22 = arith.constant dense<0.000000e+00> : vector<10x10xf32>
    %58 = tpu.matmul %56, %57, %cst_22 {dimension_numbers = #tpu.dot_dimension_numbers<[1], [1], [0], [0], [0, 0, 1, 0], [], []>} : vector<10x8xbf16>, vector<10x8xbf16>, vector<10x10xf32> -> vector<10x10xf32>
    %59 = vector.extract_strided_slice %9 {offsets = [0, 2], sizes = [10, 1], strides = [1, 1]} : vector<10x4xf32> to vector<10x1xf32>
    %cst_23 = arith.constant dense<0xFF800000> : vector<10xf32>
    %60 = vector.multi_reduction <maximumf>, %58, %cst_23 [1] : vector<10x10xf32> to vector<10xf32>
    %61 = vector.shape_cast %60 : vector<10xf32> to vector<10x1xf32>
    %62 = arith.maximumf %59, %61 : vector<10x1xf32>
    %63 = arith.subf %59, %62 : vector<10x1xf32>
    %64 = math.exp %63 : vector<10x1xf32>
    %65 = vector.broadcast %62 : vector<10x1xf32> to vector<10x10xf32>
    %66 = arith.subf %58, %65 : vector<10x10xf32>
    %67 = math.exp %66 : vector<10x10xf32>
    %68 = vector.extract_strided_slice %10 {offsets = [0, 2], sizes = [10, 1], strides = [1, 1]} : vector<10x4xf32> to vector<10x1xf32>
    %69 = arith.mulf %64, %68 : vector<10x1xf32>
    %cst_24 = arith.constant dense<0.000000e+00> : vector<10xf32>
    %70 = vector.multi_reduction <add>, %67, %cst_24 [1] : vector<10x10xf32> to vector<10xf32>
    %71 = vector.shape_cast %70 : vector<10xf32> to vector<10x1xf32>
    %72 = arith.addf %69, %71 : vector<10x1xf32>
    %73 = vector.shape_cast %64 : vector<10x1xf32> to vector<10x1xf32>
    %74 = vector.broadcast %73 : vector<10x1xf32> to vector<10x8xf32>
    %75 = arith.truncf %67 : vector<10x10xf32> to vector<10x10xbf16>
    %76 = vector.extract_strided_slice %8 {offsets = [0, 16], sizes = [10, 8], strides = [1, 1]} : vector<10x32xbf16> to vector<10x8xbf16>
    %cst_25 = arith.constant dense<0.000000e+00> : vector<10x8xf32>
    %77 = tpu.matmul %75, %76, %cst_25 {dimension_numbers = #tpu.dot_dimension_numbers<[1], [0], [0], [1], [0, 0, 1, 1], [], []>} : vector<10x10xbf16>, vector<10x8xbf16>, vector<10x8xf32> -> vector<10x8xf32>
    %78 = vector.extract_strided_slice %4 {offsets = [0, 24], sizes = [10, 8], strides = [1, 1]} : vector<10x32xbf16> to vector<10x8xbf16>
    %79 = vector.extract_strided_slice %6 {offsets = [0, 24], sizes = [10, 8], strides = [1, 1]} : vector<10x32xbf16> to vector<10x8xbf16>
    %cst_26 = arith.constant dense<0.000000e+00> : vector<10x10xf32>
    %80 = tpu.matmul %78, %79, %cst_26 {dimension_numbers = #tpu.dot_dimension_numbers<[1], [1], [0], [0], [0, 0, 1, 0], [], []>} : vector<10x8xbf16>, vector<10x8xbf16>, vector<10x10xf32> -> vector<10x10xf32>
    %81 = vector.extract_strided_slice %9 {offsets = [0, 3], sizes = [10, 1], strides = [1, 1]} : vector<10x4xf32> to vector<10x1xf32>
    %cst_27 = arith.constant dense<0xFF800000> : vector<10xf32>
    %82 = vector.multi_reduction <maximumf>, %80, %cst_27 [1] : vector<10x10xf32> to vector<10xf32>
    %83 = vector.shape_cast %82 : vector<10xf32> to vector<10x1xf32>
    %84 = arith.maximumf %81, %83 : vector<10x1xf32>
    %85 = arith.subf %81, %84 : vector<10x1xf32>
    %86 = math.exp %85 : vector<10x1xf32>
    %87 = vector.broadcast %84 : vector<10x1xf32> to vector<10x10xf32>
    %88 = arith.subf %80, %87 : vector<10x10xf32>
    %89 = math.exp %88 : vector<10x10xf32>
    %90 = vector.extract_strided_slice %10 {offsets = [0, 3], sizes = [10, 1], strides = [1, 1]} : vector<10x4xf32> to vector<10x1xf32>
    %91 = arith.mulf %86, %90 : vector<10x1xf32>
    %cst_28 = arith.constant dense<0.000000e+00> : vector<10xf32>
    %92 = vector.multi_reduction <add>, %89, %cst_28 [1] : vector<10x10xf32> to vector<10xf32>
    %93 = vector.shape_cast %92 : vector<10xf32> to vector<10x1xf32>
    %94 = arith.addf %91, %93 : vector<10x1xf32>
    %95 = vector.shape_cast %86 : vector<10x1xf32> to vector<10x1xf32>
    %96 = vector.broadcast %95 : vector<10x1xf32> to vector<10x8xf32>
    %97 = arith.truncf %89 : vector<10x10xf32> to vector<10x10xbf16>
    %98 = vector.extract_strided_slice %8 {offsets = [0, 24], sizes = [10, 8], strides = [1, 1]} : vector<10x32xbf16> to vector<10x8xbf16>
    %cst_29 = arith.constant dense<0.000000e+00> : vector<10x8xf32>
    %99 = tpu.matmul %97, %98, %cst_29 {dimension_numbers = #tpu.dot_dimension_numbers<[1], [0], [0], [1], [0, 0, 1, 1], [], []>} : vector<10x10xbf16>, vector<10x8xbf16>, vector<10x8xf32> -> vector<10x8xf32>
    %100 = tpu.concatenate %18, %40, %62, %84 in 1 : vector<10x1xf32>, vector<10x1xf32>, vector<10x1xf32>, vector<10x1xf32> -> vector<10x4xf32>
    %c0_30 = arith.constant 0 : index
    %c0_31 = arith.constant 0 : index
    %101 = vector.load %arg7[%c0_30, %c0_31] : memref<10x4xf32, #tpu.memory_space<vmem>>, vector<10x4xf32>
    tpu.vector_store %arg7[%c0_30, %c0_31], %100 {strides = array<i32>} : memref<10x4xf32, #tpu.memory_space<vmem>>, vector<10x4xf32>,
    %102 = tpu.concatenate %28, %50, %72, %94 in 1 : vector<10x1xf32>, vector<10x1xf32>, vector<10x1xf32>, vector<10x1xf32> -> vector<10x4xf32>
    %c0_32 = arith.constant 0 : index
    %c0_33 = arith.constant 0 : index
    %103 = vector.load %arg8[%c0_32, %c0_33] : memref<10x4xf32, #tpu.memory_space<vmem>>, vector<10x4xf32>
    tpu.vector_store %arg8[%c0_32, %c0_33], %102 {strides = array<i32>} : memref<10x4xf32, #tpu.memory_space<vmem>>, vector<10x4xf32>,
    %104 = tpu.concatenate %30, %52, %74, %96 in 1 : vector<10x8xf32>, vector<10x8xf32>, vector<10x8xf32>, vector<10x8xf32> -> vector<10x32xf32>
    %105 = arith.mulf %104, %11 : vector<10x32xf32>
    %106 = tpu.concatenate %33, %55, %77, %99 in 1 : vector<10x8xf32>, vector<10x8xf32>, vector<10x8xf32>, vector<10x8xf32> -> vector<10x32xf32>
    %107 = arith.addf %105, %106 : vector<10x32xf32>
    %c0_34 = arith.constant 0 : index
    %c0_35 = arith.constant 0 : index
    %108 = vector.load %arg9[%c0_34, %c0_35] : memref<10x32xf32, #tpu.memory_space<vmem>>, vector<10x32xf32>
    tpu.vector_store %arg9[%c0_34, %c0_35], %107 {strides = array<i32>} : memref<10x32xf32, #tpu.memory_space<vmem>>, vector<10x32xf32>,
    %c0_i32_36 = arith.constant 0 : i32
    %109 = arith.cmpi eq, %arg2, %c0_i32_36 : i32
    %110 = arith.extui %109 : i1 to i32
    %c0_i32_37 = arith.constant 0 : i32
    %111 = arith.cmpi ne, %110, %c0_i32_37 : i32
    scf.if %111 {
      %112 = tpu.reciprocal %102 {approx = true} : vector<10x4xf32> -> vector<10x4xf32>
      %113 = vector.extract_strided_slice %112 {offsets = [0, 0], sizes = [10, 1], strides = [1, 1]} : vector<10x4xf32> to vector<10x1xf32>
      %114 = vector.shape_cast %113 : vector<10x1xf32> to vector<10x1xf32>
      %115 = vector.broadcast %114 : vector<10x1xf32> to vector<10x8xf32>
      %116 = vector.extract_strided_slice %112 {offsets = [0, 1], sizes = [10, 1], strides = [1, 1]} : vector<10x4xf32> to vector<10x1xf32>
      %117 = vector.shape_cast %116 : vector<10x1xf32> to vector<10x1xf32>
      %118 = vector.broadcast %117 : vector<10x1xf32> to vector<10x8xf32>
      %119 = vector.extract_strided_slice %112 {offsets = [0, 2], sizes = [10, 1], strides = [1, 1]} : vector<10x4xf32> to vector<10x1xf32>
      %120 = vector.shape_cast %119 : vector<10x1xf32> to vector<10x1xf32>
      %121 = vector.broadcast %120 : vector<10x1xf32> to vector<10x8xf32>
      %122 = vector.extract_strided_slice %112 {offsets = [0, 3], sizes = [10, 1], strides = [1, 1]} : vector<10x4xf32> to vector<10x1xf32>
      %123 = vector.shape_cast %122 : vector<10x1xf32> to vector<10x1xf32>
      %124 = vector.broadcast %123 : vector<10x1xf32> to vector<10x8xf32>
      %125 = tpu.concatenate %115, %118, %121, %124 in 1 : vector<10x8xf32>, vector<10x8xf32>, vector<10x8xf32>, vector<10x8xf32> -> vector<10x32xf32>
      %126 = arith.mulf %107, %125 : vector<10x32xf32>
      %127 = arith.truncf %126 : vector<10x32xf32> to vector<10x32xbf16>
      %c0_38 = arith.constant 0 : index
      %c0_39 = arith.constant 0 : index
      %c0_40 = arith.constant 0 : index
      %128 = vector.load %arg6[%c0_38, %c0_39, %c0_40] : memref<1x10x32xbf16, #tpu.memory_space<vmem>>, vector<1x10x32xbf16>
      %129 = vector.shape_cast %128 : vector<1x10x32xbf16> to vector<10x32xbf16>
      %130 = vector.shape_cast %127 : vector<10x32xbf16> to vector<1x10x32xbf16>
      tpu.vector_store %arg6[%c0_38, %c0_39, %c0_40], %130 {strides = array<i32>} : memref<1x10x32xbf16, #tpu.memory_space<vmem>>, vector<1x10x32xbf16>,
    } else {
    }
    return
  }
  func.func @transform_0(%arg0: i32, %arg1: i32, %arg2: i32) -> (i32, i32, i32) {
    %c0_i32 = arith.constant 0 : i32
    %c0_i32_0 = arith.constant 0 : i32
    return %arg0, %arg1, %c0_i32 : i32, i32, i32
  }
  func.func @transform_1(%arg0: i32, %arg1: i32, %arg2: i32) -> (i32, i32, i32) {
    %c0_i32 = arith.constant 0 : i32
    %c0_i32_0 = arith.constant 0 : i32
    return %arg0, %arg2, %c0_i32 : i32, i32, i32
  }
  func.func @transform_2(%arg0: i32, %arg1: i32, %arg2: i32) -> (i32, i32, i32) {
    %c0_i32 = arith.constant 0 : i32
    %c0_i32_0 = arith.constant 0 : i32
    return %arg0, %arg2, %c0_i32 : i32, i32, i32
  }
  func.func @transform_3(%arg0: i32, %arg1: i32, %arg2: i32) -> (i32, i32, i32) {
    %c0_i32 = arith.constant 0 : i32
    %c0_i32_0 = arith.constant 0 : i32
    return %arg0, %arg1, %c0_i32 : i32, i32, i32
  }
}

module attributes {stable_mosaic.version = 11 : i64} {
  func.func @_ln_matmul_kernel(%arg0: i32, %arg1: memref<4x32xbf16, #tpu.memory_space<vmem>>, %arg2: memref<1x32xf32, #tpu.memory_space<vmem>>, %arg3: memref<1x32xf32, #tpu.memory_space<vmem>>, %arg4: memref<32x16xbf16, #tpu.memory_space<vmem>>, %arg5: memref<4x16xf32, #tpu.memory_space<vmem>>) attributes {dimension_semantics = [#tpu.dimension_semantics<parallel>], iteration_bounds = array<i64: 1>, scalar_prefetch = 0 : i64, scratch_operands = 0 : i64, tpu.core_type = #tpu.core_type<tc>, window_params = [{transform_indices = @transform_0, window_bounds = array<i64: 4, 32>}, {pipeline_mode = #tpu.pipeline_mode<synchronous>, transform_indices = @transform_1, window_bounds = array<i64: 1, 32>}, {pipeline_mode = #tpu.pipeline_mode<synchronous>, transform_indices = @transform_2, window_bounds = array<i64: 1, 32>}, {pipeline_mode = #tpu.pipeline_mode<synchronous>, transform_indices = @transform_3, window_bounds = array<i64: 32, 16>}, {transform_indices = @transform_4, window_bounds = array<i64: 4, 16>}]} {
    %c0 = arith.constant 0 : index
    %c0_0 = arith.constant 0 : index
    %0 = vector.load %arg1[%c0, %c0_0] : memref<4x32xbf16, #tpu.memory_space<vmem>>, vector<4x32xbf16>
    %1 = arith.extf %0 : vector<4x32xbf16> to vector<4x32xf32>
    %c0_1 = arith.constant 0 : index
    %c0_2 = arith.constant 0 : index
    %2 = vector.load %arg2[%c0_1, %c0_2] : memref<1x32xf32, #tpu.memory_space<vmem>>, vector<1x32xf32>
    %c0_3 = arith.constant 0 : index
    %c0_4 = arith.constant 0 : index
    %3 = vector.load %arg3[%c0_3, %c0_4] : memref<1x32xf32, #tpu.memory_space<vmem>>, vector<1x32xf32>
    %cst = arith.constant dense<0.000000e+00> : vector<4xf32>
    %4 = vector.multi_reduction <add>, %1, %cst [1] : vector<4x32xf32> to vector<4xf32>
    %5 = vector.shape_cast %4 : vector<4xf32> to vector<4x1xf32>
    %cst_5 = arith.constant 3.200000e+01 : f32
    %6 = vector.broadcast %cst_5 : f32 to vector<4x1xf32>
    %7 = arith.divf %5, %6 : vector<4x1xf32>
    %8 = vector.broadcast %7 : vector<4x1xf32> to vector<4x32xf32>
    %9 = arith.subf %1, %8 : vector<4x32xf32>
    %10 = arith.mulf %9, %9 : vector<4x32xf32>
    %cst_6 = arith.constant dense<0.000000e+00> : vector<4xf32>
    %11 = vector.multi_reduction <add>, %10, %cst_6 [1] : vector<4x32xf32> to vector<4xf32>
    %12 = vector.shape_cast %11 : vector<4xf32> to vector<4x1xf32>
    %cst_7 = arith.constant 3.200000e+01 : f32
    %13 = vector.broadcast %cst_7 : f32 to vector<4x1xf32>
    %14 = arith.divf %12, %13 : vector<4x1xf32>
    %cst_8 = arith.constant 9.99999974E-6 : f32
    %15 = vector.broadcast %cst_8 : f32 to vector<4x1xf32>
    %16 = arith.addf %14, %15 : vector<4x1xf32>
    %17 = math.rsqrt %16 : vector<4x1xf32>
    %18 = vector.broadcast %17 : vector<4x1xf32> to vector<4x32xf32>
    %19 = arith.mulf %9, %18 : vector<4x32xf32>
    %20 = vector.broadcast %2 : vector<1x32xf32> to vector<4x32xf32>
    %21 = arith.mulf %19, %20 : vector<4x32xf32>
    %22 = vector.broadcast %3 : vector<1x32xf32> to vector<4x32xf32>
    %23 = arith.addf %21, %22 : vector<4x32xf32>
    %24 = arith.truncf %23 : vector<4x32xf32> to vector<4x32xbf16>
    %c0_9 = arith.constant 0 : index
    %c0_10 = arith.constant 0 : index
    %25 = vector.load %arg4[%c0_9, %c0_10] : memref<32x16xbf16, #tpu.memory_space<vmem>>, vector<32x16xbf16>
    %cst_11 = arith.constant dense<0.000000e+00> : vector<4x16xf32>
    %26 = tpu.matmul %24, %25, %cst_11 {dimension_numbers = #tpu.dot_dimension_numbers<[1], [0], [0], [1], [0, 0, 1, 1], [], []>} : vector<4x32xbf16>, vector<32x16xbf16>, vector<4x16xf32> -> vector<4x16xf32>
    %c0_12 = arith.constant 0 : index
    %c0_13 = arith.constant 0 : index
    %27 = vector.load %arg5[%c0_12, %c0_13] : memref<4x16xf32, #tpu.memory_space<vmem>>, vector<4x16xf32>
    tpu.vector_store %arg5[%c0_12, %c0_13], %26 {strides = array<i32>} : memref<4x16xf32, #tpu.memory_space<vmem>>, vector<4x16xf32>,
    return
  }
  func.func @transform_0(%arg0: i32) -> (i32, i32) {
    %c0_i32 = arith.constant 0 : i32
    %c0_i32_0 = arith.constant 0 : i32
    return %arg0, %c0_i32 : i32, i32
  }
  func.func @transform_1(%arg0: i32) -> (i32, i32) {
    %c0_i32 = arith.constant 0 : i32
    %c0_i32_0 = arith.constant 0 : i32
    %c0_i32_1 = arith.constant 0 : i32
    return %c0_i32, %c0_i32_0 : i32, i32
  }
  func.func @transform_2(%arg0: i32) -> (i32, i32) {
    %c0_i32 = arith.constant 0 : i32
    %c0_i32_0 = arith.constant 0 : i32
    %c0_i32_1 = arith.constant 0 : i32
    return %c0_i32, %c0_i32_0 : i32, i32
  }
  func.func @transform_3(%arg0: i32) -> (i32, i32) {
    %c0_i32 = arith.constant 0 : i32
    %c0_i32_0 = arith.constant 0 : i32
    %c0_i32_1 = arith.constant 0 : i32
    return %c0_i32, %c0_i32_0 : i32, i32
  }
  func.func @transform_4(%arg0: i32) -> (i32, i32) {
    %c0_i32 = arith.constant 0 : i32
    %c0_i32_0 = arith.constant 0 : i32
    return %arg0, %c0_i32 : i32, i32
  }
}

</mosaic_0001>

<bundles_post_ra>
// kernel: vvt_forward.20
= control target key start
LH: loop header
LB: loop body
LE: loop exit
PB: predicated region body
PF: predicated region fallthrough
CT: control target
= control target key end

     0   :  { %vm22_vm0 = vcmask 261120   ;;  %vm29_vm1 = vcmask 257024   ;;  %vm97_vm2 = vcmask 254976   ;;  %s170_s0 = inlined_call_operand.vmem [shape: bf16[20,32], index: 0, kind: input, shape index: {}]   ;;  %s171_s1 = inlined_call_operand.vmem [shape: f32[1,32], index: 1, kind: input, shape index: {}]   ;;  %s172_s2 = inlined_call_operand.vmem [shape: f32[1,32], index: 2, kind: input, shape index: {}]   ;;  %s173_s3 = inlined_call_operand.vmem [shape: bf16[20,32], index: 3, kind: output, shape index: {}]  }
   0x1   :  { %v112_v0 = vld [vmem:[%s170_s0] sm:$0xff]   ;;  %v16_v1 = vld [vmem:[%s170_s0 + $0x8] sm:$0x3] }
   0x2   :  { %v113_v2 = vunpack.c.l.bf16 %v112_v0  ;;  %v19_v3 = vunpack.c.l.bf16 %v16_v1  ;;  %v114_v4 = vunpack.c.h.bf16 %v112_v0  ;;  %v103_v33 = vld [vmem:[%s171_s1] ss:$0 sm:$0xff] }
   0x3   :  { %v104_v35 = vld [vmem:[%s172_s2] ss:$0 sm:$0xff] }
   0x4   :  { %v23_v5 = vsel %vm22_vm0, %v113_v2, 0.0  ;;  %v30_v6 = vsel %vm29_vm1, %v19_v3, 0.0  ;;  %v26_v7 = vsel %vm22_vm0, %v114_v4, 0.0 }
   0x5   :  { %24 = vadd.xlane.f32.xlu0 %v23_v5  ;;  %31 = vadd.xlane.f32.xlu1 %v30_v6 }
   0x9   :  { %27 = vadd.xlane.f32.xlu0 %v26_v7 }
  0x8e   :  { %v25_v8 = vpop.xlane.xlu0 %24  ;;  %v32_v9 = vpop.xlane.xlu1 %31 }
  0x8f   :  { %v34_v10 = vmul.f32 0.03125, %v25_v8  ;;  %v36_v11 = vmul.f32 0.03125, %v32_v9 }
  0x91   :  { %v37_v12 = vsub.f32 %v113_v2, %v34_v10  ;;  %v39_v13 = vsub.f32 %v19_v3, %v36_v11 }
  0x92   :  { %v28_v14 = vpop.xlane.xlu0 %27 }
  0x93   :  { %v35_v15 = vmul.f32 0.03125, %v28_v14  ;;  %v40_v16 = vmul.f32 %v37_v12, %v37_v12  ;;  %v42_v17 = vmul.f32 %v39_v13, %v39_v13 }
  0x95   :  { %v38_v18 = vsub.f32 %v114_v4, %v35_v15  ;;  %v43_v19 = vsel %vm22_vm0, %v40_v16, 0.0  ;;  %v49_v20 = vsel %vm29_vm1, %v42_v17, 0.0 }
  0x96   :  { %44 = vadd.xlane.f32.xlu1 %v43_v19 }
  0x97   :  { %v41_v21 = vmul.f32 %v38_v18, %v38_v18 }
  0x99   :  { %v46_v22 = vsel %vm22_vm0, %v41_v21, 0.0 }
  0x9a   :  { %50 = vadd.xlane.f32.xlu1 %v49_v20  ;;  %47 = vadd.xlane.f32.xlu0 %v46_v22 }
 0x11f   :  { %v45_v23 = vpop.xlane.xlu1 %44 }
 0x120   :  { %v52_v24 = vmul.f32 0.03125, %v45_v23 }
 0x122   :  { %v55_v25 = vadd.f32 1e-05, %v52_v24 }
 0x123   :  { %v51_v26 = vpop.xlane.xlu1 %50  ;;  %v48_v27 = vpop.xlane.xlu0 %47 }
 0x124   :  { %115 = vrsqrt.f32 %v55_v25  ;;  %v54_v28 = vmul.f32 0.03125, %v51_v26  ;;  %v53_v29 = vmul.f32 0.03125, %v48_v27 }
 0x126   :  { %v57_v30 = vadd.f32 1e-05, %v54_v28  ;;  %v56_v31 = vadd.f32 1e-05, %v53_v29 }
 0x128   :  { %117 = vrsqrt.f32 %v57_v30 }
 0x129   :  { %119 = vrsqrt.f32 %v56_v31 }
 0x131   :  { %v116_v32 = vpop.eup %115 }
 0x132   :  { %v61_v34 = vmul.f32 %v116_v32, %v37_v12 }
 0x134   :  { %v70_v36 = vmul.f32 %v103_v33, %v61_v34 }
 0x135   :  { %v118_v37 = vpop.eup %117 }
 0x136   :  { %v120_v38 = vpop.eup %119  ;;  %v79_v39 = vadd.f32 %v104_v35, %v70_v36  ;;  %v63_v40 = vmul.f32 %v118_v37, %v39_v13 }
 0x137   :  { %v62_v41 = vmul.f32 %v120_v38, %v38_v18 }
 0x138   :  { %v108_v42 = vpack.c.bf16 %v79_v39, %v79_v39  ;;  %v72_v43 = vmul.f32 %v103_v33, %v63_v40 }
 0x139   :  { %v71_v44 = vmul.f32 %v103_v33, %v62_v41 }
 0x13a   :  { %95 = vst.msk [vmem:[%s173_s3] sm:$0xf] %vm29_vm1, %v108_v42  ;;  %v81_v45 = vadd.f32 %v104_v35, %v72_v43 }
 0x13b   :  { %v80_v46 = vadd.f32 %v104_v35, %v71_v44 }
 0x13c   :  { %v110_v47 = vpack.c.bf16 %v81_v45, %v81_v45 }
 0x13d   :  { %v109_v48 = vpack.c.bf16 %v80_v46, %v80_v46 }
 0x13e   :  { %98 = vst.msk [vmem:[%s173_s3 + $0x8] sm:$0x3] %vm97_vm2, %v110_v47 }
 0x13f   :  { %96 = vst.msk [vmem:[%s173_s3 + $0x4] sm:$0xf] %vm29_vm1, %v109_v48 }

// kernel: vvt_forward.21
= control target key start
LH: loop header
LB: loop body
LE: loop exit
PB: predicated region body
PF: predicated region fallthrough
CT: control target
= control target key end

     0   :  { %vm44_vm0 = vcmask 261120   ;;  %vm51_vm1 = vcmask 257024   ;;  %vm198_vm2 = vcmask 254976   ;;  %s620_s0 = inlined_call_operand.vmem [shape: bf16[20,32], index: 0, kind: input, shape index: {}]   ;;  %s621_s3 = inlined_call_operand.vmem [shape: bf16[32,32], index: 3, kind: input, shape index: {}]   ;;  %s622_s5 = inlined_call_operand.vmem [shape: bf16[32,32], index: 5, kind: input, shape index: {}]   ;;  %s623_s7 = inlined_call_operand.vmem [shape: bf16[32,32], index: 7, kind: input, shape index: {}]   ;;  %s624_s1 = inlined_call_operand.vmem [shape: f32[1,32], index: 1, kind: input, shape index: {}]   ;;  %s625_s2 = inlined_call_operand.vmem [shape: f32[1,32], index: 2, kind: input, shape index: {}]   ;;  %s626_s4 = inlined_call_operand.vmem [shape: f32[1,32], index: 4, kind: input, shape index: {}]   ;;  %s627_s6 = inlined_call_operand.vmem [shape: f32[1,32], index: 6, kind: input, shape index: {}]   ;;  %s628_s9 = inlined_call_operand.vmem [shape: bf16[20,32], index: 9, kind: output, shape index: {0}]   ;;  %s629_s10 = inlined_call_operand.vmem [shape: bf16[20,32], index: 10, kind: output, shape index: {1}]   ;;  %s630_s8 = inlined_call_operand.vmem [shape: f32[1,32], index: 8, kind: input, shape index: {}]   ;;  %s631_s11 = inlined_call_operand.vmem [shape: bf16[20,32], index: 11, kind: output, shape index: {2}]  }
   0x1   :  { %v422_v0 = vld [vmem:[%s620_s0] sm:$0xff]   ;;  %v38_v1 = vld [vmem:[%s620_s0 + $0x8] sm:$0x3] }
   0x2   :  { %v423_v2 = vunpack.c.l.bf16 %v422_v0  ;;  %v41_v3 = vunpack.c.l.bf16 %v38_v1  ;;  %v424_v4 = vunpack.c.h.bf16 %v422_v0  ;;  %v461_v23 = vld [vmem:[%s621_s3 + $0x8] sm:$0xff]   ;;  %v463_v25 = vld [vmem:[%s621_s3] sm:$0xff]  }
   0x3   :  { %v462_v24 = vld [vmem:[%s622_s5 + $0x8] sm:$0xff]   ;;  %437 = vmatprep.subr.bf16.mxu0 %v461_v23  ;;  %v464_v26 = vld [vmem:[%s622_s5] sm:$0xff]  }
   0x4   :  { %v45_v5 = vsel %vm44_vm0, %v423_v2, 0.0  ;;  %v52_v6 = vsel %vm51_vm1, %v41_v3, 0.0  ;;  %v48_v7 = vsel %vm44_vm0, %v424_v4, 0.0  ;;  %438 = vmatpush3.bf16.msra.mxu0 %v461_v23  ;;  %445 = vmatprep.subr.bf16.mxu1 %v462_v24  ;;  %v465_v27 = vld [vmem:[%s623_s7 + $0x8] sm:$0xff]   ;;  %v386_v39 = vld [vmem:[%s624_s1] ss:$0 sm:$0xff] }
   0x5   :  { %46 = vadd.xlane.f32.xlu0 %v45_v5  ;;  %53 = vadd.xlane.f32.xlu1 %v52_v6  ;;  %v387_v45 = vld [vmem:[%s625_s2] ss:$0 sm:$0xff] }
   0x6   :  { %446 = vmatpush3.bf16.msra.mxu1 %v462_v24  ;;  %439 = vmatprep.subr.bf16.mxu0 %v463_v25  ;;  %v466_v53 = vld [vmem:[%s623_s7] sm:$0xff]  }
   0x7   :  { %447 = vmatprep.subr.bf16.mxu1 %v464_v26  ;;  %v388_v54 = vld [vmem:[%s626_s4] ss:$0 sm:$0xff] }
   0x8   :  { %440 = vmatpush3.bf16.msra.mxu0 %v463_v25  ;;  %v396_v55 = vld [vmem:[%s627_s6] ss:$0 sm:$0xff] }
   0x9   :  { %49 = vadd.xlane.f32.xlu0 %v48_v7  ;;  %453 = vmatprep.subr.bf16.mxu0 %v465_v27 }
   0xa   :  { %448 = vmatpush3.bf16.msra.mxu1 %v464_v26 }
  0x8e   :  { %v47_v8 = vpop.xlane.xlu0 %46  ;;  %v54_v9 = vpop.xlane.xlu1 %53 }
  0x8f   :  { %v56_v10 = vmul.f32 0.03125, %v47_v8  ;;  %v58_v11 = vmul.f32 0.03125, %v54_v9  ;;  %v404_v8 = vld [vmem:[%s630_s8] ss:$0 sm:$0xff] }
  0x91   :  { %v59_v12 = vsub.f32 %v423_v2, %v56_v10  ;;  %v61_v13 = vsub.f32 %v41_v3, %v58_v11 }
  0x92   :  { %v50_v14 = vpop.xlane.xlu0 %49 }
  0x93   :  { %v57_v15 = vmul.f32 0.03125, %v50_v14  ;;  %v62_v16 = vmul.f32 %v59_v12, %v59_v12  ;;  %v64_v17 = vmul.f32 %v61_v13, %v61_v13 }
  0x95   :  { %v60_v18 = vsub.f32 %v424_v4, %v57_v15  ;;  %v65_v19 = vsel %vm44_vm0, %v62_v16, 0.0  ;;  %v71_v20 = vsel %vm51_vm1, %v64_v17, 0.0 }
  0x96   :  { %66 = vadd.xlane.f32.xlu1 %v65_v19 }
  0x97   :  { %v63_v21 = vmul.f32 %v60_v18, %v60_v18 }
  0x99   :  { %v68_v22 = vsel %vm44_vm0, %v63_v21, 0.0 }
  0x9a   :  { %72 = vadd.xlane.f32.xlu1 %v71_v20  ;;  %69 = vadd.xlane.f32.xlu0 %v68_v22 }
 0x11f   :  { %v67_v28 = vpop.xlane.xlu1 %66 }
 0x120   :  { %v74_v29 = vmul.f32 0.03125, %v67_v28 }
 0x122   :  { %v77_v30 = vadd.f32 1e-05, %v74_v29 }
 0x123   :  { %v73_v31 = vpop.xlane.xlu1 %72  ;;  %v70_v32 = vpop.xlane.xlu0 %69 }
 0x124   :  { %467 = vrsqrt.f32 %v77_v30  ;;  %v76_v33 = vmul.f32 0.03125, %v73_v31  ;;  %v75_v34 = vmul.f32 0.03125, %v70_v32 }
 0x126   :  { %v79_v35 = vadd.f32 1e-05, %v76_v33  ;;  %v78_v36 = vadd.f32 1e-05, %v75_v34 }
 0x128   :  { %469 = vrsqrt.f32 %v79_v35 }
 0x129   :  { %471 = vrsqrt.f32 %v78_v36 }
 0x131   :  { %v468_v37 = vpop.eup %467 }
 0x132   :  { %v83_v38 = vmul.f32 %v468_v37, %v59_v12 }
 0x134   :  { %v92_v44 = vmul.f32 %v386_v39, %v83_v38 }
 0x135   :  { %v470_v40 = vpop.eup %469 }
 0x136   :  { %v472_v41 = vpop.eup %471  ;;  %v85_v42 = vmul.f32 %v470_v40, %v61_v13  ;;  %v101_v49 = vadd.f32 %v387_v45, %v92_v44 }
 0x137   :  { %v84_v43 = vmul.f32 %v472_v41, %v60_v18 }
 0x138   :  { %v94_v46 = vmul.f32 %v386_v39, %v85_v42 }
 0x139   :  { %v93_v47 = vmul.f32 %v386_v39, %v84_v43 }
 0x13a   :  { %v103_v48 = vadd.f32 %v387_v45, %v94_v46 }
 0x13b   :  { %v102_v50 = vadd.f32 %v387_v45, %v93_v47 }
 0x13c   :  { %v105_v51 = vpack.c.bf16 %v103_v48, %v103_v48 }
 0x13d   :  { %v104_v52 = vpack.c.bf16 %v102_v50, %v101_v49 }
 0x13f   :  { %441 = vmatprep.mubr.msk.bf16.mxu0 %vm44_vm0, %v104_v52  ;;  %449 = vmatprep.mubr.msk.bf16.mxu1 %vm44_vm0, %v104_v52 }
 0x140   :  { %442 = vmatmul.mubr.msk.bf16.vlgmr.msra.gmra.mxu0 %vm44_vm0, %v105_v51  ;;  %450 = vmatmul.mubr.msk.bf16.vlgmr.msra.gmra.mxu1 %vm44_vm0, %v105_v51 }
 0x141   :  { %454 = vmatpush3.bf16.msra.mxu0 %v465_v27  ;;  %457 = vmatprep.mubr.msk.bf16.mxu0 %vm44_vm0, %v104_v52 }
 0x142   :  { %455 = vmatprep.subr.bf16.mxu0 %v466_v53 }
 0x145   :  { %456 = vmatpush3.bf16.msra.mxu0 %v466_v53 }
 0x148   :  { %458 = vmatmul.mubr.msk.bf16.vlgmr.msra.gmra.mxu0 %vm44_vm0, %v105_v51 }
 0x200   :  { %v443_v56 = vpop.f32.mrf.mxu0  ;;  %v451_v57 = vpop.f32.mrf.mxu1 }
 0x201   :  { %v178_v58 = vadd.f32 %v443_v56, %v388_v54  ;;  %v266_v59 = vadd.f32 %v451_v57, %v396_v55 }
 0x202   :  { %v169_v60 = vpop.f32.mrf.mxu0  ;;  %v257_v61 = vpop.f32.mrf.mxu1 }
 0x203   :  { %v414_v62 = vpack.c.bf16 %v178_v58, %v178_v58  ;;  %v417_v63 = vpack.c.bf16 %v266_v59, %v266_v59  ;;  %v170_v0 = vadd.f32 %v388_v54, %v169_v60  ;;  %v258_v1 = vadd.f32 %v396_v55, %v257_v61 }
 0x204   :  { %v444_v2 = vpop.f32.mrf.mxu0  ;;  %v452_v3 = vpop.f32.mrf.mxu1 }
 0x205   :  { %199 = vst.msk [vmem:[%s628_s9 + $0x8] sm:$0x3] %vm198_vm2, %v414_v62  ;;  %286 = vst.msk [vmem:[%s629_s10 + $0x8] sm:$0x3] %vm198_vm2, %v417_v63  ;;  %v412_v4 = vpack.c.bf16 %v170_v0, %v170_v0  ;;  %v415_v5 = vpack.c.bf16 %v258_v1, %v258_v1 }
 0x206   :  { %v172_v6 = vpop.f32.mrf.mxu0  ;;  %v260_v7 = vpop.f32.mrf.mxu1 }
 0x207   :  { %196 = vst.msk [vmem:[%s628_s9] sm:$0xf] %vm51_vm1, %v412_v4  ;;  %284 = vst.msk [vmem:[%s629_s10] sm:$0xf] %vm51_vm1, %v415_v5  ;;  %v173_v9 = vadd.f32 %v388_v54, %v172_v6  ;;  %v261_v10 = vadd.f32 %v396_v55, %v260_v7 }
 0x208   :  { %v459_v11 = vpop.f32.mrf.mxu0 }
 0x209   :  { %v413_v12 = vpack.c.bf16 %v173_v9, %v173_v9  ;;  %v416_v13 = vpack.c.bf16 %v261_v10, %v261_v10  ;;  %v353_v14 = vadd.f32 %v459_v11, %v404_v8 }
 0x20a   :  { %v344_v15 = vpop.f32.mrf.mxu0 }
 0x20b   :  { %197 = vst.msk [vmem:[%s628_s9 + $0x4] sm:$0xf] %vm51_vm1, %v413_v12  ;;  %285 = vst.msk [vmem:[%s629_s10 + $0x4] sm:$0xf] %vm51_vm1, %v416_v13  ;;  %v420_v16 = vpack.c.bf16 %v353_v14, %v353_v14  ;;  %v345_v17 = vadd.f32 %v404_v8, %v344_v15 }
 0x20c   :  { %v460_v18 = vpop.f32.mrf.mxu0 }
 0x20d   :  { %373 = vst.msk [vmem:[%s631_s11 + $0x8] sm:$0x3] %vm198_vm2, %v420_v16  ;;  %v418_v19 = vpack.c.bf16 %v345_v17, %v345_v17 }
 0x20e   :  { %v347_v20 = vpop.f32.mrf.mxu0 }
 0x20f   :  { %371 = vst.msk [vmem:[%s631_s11] sm:$0xf] %vm51_vm1, %v418_v19  ;;  %v348_v21 = vadd.f32 %v404_v8, %v347_v20 }
 0x211   :  { %v419_v22 = vpack.c.bf16 %v348_v21, %v348_v21 }
 0x213   :  { %372 = vst.msk [vmem:[%s631_s11 + $0x4] sm:$0xf] %vm51_vm1, %v419_v22 }

// kernel: vvt_forward.19
= control target key start
LH: loop header
LB: loop body
LE: loop exit
PB: predicated region body
PF: predicated region fallthrough
CT: control target
= control target key end

     0   :  { %v204_v0 = vmov 0   ;;  %vm114_vm0 = vcmask 523264   ;;  %vm167_vm1 = vcmask 257024   ;;  %s274_s1 = inlined_call_operand.vmem [shape: bf16[192,32], index: 1, kind: input, shape index: {}]   ;;  %s275_s0 = inlined_call_operand.vmem [shape: f32[16,192], index: 0, kind: input, shape index: {}]   ;;  %s276_s2 = inlined_call_operand.vmem [shape: bf16[16,32], index: 2, kind: output, shape index: {}]  }
   0x1   :  { %118 = vmatprep.subr.bf16.mxu0 %v204_v0  ;;  %v192_v1 = vld [vmem:[%s274_s1 + $0x38] sm:$0xff]   ;;  %v193_v2 = vld [vmem:[%s274_s1 + $0x30] sm:$0xff]   ;;  %v194_v3 = vld [vmem:[%s274_s1 + $0x28] sm:$0xff]  }
   0x2   :  { %119 = vmatpush1.bf16.msra.mxu0 %v192_v1  ;;  %v195_v4 = vld [vmem:[%s274_s1 + $0x20] sm:$0xff]   ;;  %v13_v5 = vld [vmem:[%s275_s0 + $0x8] sm:$0xff]  ;;  %v15_v6 = vld [vmem:[%s275_s0 + $0x18] sm:$0xff] }
   0x3   :  { %120 = vmatprep.subr.bf16.mxu0 %v204_v0  ;;  %v17_v7 = vpack.c.bf16 %v15_v6, %v13_v5  ;;  %v196_v8 = vld [vmem:[%s274_s1 + $0x18] sm:$0xff]   ;;  %v197_v9 = vld [vmem:[%s274_s1 + $0x10] sm:$0xff]   ;;  %v198_v10 = vld [vmem:[%s274_s1 + $0x8] sm:$0xff]  }
   0x4   :  { %v199_v11 = vld [vmem:[%s274_s1] sm:$0xff]   ;;  %v200_v12 = vld [vmem:[%s274_s1 + $0x58] sm:$0xff]   ;;  %v201_v13 = vld [vmem:[%s274_s1 + $0x50] sm:$0xff]  }
   0x5   :  { %186 = vmatprep.mubr.msk.bf16.mxu0 %vm114_vm0, %v17_v7  ;;  %v202_v14 = vld [vmem:[%s274_s1 + $0x48] sm:$0xff]   ;;  %v203_v15 = vld [vmem:[%s274_s1 + $0x40] sm:$0xff]   ;;  %v14_v17 = vld [vmem:[%s275_s0 + $0x10] sm:$0xff] }
   0x6   :  { %121 = vmatpush1.bf16.msra.mxu0 %v193_v2  ;;  %v12_v16 = vld [vmem:[%s275_s0] sm:$0xff] }
   0x7   :  { %122 = vmatprep.subr.bf16.mxu0 %v204_v0  ;;  %v16_v18 = vpack.c.bf16 %v14_v17, %v12_v16 }
   0xa   :  { %123 = vmatpush1.bf16.msra.mxu0 %v194_v3 }
   0xb   :  { %124 = vmatprep.subr.bf16.mxu0 %v204_v0 }
   0xe   :  { %125 = vmatpush1.bf16.msra.mxu0 %v195_v4 }
   0xf   :  { %126 = vmatprep.subr.bf16.mxu0 %v204_v0 }
  0x12   :  { %127 = vmatpush1.bf16.msra.mxu0 %v196_v8 }
  0x13   :  { %128 = vmatprep.subr.bf16.mxu0 %v204_v0 }
  0x16   :  { %129 = vmatpush1.bf16.msra.mxu0 %v197_v9 }
  0x17   :  { %130 = vmatprep.subr.bf16.mxu0 %v204_v0 }
  0x1a   :  { %131 = vmatpush1.bf16.msra.mxu0 %v198_v10 }
  0x1b   :  { %132 = vmatprep.subr.bf16.mxu0 %v204_v0 }
  0x1e   :  { %133 = vmatpush1.bf16.msra.mxu0 %v199_v11 }
  0x1f   :  { %142 = vmatprep.subr.bf16.mxu0 %v204_v0 }
  0x22   :  { %143 = vmatpush2.bf16.msra.mxu0 %v200_v12 }
  0x23   :  { %144 = vmatprep.subr.bf16.mxu0 %v204_v0 }
  0x26   :  { %145 = vmatpush2.bf16.msra.mxu0 %v201_v13 }
  0x27   :  { %146 = vmatprep.subr.bf16.mxu0 %v204_v0 }
  0x2a   :  { %147 = vmatpush2.bf16.msra.mxu0 %v202_v14 }
  0x2b   :  { %148 = vmatprep.subr.bf16.mxu0 %v204_v0 }
  0x2e   :  { %149 = vmatpush2.bf16.msra.mxu0 %v203_v15 }
  0x31   :  { %151 = vmatmul.mubr.bf16.vlgmr.msra.gmra.mxu0 %v16_v18 }
  0xf1   :  { %v152_v19 = vpop.f32.mrf.mxu0 }
  0xf2   :  { %v189_v20 = vpack.c.bf16 %v152_v19, %v152_v19 }
  0xf3   :  { %v154_v21 = vpop.f32.mrf.mxu0 }
  0xf4   :  { %168 = vst.msk [vmem:[%s276_s2] sm:$0xf] %vm167_vm1, %v189_v20 }
  0xf5   :  { %v155_v22 = vpop.f32.mrf.mxu0 }
  0xf6   :  { %v190_v23 = vpack.c.bf16 %v155_v22, %v155_v22 }
  0xf7   :  { %v157_v24 = vpop.f32.mrf.mxu0 }
  0xf8   :  { %169 = vst.msk [vmem:[%s276_s2 + $0x4] sm:$0xf] %vm167_vm1, %v190_v23 }

// kernel: vvt_forward.22
= control target key start
LH: loop header
LB: loop body
LE: loop exit
PB: predicated region body
PF: predicated region fallthrough
CT: control target
= control target key end

     0   :  { %s1172_s12 = smov 0   ;;  %s1174_s13 = smov 0   ;;  %s1349_s0 = inlined_call_operand.vmem [shape: bf16[4,5,32], index: 0, kind: input, shape index: {}]   ;;  %s1350_s1 = inlined_call_operand.vmem [shape: bf16[4,5,32], index: 1, kind: input, shape index: {}]   ;;  %s1351_s2 = inlined_call_operand.vmem [shape: bf16[4,5,32], index: 2, kind: input, shape index: {}]   ;;  %s1352_s3 = inlined_call_operand.vmem [shape: bf16[4,5,32], index: 3, kind: output, shape index: {}]  }
   0x1   :  { %s1176_s14 = smov 0  }
   0x2 LB: > { %s32_s15 = sadd.s32 1, %s1132_s13  ;;  %p961_p0 = scmp.ge.s32.totalorder %s1136_s14, 1  ;;  %s1136_s14 = sphi %s1176_s14, %s13_s14   ;;  %s1132_s13 = sphi %s1174_s13, %s1354_s13   ;;  %s1128_s12 = sphi %s1172_s12, %s1353_s12  }
   0x3   : > { %p34_p1 = scmp.ge.s32.totalorder %s32_s15, 4  ;;  %p190_p2 = scmp.lt.s32.totalorder %s1136_s14, 5 }
   0x5   : > { %s1356_s15 = smov (%p34_p1, %s32_s15), 0  ;;  %p191_p3 = pnand %p961_p0, %p190_p2 }
   0x6   : > { %p232_p4 = scmp.lt.s32.totalorder (!%p191_p3), %s1128_s12, 3  ;;  %s1142_s23 = smov (!%p191_p3), 120  }
   0x7   : > { %194 = sbr.rel (%p191_p3) target bundleno = 1339 (0x53b), region = 32  ;;  %s1143_s24 = smov (!%p191_p3), 112  }
   0x8   : > { %s1144_s25 = smov (!%p191_p3), 104   ;;  %s1149_s29 = smov (!%p191_p3), 8  }
   0x9   : > { %s1150_s30 = smov (!%p191_p3), 16   ;;  %s1151_s4 = smov (!%p191_p3), 24  }
   0xc   : > { %v1138_v0 = vmov 0.0   ;;  %vm1139_vm0 = vmmov 0   ;;  %s1358_s12 = smov (!%p232_p4, %s1128_s12), 3  ;;  %vm276_vm1 = vcmask 64512   ;;  %vm265_vm2 = vcmask 28672  }
   0xd   : > { %995 = vmatprep.subr.bf16.mxu0 %v1138_v0  ;;  %997 = vmatprep.mubr.msk.bf16.mxu0 %vm1139_vm0, %v1138_v0  ;;  %s1196_s16 = sshll.u32 %s1358_s12, 2  ;;  %v1140_v4 = vmov -inf   ;;  %267 = vst.msk [vmem:[#allocation3] sm:$0x1f] %vm265_vm2, %v1138_v0  ;;  %vm323_vm3 = vcmask 36864   ;;  %v1141_v10 = vmov 0  }
   0xe   : > { %1001 = vmatprep.subr.bf16.mxu1 %v1138_v0  ;;  %1003 = vmatprep.mubr.msk.bf16.mxu1 %vm1139_vm0, %v1138_v0  ;;  %s245_s19 = scalar_lea.vmem %s1350_s1, %s1196_s16  ;;  %s238_s22 = scalar_lea.vmem %s1349_s0, %s1196_s16  ;;  %266 = vst.msk [vmem:[#allocation2] sm:$0x1f] %vm265_vm2, %v1140_v4  ;;  %vm354_vm4 = vcmask 1041408   ;;  %vm355_vm5 = vcmask 1042432   ;;  %v1145_v17 = vmov 65535   ;;  %vm350_vm6 = vcmask 39936  }
   0xf   : > { %v271_v1 = vld [vmem:[%s245_s19] sm:$0x7]  ;;  %1081 = vset.pattern.permute.xlu0 %v1141_v10  ;;  %s252_s28 = scalar_lea.vmem %s1351_s2, %s1196_s16  ;;  %v356_v18 = vsel %vm354_vm4, 4294967295, %v1145_v17  ;;  %v1146_v48 = vmov 1   ;;  %v1147_v54 = vmov 2   ;;  %v1148_v60 = vmov 3   ;;  %s259_s7 = scalar_lea.vmem %s1352_s3, %s1196_s16 }
  0x10   : > { %v281_v2 = vsel %vm276_vm1, %v271_v1, 0  ;;  %v270_v3 = vld [vmem:[%s238_s22] sm:$0x7]  ;;  %v969_v11 = vcombine.low %v271_v1, %v271_v1  ;;  %v1234_v19 = vsel %vm355_vm5, %v356_v18, 0  ;;  %1082 = vset.pattern.permute.xlu1 %v1146_v48  ;;  %vm782_vm7 = vcmask 7168  }
  0x11   : > { %996 = vmatpush3.bf16.xpose.msra.mxu0 %v281_v2  ;;  %v968_v12 = vcombine.low %v270_v3, %v270_v3  ;;  %v1232_v16 = vld [vmem:[%s252_s28] sm:$0x7]  ;;  %vm784_vm8 = vcmask 15360   ;;  %vm786_vm9 = vcmask 23552   ;;  %vm268_vm10 = vcmask 258048  }
  0x12   : > { %1013 = vmatprep.subr.bf16.mxu0 %v1138_v0  ;;  %409 = vrot.lane.b32.xlu1 %v969_v11, %s1142_s23  ;;  %v359_v20 = vand.u32 %v1234_v19, %v1232_v16  ;;  %269 = vst.msk [vmem:[#allocation4] sm:$0x1f] %vm268_vm10, %v1138_v0  ;;  %vm795_vm11 = vcmask 130048   ;;  %vm797_vm12 = vcmask 195584   ;;  %vm844_vm13 = vcmask 256000  }
  0x13   : > { %vm845_vm14 = vsmask.f32 2304 }
  0x14   : > { %1002 = vmatpush3.bf16.msra.mxu1 %v359_v20  ;;  %vm846_vm15 = vmand %vm844_vm13, %vm845_vm14 }
  0x15   : > { %v1222_v13 = vld [vmem:[#allocation2] sm:$0x1f]  ;;  %1007 = vmatprep.subr.bf16.mxu1 %v1138_v0 }
  0x16   : > { %404 = vrot.lane.b32.xlu1 %v968_v12, %s1142_s23 }
  0x18   : > { %998 = vmatmul.mubr.msk.bf16.vlgmr.msra.gmra.mxu0 %vm276_vm1, %v270_v3 }
  0x19   : > { %1015 = vmatprep.mubr.msk.bf16.mxu0 %vm1139_vm0, %v1138_v0 }
  0x1a   : > { %536 = vrot.lane.b32.xlu1 %v969_v11, %s1143_s24 }
  0x1e   : > { %534 = vrot.lane.b32.xlu1 %v968_v12, %s1143_s24 }
  0x22   : > { %660 = vrot.lane.b32.xlu1 %v969_v11, %s1144_s25 }
  0x26   : > { %658 = vrot.lane.b32.xlu1 %v968_v12, %s1144_s25 }
  0x84   : > { %v410_v24 = vpop.permute.xlu1 %409 }
  0x85   : > { %v415_v27 = vsel %vm276_vm1, %v410_v24, 0 }
  0x88   : > { %v405_v25 = vpop.permute.xlu1 %404 }
  0x8c   : > { %v537_v29 = vpop.permute.xlu1 %536 }
  0x8d   : > { %v542_v31 = vsel %vm276_vm1, %v537_v29, 0 }
  0x90   : > { %v535_v30 = vpop.permute.xlu1 %534 }
  0x94   : > { %v661_v32 = vpop.permute.xlu1 %660 }
  0x95   : > { %v666_v33 = vsel %vm276_vm1, %v661_v32, 0 }
  0x98   : > { %v659_v34 = vpop.permute.xlu1 %658 }
  0xd8   : > { %v317_v5 = vpop.f32.mrf.mxu0 }
  0xd9   : > { %v324_v6 = vsel %vm323_vm3, %v317_v5, -inf }
  0xda   : > { %325 = vmax.xlane.f32.xlu0 %v324_v6  ;;  %v999_v7 = vpop.f32.mrf.mxu0 }
  0xdc   : > { %v320_v8 = vpop.f32.mrf.mxu0 }
  0xde   : > { %v1000_v9 = vpop.f32.mrf.mxu0 }
 0x163   : > { %v326_v14 = vpop.xlane.xlu0 %325 }
 0x164   : > { %v1225_v15 = vmax.f32 %v1222_v13, %v326_v14 }
 0x166   : > { %333 = vperm.xlu0 %1081, %v1225_v15   ;;  %v328_v56 = vsub.f32 %v1222_v13, %v1225_v15 }
 0x168   : > { %v329_v57 = vmul.f32 1.442695, %v328_v56 }
 0x16a   : > { %1083 = vset.pattern.permute.xlu0 %v1147_v54 }
 0x1e1   : > { %v334_v21 = vpop.permute.xlu0 %333 }
 0x1e2   : > { %v336_v22 = vsub.f32 %v317_v5, %v334_v21  ;;  %v971_v5 = vcombine.low %v1232_v16, %v1232_v16 }
 0x1e4   : > { %v337_v23 = vmul.f32 1.442695, %v336_v22 }
 0x1e6   : > { %1096 = vpow2.f32 %v337_v23 }
 0x1e7   : > { %1098 = vpow2.f32 %v329_v57 }
 0x1f3   : > { %v1239_v26 = vpop.eup %1096 }
 0x1f4   : > { %v349_v28 = vpack.c.bf16 %v1239_v26, %v1239_v26  ;;  %v1273_v63 = vpop.eup %1098  ;;  %v340_v9 = vsel %vm323_vm3, %v1239_v26, 0.0 }
 0x1f6   : > { %1004 = vmatmul.mubr.msk.bf16.vlgmr.msra.gmra.mxu1 %vm350_vm6, %v349_v28 }
 0x1f7   : > { %1008 = vmatpush3.bf16.xpose.msra.mxu1 %v415_v27  ;;  %1009 = vmatprep.mubr.msk.bf16.mxu1 %vm1139_vm0, %v1138_v0 }
 0x1f8   : > { %1019 = vmatprep.subr.bf16.mxu1 %v1138_v0 }
 0x1fe   : > { %1010 = vmatmul.mubr.msk.bf16.vlgmr.msra.gmra.mxu1 %vm276_vm1, %v405_v25 }
 0x1ff   : > { %1020 = vmatpush3.bf16.xpose.msra.mxu1 %v542_v31  ;;  %1021 = vmatprep.mubr.msk.bf16.mxu1 %vm1139_vm0, %v1138_v0 }
 0x200   : > { %1031 = vmatprep.subr.bf16.mxu1 %v1138_v0 }
 0x206   : > { %1022 = vmatmul.mubr.msk.bf16.vlgmr.msra.gmra.mxu1 %vm276_vm1, %v535_v30 }
 0x207   : > { %1032 = vmatpush3.bf16.xpose.msra.mxu1 %v666_v33  ;;  %1033 = vmatprep.mubr.msk.bf16.mxu1 %vm1139_vm0, %v1138_v0 }
 0x20e   : > { %1034 = vmatmul.mubr.msk.bf16.vlgmr.msra.gmra.mxu1 %vm276_vm1, %v659_v34 }
 0x2b6   : > { %v1258_v35 = vpop.f32.mrf.mxu1 }
 0x2b8   : > { %v1005_v36 = vpop.f32.mrf.mxu1 }
 0x2ba   : > { %v398_v37 = vpop.f32.mrf.mxu1 }
 0x2bc   : > { %v1006_v38 = vpop.f32.mrf.mxu1 }
 0x2be   : > { %v451_v39 = vpop.f32.mrf.mxu1 }
 0x2bf   : > { %v457_v40 = vsel %vm323_vm3, %v451_v39, -inf }
 0x2c0   : > { %458 = vmax.xlane.f32.xlu1 %v457_v40  ;;  %v1011_v41 = vpop.f32.mrf.mxu1 }
 0x2c2   : > { %v454_v42 = vpop.f32.mrf.mxu1 }
 0x2c4   : > { %v1012_v43 = vpop.f32.mrf.mxu1 }
 0x2c6   : > { %v578_v44 = vpop.f32.mrf.mxu1 }
 0x2c7   : > { %v584_v45 = vsel %vm323_vm3, %v578_v44, -inf }
 0x2c8   : > { %585 = vmax.xlane.f32.xlu0 %v584_v45  ;;  %v1023_v46 = vpop.f32.mrf.mxu1 }
 0x2c9   : > { %v274_v46 = vld [vmem:[#allocation3] sm:$0x1f] }
 0x2ca   : > { %v581_v47 = vpop.f32.mrf.mxu1 }
 0x2cc   : > { %v1024_v49 = vpop.f32.mrf.mxu1 }
 0x2ce   : > { %v702_v50 = vpop.f32.mrf.mxu1 }
 0x2cf   : > { %v708_v51 = vsel %vm323_vm3, %v702_v50, -inf }
 0x2d0   : > { %709 = vmax.xlane.f32.xlu1 %v708_v51  ;;  %v1035_v52 = vpop.f32.mrf.mxu1 }
 0x2d1   : > { %v339_v52 = vmul.f32 %v1273_v63, %v274_v46 }
 0x2d2   : > { %v705_v53 = vpop.f32.mrf.mxu1 }
 0x2d4   : > { %v1036_v55 = vpop.f32.mrf.mxu1 }
 0x349   : > { %v459_v58 = vpop.xlane.xlu1 %458 }
 0x34a   : > { %v460_v59 = vmax.f32 %v1222_v13, %v459_v58 }
 0x34c   : > { %466 = vperm.xlu1 %1082, %v460_v59   ;;  %v783_v2 = vsel %vm782_vm7, %v1225_v15, %v460_v59  ;;  %v461_v7 = vsub.f32 %v1222_v13, %v460_v59 }
 0x34e   : > { %v462_v8 = vmul.f32 1.442695, %v461_v7 }
 0x350   : > { %1084 = vset.pattern.permute.xlu1 %v1148_v60  ;;  %1100 = vpow2.f32 %v462_v8 }
 0x351   : > { %v586_v61 = vpop.xlane.xlu0 %585 }
 0x352   : > { %v1270_v62 = vmax.f32 %v1222_v13, %v586_v61 }
 0x354   : > { %593 = vperm.xlu0 %1083, %v1270_v62   ;;  %v785_v4 = vsel %vm784_vm8, %v783_v2, %v1270_v62  ;;  %v588_v40 = vsub.f32 %v1222_v13, %v1270_v62 }
 0x356   : > { %v589_v41 = vmul.f32 1.442695, %v588_v40 }
 0x358   : > { %1085 = vset.pattern.permute.xlu0 %v1141_v10 }
 0x359   : > { %v710_v1 = vpop.xlane.xlu1 %709  ;;  %346 = vperm.xlu0 %1085, %v1273_v63  }
 0x35a   : > { %v711_v3 = vmax.f32 %v1222_v13, %v710_v1 }
 0x35c   : > { %v787_v6 = vsel %vm786_vm9, %v785_v4, %v711_v3  ;;  %717 = vperm.xlu1 %1084, %v711_v3   ;;  %v712_v27 = vsub.f32 %v1222_v13, %v711_v3 }
 0x35d   : > { %789 = vst.msk [vmem:[#allocation2] sm:$0x1f] %vm265_vm2, %v787_v6  ;;  %1087 = vset.pattern.permute.xlu0 %v1147_v54  ;;  %v1101_v11 = vpop.eup %1100 }
 0x35e   : > { %v713_v32 = vmul.f32 1.442695, %v712_v27  ;;  %v472_v49 = vmul.f32 %v1101_v11, %v274_v46 }
 0x360   : > { %486 = vrot.lane.b32.xlu1 %v971_v5, %s1142_s23 }
 0x361   : > { %1086 = vset.pattern.permute.xlu1 %v1146_v48 }
 0x364   : > { %610 = vrot.lane.b32.xlu1 %v971_v5, %s1143_s24 }
 0x368   : > { %734 = vrot.lane.b32.xlu1 %v971_v5, %s1144_s25 }
 0x38c   : > { %341 = vadd.xlane.f32.xlu1 %v340_v9 }
 0x39d   : > { %479 = vperm.xlu1 %1086, %v1101_v11  }
 0x3a1   : > { %1088 = vset.pattern.permute.xlu1 %v1148_v60 }
 0x3c7   : > { %v467_v12 = vpop.permute.xlu1 %466 }
 0x3c8   : > { %v469_v14 = vsub.f32 %v451_v39, %v467_v12 }
 0x3ca   : > { %v470_v15 = vmul.f32 1.442695, %v469_v14 }
 0x3cc   : > { %1102 = vpow2.f32 %v470_v15 }
 0x3cf   : > { %v594_v16 = vpop.permute.xlu0 %593 }
 0x3d0   : > { %v596_v17 = vsub.f32 %v578_v44, %v594_v16 }
 0x3d2   : > { %v597_v18 = vmul.f32 1.442695, %v596_v17 }
 0x3d4   : > { %1104 = vpow2.f32 %v597_v18  ;;  %v347_v13 = vpop.permute.xlu0 %346 }
 0x3d7   : > { %v718_v20 = vpop.permute.xlu1 %717 }
 0x3d8   : > { %v720_v21 = vsub.f32 %v702_v50, %v718_v20 }
 0x3d9   : > { %v1103_v22 = vpop.eup %1102 }
 0x3da   : > { %v721_v23 = vmul.f32 1.442695, %v720_v21  ;;  %v473_v24 = vsel %vm323_vm3, %v1103_v22, 0.0  ;;  %v482_v28 = vpack.c.bf16 %v1103_v22, %v1103_v22  ;;  %v275_v21 = vld [vmem:[#allocation4] sm:$0x1f] }
 0x3db   : > { %v487_v25 = vpop.permute.xlu1 %486  ;;  %474 = vadd.xlane.f32.xlu0 %v473_v24 }
 0x3dc   : > { %1106 = vpow2.f32 %v721_v23  ;;  %v492_v26 = vand.u32 %v487_v25, %v1234_v19 }
 0x3dd   : > { %1108 = vpow2.f32 %v713_v32 }
 0x3de   : > { %1014 = vmatpush3.bf16.msra.mxu0 %v492_v26  ;;  %1110 = vpow2.f32 %v589_v41 }
 0x3df   : > { %v611_v29 = vpop.permute.xlu1 %610  ;;  %1025 = vmatprep.subr.bf16.mxu0 %v1138_v0 }
 0x3e0   : > { %v616_v30 = vand.u32 %v611_v29, %v1234_v19 }
 0x3e1   : > { %v1105_v31 = vpop.eup %1104  ;;  %1016 = vmatmul.mubr.msk.bf16.vlgmr.msra.gmra.mxu0 %vm350_vm6, %v482_v28 }
 0x3e2   : > { %v600_v33 = vsel %vm323_vm3, %v1105_v31, 0.0  ;;  %1026 = vmatpush3.bf16.msra.mxu0 %v616_v30  ;;  %1027 = vmatprep.mubr.msk.bf16.mxu0 %vm1139_vm0, %v1138_v0  ;;  %v609_v37 = vpack.c.bf16 %v1105_v31, %v1105_v31 }
 0x3e3   : > { %601 = vadd.xlane.f32.xlu1 %v600_v33  ;;  %v735_v34 = vpop.permute.xlu1 %734  ;;  %1037 = vmatprep.subr.bf16.mxu0 %v1138_v0  ;;  %v847_v33 = vld [vmem:[%s259_s7] sm:$0x7] }
 0x3e4   : > { %v740_v36 = vand.u32 %v735_v34, %v1234_v19 }
 0x3e9   : > { %v1107_v38 = vpop.eup %1106  ;;  %1028 = vmatmul.mubr.msk.bf16.vlgmr.msra.gmra.mxu0 %vm350_vm6, %v609_v37 }
 0x3ea   : > { %v724_v39 = vsel %vm323_vm3, %v1107_v38, 0.0  ;;  %1038 = vmatpush3.bf16.msra.mxu0 %v740_v36  ;;  %1039 = vmatprep.mubr.msk.bf16.mxu0 %vm1139_vm0, %v1138_v0  ;;  %v733_v42 = vpack.c.bf16 %v1107_v38, %v1107_v38  ;;  %v1109_v43 = vpop.eup %1108 }
 0x3eb   : > { %725 = vadd.xlane.f32.xlu0 %v724_v39  ;;  %v1111_v19 = vpop.eup %1110  ;;  %v723_v0 = vmul.f32 %v1109_v43, %v274_v46 }
 0x3ec   : > { %v599_v51 = vmul.f32 %v1111_v19, %v274_v46 }
 0x3f1   : > { %1040 = vmatmul.mubr.msk.bf16.vlgmr.msra.gmra.mxu0 %vm350_vm6, %v733_v42 }
 0x3f4   : > { %730 = vperm.xlu1 %1088, %v1109_v43  }
 0x3f8   : > { %1089 = vset.pattern.permute.xlu1 %v1141_v10 }
 0x401   : > { %606 = vperm.xlu0 %1087, %v1111_v19  }
 0x405   : > { %1090 = vset.pattern.permute.xlu0 %v1146_v48 }
 0x415   : > { %v342_v44 = vpop.xlane.xlu1 %341 }
 0x416   : > { %v343_v56 = vadd.f32 %v342_v44, %v339_v52 }
 0x419   : > { %v480_v45 = vpop.permute.xlu1 %479 }
 0x41a   : > { %v794_v15 = vsel %vm276_vm1, %v347_v13, %v480_v45 }
 0x464   : > { %v475_v47 = vpop.xlane.xlu0 %474 }
 0x465   : > { %v476_v53 = vadd.f32 %v475_v47, %v472_v49 }
 0x467   : > { %v790_v10 = vsel %vm782_vm7, %v343_v56, %v476_v53 }
 0x46c   : > { %v602_v50 = vpop.xlane.xlu1 %601 }
 0x46d   : > { %v603_v55 = vadd.f32 %v602_v50, %v599_v51 }
 0x46f   : > { %v791_v48 = vsel %vm784_vm8, %v790_v10, %v603_v55 }
 0x470   : > { %v731_v11 = vpop.permute.xlu1 %730 }
 0x474   : > { %v726_v57 = vpop.xlane.xlu0 %725 }
 0x475   : > { %v727_v58 = vadd.f32 %v726_v57, %v723_v0 }
 0x477   : > { %v792_v59 = vsel %vm786_vm9, %v791_v48, %v727_v58 }
 0x478   : > { %793 = vst.msk [vmem:[#allocation3] sm:$0x1f] %vm265_vm2, %v792_v59  ;;  %1112 = vrcp.f32 %v792_v59 }
 0x47c   : > { %v607_v14 = vpop.permute.xlu0 %606 }
 0x47d   : > { %v796_v17 = vsel %vm795_vm11, %v794_v15, %v607_v14 }
 0x47e   : > { %v798_v18 = vsel %vm797_vm12, %v796_v17, %v731_v11 }
 0x47f   : > { %v799_v23 = vmul.f32 %v798_v18, %v275_v21 }
 0x485   : > { %v1113_v61 = vpop.eup %1112 }
 0x486   : > { %824 = vperm.xlu1 %1089, %v1113_v61  }
 0x48a   : > { %1091 = vset.pattern.permute.xlu1 %v1147_v54 }
 0x4a1   : > { %v528_v62 = vpop.f32.mrf.mxu0 }
 0x4a2   : > { %801 = vrot.lane.b32.xlu1 %v528_v62, %s1149_s29 }
 0x4a3   : > { %v1017_v63 = vpop.f32.mrf.mxu0 }
 0x4a5   : > { %v531_v1 = vpop.f32.mrf.mxu0 }
 0x4a7   : > { %v1018_v2 = vpop.f32.mrf.mxu0 }
 0x4a9   : > { %v652_v3 = vpop.f32.mrf.mxu0 }
 0x4aa   : > { %805 = vrot.lane.b32.xlu1 %v652_v3, %s1150_s30 }
 0x4ab   : > { %v1029_v4 = vpop.f32.mrf.mxu0 }
 0x4ad   : > { %v655_v5 = vpop.f32.mrf.mxu0 }
 0x4ae   : > { %832 = vperm.xlu1 %1091, %v1113_v61  }
 0x4af   : > { %v1030_v6 = vpop.f32.mrf.mxu0 }
 0x4b1   : > { %v776_v7 = vpop.f32.mrf.mxu0 }
 0x4b2   : > { %1092 = vset.pattern.permute.xlu1 %v1148_v60  ;;  %809 = vrot.lane.b32.xlu0 %v776_v7, %s1151_s4 }
 0x4b3   : > { %836 = vperm.xlu1 %1092, %v1113_v61   ;;  %v1041_v54 = vpop.f32.mrf.mxu0 }
 0x4b5   : > { %v779_v8 = vpop.f32.mrf.mxu0 }
 0x4b6   : > { %828 = vperm.xlu0 %1090, %v1113_v61  }
 0x4b7   : > { %v1042_v9 = vpop.f32.mrf.mxu0 }
 0x4ba   : > { %1093 = vset.pattern.permute.xlu0 %v1148_v60 }
 0x501   : > { %v825_v12 = vpop.permute.xlu1 %824 }
 0x514   : > { %v802_v16 = vpop.permute.xlu1 %801 }
 0x515   : > { %v812_v22 = vsel %vm276_vm1, %v1258_v35, %v802_v16 }
 0x51c   : > { %v806_v20 = vpop.permute.xlu1 %805 }
 0x51d   : > { %v813_v60 = vsel %vm795_vm11, %v812_v22, %v806_v20 }
 0x524   : > { %v810_v24 = vpop.permute.xlu0 %809 }
 0x525   : > { %v814_v25 = vsel %vm797_vm12, %v813_v60, %v810_v24 }
 0x526   : > { %v815_v26 = vadd.f32 %v814_v25, %v799_v23 }
 0x528   : > { %817 = vst.msk [vmem:[#allocation4] sm:$0x1f] %vm268_vm10, %v815_v26 }
 0x529   : > { %v833_v27 = vpop.permute.xlu1 %832 }
 0x52e   : > { %v837_v30 = vpop.permute.xlu1 %836 }
 0x531   : > { %v829_v28 = vpop.permute.xlu0 %828 }
 0x532   : > { %v839_v29 = vsel %vm276_vm1, %v825_v12, %v829_v28 }
 0x533   : > { %v840_v35 = vsel %vm795_vm11, %v839_v29, %v833_v27 }
 0x534   : > { %v841_v31 = vsel %vm797_vm12, %v840_v35, %v837_v30 }
 0x535   : > { %v842_v32 = vmul.f32 %v841_v31, %v815_v26 }
 0x537   : > { %v843_v34 = vpack.c.bf16 %v842_v32, %v842_v32 }
 0x539   : > { %v848_v36 = vsel %vm846_vm15, %v843_v34, %v847_v33 }
 0x53a   : > { %849 = vst [vmem:[%s259_s7] sm:$0x7] %v848_v36 }
 0x53b PF: > { %s13_s14 = sadd.s32 1, %s1136_s14   ;;  %s1353_s12 = smov %s1132_s13 }
 0x53c   : > { %p10_p5 = scmp.ge.s32.totalorder %s13_s14, 6   ;;  %s1354_s13 = smov %s1356_s15 }
 0x53e   :  { %12 = sbr.rel (!%p10_p5) target bundleno = 2 (0x2), region = 76 }

// kernel: vvt_forward.23
= control target key start
LH: loop header
LB: loop body
LE: loop exit
PB: predicated region body
PF: predicated region fallthrough
CT: control target
= control target key end

     0   :  { %vm52_vm0 = vcmask 261120   ;;  %vm132_vm1 = vcmask 254976   ;;  %vm129_vm2 = vcmask 257024   ;;  %s226_s1 = inlined_call_operand.vmem [shape: bf16[32,32], index: 1, kind: input, shape index: {}]   ;;  %s227_s0 = inlined_call_operand.vmem [shape: bf16[20,32], index: 0, kind: input, shape index: {}]   ;;  %s228_s3 = inlined_call_operand.vmem [shape: bf16[20,32], index: 3, kind: input, shape index: {}]   ;;  %s229_s2 = inlined_call_operand.vmem [shape: f32[1,32], index: 2, kind: input, shape index: {}]   ;;  %s230_s4 = inlined_call_operand.vmem [shape: bf16[20,32], index: 4, kind: output, shape index: {}]  }
   0x1   :  { %v167_v0 = vld [vmem:[%s226_s1 + $0x8] sm:$0xff]   ;;  %v168_v1 = vld [vmem:[%s226_s1] sm:$0xff]  }
   0x2   :  { %159 = vmatprep.subr.bf16.mxu0 %v167_v0  ;;  %v169_v2 = vld [vmem:[%s227_s0] sm:$0xff]   ;;  %v170_v3 = vld [vmem:[%s227_s0 + $0x8] ss:$0 sps:$4 sm:$0x33]  }
   0x3   :  { %160 = vmatpush3.bf16.msra.mxu0 %v167_v0  ;;  %163 = vmatprep.mubr.msk.bf16.mxu0 %vm52_vm0, %v169_v2  ;;  %v109_v4 = vld [vmem:[%s228_s3 + $0x8] sm:$0x3]  ;;  %v138_v5 = vld [vmem:[%s229_s2] ss:$0 sm:$0xff] }
   0x4   :  { %161 = vmatprep.subr.bf16.mxu0 %v168_v1  ;;  %v152_v6 = vld [vmem:[%s228_s3] sm:$0xff]   ;;  %v112_v7 = vunpack.c.l.bf16 %v109_v4 }
   0x5   :  { %v153_v10 = vunpack.c.l.bf16 %v152_v6  ;;  %v154_v17 = vunpack.c.h.bf16 %v152_v6 }
   0x7   :  { %162 = vmatpush3.bf16.msra.mxu0 %v168_v1 }
   0xa   :  { %164 = vmatmul.mubr.msk.bf16.vlgmr.msra.gmra.mxu0 %vm52_vm0, %v170_v3 }
  0xca   :  { %v165_v8 = vpop.f32.mrf.mxu0 }
  0xcb   :  { %v102_v9 = vadd.f32 %v165_v8, %v138_v5 }
  0xcc   :  { %v93_v11 = vpop.f32.mrf.mxu0 }
  0xcd   :  { %v115_v12 = vadd.f32 %v112_v7, %v102_v9  ;;  %v94_v13 = vadd.f32 %v138_v5, %v93_v11 }
  0xce   :  { %v166_v14 = vpop.f32.mrf.mxu0 }
  0xcf   :  { %v150_v15 = vpack.c.bf16 %v115_v12, %v115_v12  ;;  %v113_v16 = vadd.f32 %v153_v10, %v94_v13 }
  0xd0   :  { %v96_v18 = vpop.f32.mrf.mxu0 }
  0xd1   :  { %133 = vst.msk [vmem:[%s230_s4 + $0x8] sm:$0x3] %vm132_vm1, %v150_v15  ;;  %v148_v19 = vpack.c.bf16 %v113_v16, %v113_v16  ;;  %v97_v20 = vadd.f32 %v138_v5, %v96_v18 }
  0xd3   :  { %130 = vst.msk [vmem:[%s230_s4] sm:$0xf] %vm129_vm2, %v148_v19  ;;  %v114_v21 = vadd.f32 %v154_v17, %v97_v20 }
  0xd5   :  { %v149_v22 = vpack.c.bf16 %v114_v21, %v114_v21 }
  0xd7   :  { %131 = vst.msk [vmem:[%s230_s4 + $0x4] sm:$0xf] %vm129_vm2, %v149_v22 }

// kernel: vvt_forward.24
= control target key start
LH: loop header
LB: loop body
LE: loop exit
PB: predicated region body
PF: predicated region fallthrough
CT: control target
= control target key end

     0   :  { %vm39_vm0 = vcmask 261120   ;;  %vm46_vm1 = vcmask 257024   ;;  %vm114_vm2 = vcmask 254976   ;;  %s619_s0 = inlined_call_operand.vmem [shape: bf16[20,32], index: 0, kind: input, shape index: {}]   ;;  %s620_s6 = inlined_call_operand.vmem [shape: f32[1,32], index: 6, kind: input, shape index: {}]   ;;  %s621_s3 = inlined_call_operand.vmem [shape: bf16[32,128], index: 3, kind: input, shape index: {}]   ;;  %s622_s1 = inlined_call_operand.vmem [shape: f32[1,32], index: 1, kind: input, shape index: {}]   ;;  %s623_s2 = inlined_call_operand.vmem [shape: f32[1,32], index: 2, kind: input, shape index: {}]   ;;  %s624_s5 = inlined_call_operand.vmem [shape: bf16[128,32], index: 5, kind: input, shape index: {}]   ;;  %s625_s4 = inlined_call_operand.vmem [shape: f32[1,128], index: 4, kind: input, shape index: {}]   ;;  %s626_s7 = inlined_call_operand.vmem [shape: bf16[20,32], index: 7, kind: output, shape index: {}]  }
   0x1   :  { %v427_v0 = vld [vmem:[%s619_s0] sm:$0xff]   ;;  %v33_v2 = vld [vmem:[%s619_s0 + $0x8] sm:$0x3]  ;;  %v476_v57 = vld [vmem:[%s624_s5 + $0x38] sm:$0xff]  }
   0x2   :  { %v398_v1 = vld [vmem:[%s620_s6] ss:$0 sm:$0xff]  ;;  %v428_v3 = vunpack.c.l.bf16 %v427_v0  ;;  %v36_v4 = vunpack.c.l.bf16 %v33_v2  ;;  %v429_v5 = vunpack.c.h.bf16 %v427_v0  ;;  %v472_v27 = vld [vmem:[%s621_s3 + $0x8] sm:$0xff]   ;;  %452 = vmatprep.subr.bf16.mxu1 %v476_v57  ;;  %v477_v58 = vld [vmem:[%s624_s5 + $0x30] sm:$0xff]  }
   0x3   :  { %v473_v28 = vld [vmem:[%s621_s3] sm:$0xff]   ;;  %444 = vmatprep.subr.bf16.mxu0 %v472_v27  ;;  %453 = vmatpush3.bf16.msra.mxu1 %v476_v57  ;;  %v478_v59 = vld [vmem:[%s624_s5 + $0x28] sm:$0xff]   ;;  %v480_v61 = vld [vmem:[%s624_s5 + $0x18] sm:$0xff]  }
   0x4   :  { %v40_v6 = vsel %vm39_vm0, %v428_v3, 0.0  ;;  %v123_v7 = vadd.f32 %v428_v3, %v398_v1  ;;  %v47_v8 = vsel %vm46_vm1, %v36_v4, 0.0  ;;  %v125_v9 = vadd.f32 %v398_v1, %v36_v4  ;;  %445 = vmatpush3.bf16.msra.mxu0 %v472_v27  ;;  %v393_v39 = vld [vmem:[%s622_s1] ss:$0 sm:$0xff]  ;;  %454 = vmatprep.subr.bf16.mxu1 %v477_v58  ;;  %v481_v62 = vld [vmem:[%s624_s5 + $0x10] sm:$0xff]   ;;  %v482_v63 = vld [vmem:[%s624_s5 + $0x8] sm:$0xff]  }
   0x5   :  { %41 = vadd.xlane.f32.xlu0 %v40_v6  ;;  %48 = vadd.xlane.f32.xlu1 %v47_v8  ;;  %v124_v10 = vadd.f32 %v429_v5, %v398_v1  ;;  %v43_v11 = vsel %vm39_vm0, %v429_v5, 0.0  ;;  %v394_v41 = vld [vmem:[%s623_s2] ss:$0 sm:$0xff] }
   0x6   :  { %126 = vst.msk [vmem:[#allocation3] sm:$0xff] %vm39_vm0, %v123_v7  ;;  %446 = vmatprep.subr.bf16.mxu0 %v473_v28  ;;  %v479_v60 = vld [vmem:[%s624_s5 + $0x20] sm:$0xff]  }
   0x7   :  { %128 = vst.msk [vmem:[#allocation3 + $0x10] sm:$0xf] %vm46_vm1, %v125_v9  ;;  %455 = vmatpush3.bf16.msra.mxu1 %v477_v58  ;;  %v483_v0 = vld [vmem:[%s624_s5] sm:$0xff]  }
   0x8   :  { %127 = vst.msk [vmem:[#allocation3 + $0x8] sm:$0xff] %vm39_vm0, %v124_v10  ;;  %447 = vmatpush3.bf16.msra.mxu0 %v473_v28  ;;  %456 = vmatprep.subr.bf16.mxu1 %v478_v59  ;;  %v399_v1 = vld [vmem:[%s625_s4] ss:$0 sm:$0xff] }
   0x9   :  { %44 = vadd.xlane.f32.xlu0 %v43_v11 }
   0xb   :  { %457 = vmatpush3.bf16.msra.mxu1 %v478_v59 }
   0xc   :  { %458 = vmatprep.subr.bf16.mxu1 %v479_v60 }
   0xf   :  { %459 = vmatpush3.bf16.msra.mxu1 %v479_v60 }
  0x10   :  { %460 = vmatprep.subr.bf16.mxu1 %v480_v61 }
  0x13   :  { %461 = vmatpush3.bf16.msra.mxu1 %v480_v61 }
  0x14   :  { %462 = vmatprep.subr.bf16.mxu1 %v481_v62 }
  0x17   :  { %463 = vmatpush3.bf16.msra.mxu1 %v481_v62 }
  0x18   :  { %464 = vmatprep.subr.bf16.mxu1 %v482_v63 }
  0x1b   :  { %465 = vmatpush3.bf16.msra.mxu1 %v482_v63 }
  0x1c   :  { %466 = vmatprep.subr.bf16.mxu1 %v483_v0 }
  0x1f   :  { %467 = vmatpush3.bf16.msra.mxu1 %v483_v0 }
  0x8e   :  { %v42_v12 = vpop.xlane.xlu0 %41  ;;  %v49_v13 = vpop.xlane.xlu1 %48 }
  0x8f   :  { %v51_v14 = vmul.f32 0.03125, %v42_v12  ;;  %v53_v15 = vmul.f32 0.03125, %v49_v13 }
  0x91   :  { %v54_v16 = vsub.f32 %v428_v3, %v51_v14  ;;  %v56_v17 = vsub.f32 %v36_v4, %v53_v15 }
  0x92   :  { %v45_v18 = vpop.xlane.xlu0 %44 }
  0x93   :  { %v52_v19 = vmul.f32 0.03125, %v45_v18  ;;  %v57_v20 = vmul.f32 %v54_v16, %v54_v16  ;;  %v59_v21 = vmul.f32 %v56_v17, %v56_v17 }
  0x95   :  { %v55_v22 = vsub.f32 %v429_v5, %v52_v19  ;;  %v60_v23 = vsel %vm39_vm0, %v57_v20, 0.0  ;;  %v66_v24 = vsel %vm46_vm1, %v59_v21, 0.0 }
  0x96   :  { %61 = vadd.xlane.f32.xlu1 %v60_v23 }
  0x97   :  { %v58_v25 = vmul.f32 %v55_v22, %v55_v22 }
  0x99   :  { %v63_v26 = vsel %vm39_vm0, %v58_v25, 0.0 }
  0x9a   :  { %67 = vadd.xlane.f32.xlu1 %v66_v24  ;;  %64 = vadd.xlane.f32.xlu0 %v63_v26 }
 0x11f   :  { %v62_v29 = vpop.xlane.xlu1 %61 }
 0x120   :  { %v69_v30 = vmul.f32 0.03125, %v62_v29  ;;  %v244_v29 = vld [vmem:[#allocation3 + $0x10] sm:$0xf] }
 0x122   :  { %v72_v31 = vadd.f32 1e-05, %v69_v30 }
 0x123   :  { %v68_v32 = vpop.xlane.xlu1 %67  ;;  %v65_v33 = vpop.xlane.xlu0 %64 }
 0x124   :  { %484 = vrsqrt.f32 %v72_v31  ;;  %v71_v34 = vmul.f32 0.03125, %v68_v32  ;;  %v70_v35 = vmul.f32 0.03125, %v65_v33  ;;  %v242_v31 = vld [vmem:[#allocation3] sm:$0xff] }
 0x126   :  { %v74_v36 = vadd.f32 1e-05, %v71_v34  ;;  %v73_v37 = vadd.f32 1e-05, %v70_v35 }
 0x128   :  { %486 = vrsqrt.f32 %v74_v36  ;;  %v243_v36 = vld [vmem:[#allocation3 + $0x8] sm:$0xff] }
 0x129   :  { %488 = vrsqrt.f32 %v73_v37 }
 0x131   :  { %v485_v38 = vpop.eup %484 }
 0x132   :  { %v78_v40 = vmul.f32 %v485_v38, %v54_v16 }
 0x134   :  { %v87_v42 = vmul.f32 %v393_v39, %v78_v40 }
 0x135   :  { %v487_v43 = vpop.eup %486 }
 0x136   :  { %v489_v44 = vpop.eup %488  ;;  %v96_v45 = vadd.f32 %v394_v41, %v87_v42  ;;  %v80_v46 = vmul.f32 %v487_v43, %v56_v17 }
 0x137   :  { %v79_v47 = vmul.f32 %v489_v44, %v55_v22 }
 0x138   :  { %v420_v48 = vpack.c.bf16 %v96_v45, %v96_v45  ;;  %v89_v49 = vmul.f32 %v393_v39, %v80_v46 }
 0x139   :  { %v88_v50 = vmul.f32 %v393_v39, %v79_v47 }
 0x13a   :  { %112 = vst.msk [vmem:[#allocation2] sm:$0xf] %vm46_vm1, %v420_v48  ;;  %v98_v51 = vadd.f32 %v394_v41, %v89_v49 }
 0x13b   :  { %v97_v52 = vadd.f32 %v394_v41, %v88_v50 }
 0x13c   :  { %v422_v53 = vpack.c.bf16 %v98_v51, %v98_v51 }
 0x13d   :  { %v421_v54 = vpack.c.bf16 %v97_v52, %v97_v52 }
 0x13e   :  { %115 = vst.msk [vmem:[#allocation2 + $0x8] sm:$0x3] %vm114_vm2, %v422_v53 }
 0x13f   :  { %113 = vst.msk [vmem:[#allocation2 + $0x4] sm:$0xf] %vm46_vm1, %v421_v54 }
 0x145   :  { %v475_v55 = vld [vmem:[#allocation2 + $0x8] ss:$0 sps:$4 sm:$0x33]  }
 0x146   :  { %v474_v56 = vld [vmem:[#allocation2] sm:$0xff]  }
 0x147   :  { %448 = vmatprep.mubr.msk.bf16.mxu0 %vm39_vm0, %v474_v56 }
 0x148   :  { %449 = vmatmul.mubr.msk.bf16.vlgmr.msra.gmra.mxu0 %vm39_vm0, %v475_v55 }
 0x208   :  { %v450_v2 = vpop.f32.mrf.mxu0 }
 0x209   :  { %v213_v3 = vadd.f32 %v450_v2, %v399_v1 }
 0x20a   :  { %v204_v4 = vpop.f32.mrf.mxu0 }
 0x20b   :  { %v408_v5 = vmul.f32 -1.702, %v213_v3  ;;  %v205_v6 = vadd.f32 %v399_v1, %v204_v4 }
 0x20c   :  { %v451_v7 = vpop.f32.mrf.mxu0 }
 0x20d   :  { %v228_v8 = vmul.f32 1.442695, %v408_v5  ;;  %v406_v9 = vmul.f32 -1.702, %v205_v6 }
 0x20e   :  { %v207_v10 = vpop.f32.mrf.mxu0 }
 0x20f   :  { %490 = vpow2.f32 %v228_v8  ;;  %v224_v11 = vmul.f32 1.442695, %v406_v9  ;;  %v208_v12 = vadd.f32 %v399_v1, %v207_v10 }
 0x211   :  { %492 = vpow2.f32 %v224_v11  ;;  %v407_v13 = vmul.f32 -1.702, %v208_v12 }
 0x213   :  { %v226_v14 = vmul.f32 1.442695, %v407_v13 }
 0x215   :  { %494 = vpow2.f32 %v226_v14 }
 0x21c   :  { %v491_v15 = vpop.eup %490 }
 0x21d   :  { %v232_v17 = vadd.f32 1.0, %v491_v15 }
 0x21e   :  { %v493_v16 = vpop.eup %492 }
 0x21f   :  { %v230_v18 = vadd.f32 1.0, %v493_v16  ;;  %496 = vrcp.f32 %v232_v17 }
 0x221   :  { %498 = vrcp.f32 %v230_v18 }
 0x222   :  { %v495_v19 = vpop.eup %494 }
 0x223   :  { %v231_v20 = vadd.f32 1.0, %v495_v19 }
 0x225   :  { %500 = vrcp.f32 %v231_v20 }
 0x22c   :  { %v497_v21 = vpop.eup %496 }
 0x22d   :  { %v241_v24 = vmul.f32 %v497_v21, %v213_v3 }
 0x22e   :  { %v499_v22 = vpop.eup %498 }
 0x22f   :  { %v239_v25 = vmul.f32 %v499_v22, %v205_v6  ;;  %v246_v28 = vpack.c.bf16 %v241_v24, %v241_v24 }
 0x232   :  { %v501_v23 = vpop.eup %500 }
 0x233   :  { %v240_v26 = vmul.f32 %v501_v23, %v208_v12 }
 0x235   :  { %v245_v27 = vpack.c.bf16 %v240_v26, %v239_v25 }
 0x237   :  { %468 = vmatprep.mubr.bf16.mxu1 %v245_v27 }
 0x238   :  { %469 = vmatmul.mubr.bf16.vlgmr.msra.gmra.mxu1 %v246_v28 }
 0x2f8   :  { %v470_v30 = vpop.f32.mrf.mxu1 }
 0x2f9   :  { %v361_v32 = vadd.f32 %v470_v30, %v244_v29 }
 0x2fa   :  { %v345_v33 = vpop.f32.mrf.mxu1 }
 0x2fb   :  { %365 = vst.msk [vmem:[#allocation3 + $0x10] sm:$0xf] %vm46_vm1, %v361_v32  ;;  %v359_v34 = vadd.f32 %v345_v33, %v242_v31 }
 0x2fc   :  { %v471_v35 = vpop.f32.mrf.mxu1 }
 0x2fd   :  { %362 = vst.msk [vmem:[#allocation3] sm:$0xff] %vm39_vm0, %v359_v34 }
 0x2fe   :  { %v348_v37 = vpop.f32.mrf.mxu1 }
 0x2ff   :  { %v360_v38 = vadd.f32 %v348_v37, %v243_v36 }
 0x301   :  { %363 = vst.msk [vmem:[#allocation3 + $0x8] sm:$0xff] %vm39_vm0, %v360_v38 }
 0x302   :  { %v371_v39 = vld [vmem:[#allocation3 + $0x10] sm:$0xf] }
 0x303   :  { %v425_v40 = vpack.c.bf16 %v371_v39, %v371_v39 }
 0x304   :  { %v369_v41 = vld [vmem:[#allocation3] sm:$0xff] }
 0x305   :  { %388 = vst.msk [vmem:[%s626_s7 + $0x8] sm:$0x3] %vm114_vm2, %v425_v40  ;;  %v423_v42 = vpack.c.bf16 %v369_v41, %v369_v41 }
 0x307   :  { %385 = vst.msk [vmem:[%s626_s7] sm:$0xf] %vm46_vm1, %v423_v42 }
 0x308   :  { %v370_v43 = vld [vmem:[#allocation3 + $0x8] sm:$0xff] }
 0x309   :  { %v424_v44 = vpack.c.bf16 %v370_v43, %v370_v43 }
 0x30b   :  { %386 = vst.msk [vmem:[%s626_s7 + $0x4] sm:$0xf] %vm46_vm1, %v424_v44 }

// kernel: vvt_forward.37
= control target key start
LH: loop header
LB: loop body
LE: loop exit
PB: predicated region body
PF: predicated region fallthrough
CT: control target
= control target key end

     0   :  { %vm23_vm0 = vcmask 257024   ;;  %s220_s0 = inlined_call_operand.vmem [shape: bf16[4,32], index: 0, kind: input, shape index: {}]   ;;  %s221_s1 = inlined_call_operand.vmem [shape: f32[1,32], index: 1, kind: input, shape index: {}]   ;;  %s222_s2 = inlined_call_operand.vmem [shape: f32[1,32], index: 2, kind: input, shape index: {}]   ;;  %s223_s3 = inlined_call_operand.vmem [shape: bf16[32,16], index: 3, kind: input, shape index: {}]   ;;  %s224_s4 = inlined_call_operand.hbm [shape: f32[4,16], index: 4, kind: output, shape index: {}]  }
   0x1   :  { %v19_v0 = vld [vmem:[%s220_s0] sm:$0x3] }
   0x2   :  { %v20_v1 = vunpack.c.l.bf16 %v19_v0 }
   0x3   :  { %9 = vsyncpa [#allocation3], 0  ;;  %v148_v8 = vld [vmem:[%s223_s3 + $0x8] sm:$0xff]   ;;  %v174_v9 = vmov 0.0   ;;  %vm175_vm1 = vmmov 0   ;;  %v149_v10 = vld [vmem:[%s223_s3] sm:$0xff]  }
   0x4   :  { %v24_v2 = vsel %vm23_vm0, %v20_v1, 0.0  ;;  %137 = vmatprep.subr.bf16.mxu0 %v174_v9  ;;  %141 = vmatprep.mubr.msk.bf16.mxu0 %vm175_vm1, %v174_v9  ;;  %v129_v15 = vld [vmem:[%s221_s1] ss:$0 sm:$0xff]  ;;  %vm69_vm2 = vcmask 261120   ;;  %s176_s3 = smov [#allocation2]   ;;  %vm113_vm3 = vcmask 125952  }
   0x5   :  { %25 = vadd.xlane.f32.xlu0 %v24_v2  ;;  %138 = vmatpush3.bf16.msra.mxu0 %v148_v8  ;;  %v130_v17 = vld [vmem:[%s222_s2] ss:$0 sm:$0xff]  ;;  %s121_s24 = sshll.u32 %s176_s3, 4  ;;  %s122_s24 = int_to_ptr.vmem [resolvable:$true] %s121_s24 }
   0x6   :  { %139 = vmatprep.subr.bf16.mxu0 %v174_v9  ;;  %s152_s25 = scalar_lea.vmem %s122_s24, 64  ;;  %p157_p1 = scmp.lt.s32.totalorder %s122_s24, %s122_s24 }
   0x7   :  { %p153_p0 = scmp.ne.s32.totalorder %s122_s24, %s152_s25  ;;  %p158_p2 = scmp.lt.s32.totalorder %s152_s25, %s152_s25 }
   0x9   :  { %140 = vmatpush3.bf16.msra.mxu0 %v149_v10  ;;  %p159_p3 = por %p158_p2, %p157_p1 }
   0xb   :  { %p160_p4 = pnand %p159_p3, %p153_p0 }
  0x8e   :  { %v26_v3 = vpop.xlane.xlu0 %25 }
  0x8f   :  { %v28_v4 = vmul.f32 0.03125, %v26_v3 }
  0x91   :  { %v29_v5 = vsub.f32 %v20_v1, %v28_v4 }
  0x93   :  { %v30_v6 = vmul.f32 %v29_v5, %v29_v5 }
  0x95   :  { %v31_v7 = vsel %vm23_vm0, %v30_v6, 0.0 }
  0x96   :  { %32 = vadd.xlane.f32.xlu0 %v31_v7 }
 0x11f   :  { %v33_v11 = vpop.xlane.xlu0 %32 }
 0x120   :  { %v34_v12 = vmul.f32 0.03125, %v33_v11 }
 0x122   :  { %v35_v13 = vadd.f32 1e-05, %v34_v12 }
 0x124   :  { %150 = vrsqrt.f32 %v35_v13 }
 0x131   :  { %v151_v14 = vpop.eup %150 }
 0x132   :  { %v37_v16 = vmul.f32 %v151_v14, %v29_v5 }
 0x134   :  { %v44_v18 = vmul.f32 %v129_v15, %v37_v16 }
 0x136   :  { %v51_v19 = vadd.f32 %v130_v17, %v44_v18 }
 0x138   :  { %v52_v20 = vpack.c.bf16 %v51_v19, %v51_v19 }
 0x13a   :  { %142 = vmatmul.mubr.msk.bf16.vlgmr.msra.gmra.mxu0 %vm69_vm2, %v52_v20 }
 0x1fa   :  { %v107_v21 = vpop.f32.mrf.mxu0 }
 0x1fb   :  { %114 = vst.msk [vmem:[#allocation2] sm:$0xf] %vm113_vm3, %v107_v21 }
 0x1fc   :  { %v143_v22 = vpop.f32.mrf.mxu0 }
 0x1fd   :  { %163 = shalt.err (!%p160_p4)
}
 0x1fe   :  { %124 = dma.vmem_to_hbm [thread:$0]  %s122_s24, 64, %s224_s4, [#allocation3]   ;;  %v110_v23 = vpop.f32.mrf.mxu0 }
 0x200   :  { %v144_v24 = vpop.f32.mrf.mxu0 }
 0x201   :  { %172 = dma.done.wait [#allocation3], 64  }
 0x202   :  { %173 = vsyncadd [#allocation3], 4294967232 }
 0x203   :  { %128 = vsyncpa [#allocation3], 1 }

// kernel: vvt_forward.34
= control target key start
LH: loop header
LB: loop body
LE: loop exit
PB: predicated region body
PF: predicated region fallthrough
CT: control target
= control target key end

     0   :  { %s1434_s12 = smov 0   ;;  %s1436_s13 = smov 0   ;;  %s1720_s0 = inlined_call_operand.vmem [shape: bf16[2,10,32], index: 0, kind: input, shape index: {}]   ;;  %s1721_s1 = inlined_call_operand.vmem [shape: bf16[2,10,32], index: 1, kind: input, shape index: {}]   ;;  %s1722_s2 = inlined_call_operand.vmem [shape: bf16[2,10,32], index: 2, kind: input, shape index: {}]   ;;  %s1723_s3 = inlined_call_operand.vmem [shape: bf16[2,10,32], index: 3, kind: output, shape index: {}]  }
   0x1   :  { %s1438_s14 = smov 0  }
   0x2 LB: > { %s32_s15 = sadd.s32 1, %s1395_s13  ;;  %p1189_p0 = scmp.ge.s32.totalorder %s1399_s14, 1  ;;  %s1399_s14 = sphi %s1438_s14, %s13_s14   ;;  %s1395_s13 = sphi %s1436_s13, %s1725_s13   ;;  %s1391_s12 = sphi %s1434_s12, %s1724_s12  }
   0x3   : > { %p34_p1 = scmp.ge.s32.totalorder %s32_s15, 2  ;;  %p199_p2 = scmp.lt.s32.totalorder %s1399_s14, 3 }
   0x5   : > { %s1727_s15 = smov (%p34_p1, %s32_s15), 0  ;;  %p200_p3 = pnand %p1189_p0, %p199_p2 }
   0x6   : > { %p250_p4 = scmp.lt.s32.totalorder (!%p200_p3), %s1391_s12, 1  ;;  %s1405_s23 = smov (!%p200_p3), 120  }
   0x7   : > { %203 = sbr.rel (%p200_p3) target bundleno = 1349 (0x545), region = 32  ;;  %s1406_s27 = smov (!%p200_p3), 112  }
   0x8   : > { %s1407_s28 = smov (!%p200_p3), 104   ;;  %s1411_s29 = smov (!%p200_p3), 8  }
   0x9   : > { %s1412_s30 = smov (!%p200_p3), 16   ;;  %s1413_s4 = smov (!%p200_p3), 24  }
   0xc   : > { %v1401_v0 = vmov 0.0   ;;  %vm1402_vm0 = vmmov 0   ;;  %s1729_s12 = smov (!%p250_p4, %s1391_s12), 1  ;;  %vm326_vm1 = vcmask 64512   ;;  %vm294_vm2 = vcmask 31744  }
   0xd   : > { %1235 = vmatprep.subr.bf16.mxu0 %v1401_v0  ;;  %1237 = vmatprep.mubr.msk.bf16.mxu0 %vm1402_vm0, %v1401_v0  ;;  %s1458_s16 = sshll.u32 %s1729_s12, 3  ;;  %v1403_v4 = vmov -inf   ;;  %298 = vst.msk [vmem:[#allocation3] sm:$0xff] %vm294_vm2, %v1401_v0  ;;  %vm374_vm3 = vcmask 80896   ;;  %vm378_vm4 = vcmask 74752   ;;  %vm296_vm5 = vcmask 25600  }
   0xe   : > { %1241 = vmatprep.subr.bf16.mxu1 %v1401_v0  ;;  %1243 = vmatprep.mubr.msk.bf16.mxu1 %vm1402_vm0, %v1401_v0  ;;  %s267_s19 = scalar_lea.vmem %s1721_s1, %s1458_s16  ;;  %s257_s22 = scalar_lea.vmem %s1720_s0, %s1458_s16  ;;  %295 = vst.msk [vmem:[#allocation2] sm:$0xff] %vm294_vm2, %v1403_v4  ;;  %v1404_v11 = vmov 0   ;;  %vm435_vm6 = vcmask 1044480   ;;  %v1408_v53 = vmov 1   ;;  %vm933_vm7 = vcmask 7168  }
   0xf   : > { %v1338_v1 = vld [vmem:[%s267_s19] sm:$0x1f]   ;;  %297 = vst.msk [vmem:[#allocation2 + $0x8] sm:$0x3] %vm296_vm5, %v1403_v4  ;;  %299 = vst.msk [vmem:[#allocation3 + $0x8] sm:$0x3] %vm296_vm5, %v1401_v0  ;;  %1320 = vset.pattern.permute.xlu1 %v1404_v11  ;;  %s277_s26 = scalar_lea.vmem %s1722_s2, %s1458_s16  ;;  %1321 = vset.pattern.permute.xlu0 %v1408_v53  ;;  %s287_s7 = scalar_lea.vmem %s1723_s3, %s1458_s16 }
  0x10   : > { %v331_v2 = vsel %vm326_vm1, %v1338_v1, 0  ;;  %v1339_v3 = vld [vmem:[%s257_s22] sm:$0x1f]   ;;  %vm936_vm8 = vcmask 15360   ;;  %vm939_vm9 = vcmask 23552   ;;  %vm302_vm10 = vcmask 254976  }
  0x11   : > { %1236 = vmatpush3.bf16.xpose.msra.mxu0 %v331_v2  ;;  %v1499_v18 = vld [vmem:[%s277_s26] sm:$0x1f]   ;;  %303 = vst.msk [vmem:[#allocation4 + $0x8] sm:$0x3] %vm302_vm10, %v1401_v0  ;;  %vm300_vm11 = vcmask 261120   ;;  %vm956_vm12 = vcmask 130048  }
  0x12   : > { %1253 = vmatprep.subr.bf16.mxu0 %v1401_v0  ;;  %v437_v19 = vsel %vm435_vm6, %v1499_v18, 0  ;;  %301 = vst.msk [vmem:[#allocation4] sm:$0xff] %vm300_vm11, %v1401_v0  ;;  %vm959_vm13 = vcmask 195584   ;;  %vm1055_vm14 = vcmask 257024   ;;  %vm1057_vm15 = vcmask 253952  }
  0x13   : > { %1242 = vmatpush3.bf16.msra.mxu1 %v437_v19 }
  0x14   : > { %1247 = vmatprep.subr.bf16.mxu1 %v1401_v0 }
  0x15   : > { %v1483_v12 = vld [vmem:[#allocation2] sm:$0xff] }
  0x16   : > { %v1488_v15 = vld [vmem:[#allocation2 + $0x8] sm:$0x3] }
  0x18   : > { %1238 = vmatmul.mubr.msk.bf16.vlgmr.msra.gmra.mxu0 %vm326_vm1, %v1339_v3 }
  0x19   : > { %1255 = vmatprep.mubr.msk.bf16.mxu0 %vm1402_vm0, %v1401_v0 }
  0xd8   : > { %v367_v5 = vpop.f32.mrf.mxu0 }
  0xd9   : > { %v375_v6 = vsel %vm374_vm3, %v367_v5, -inf }
  0xda   : > { %376 = vmax.xlane.f32.xlu0 %v375_v6  ;;  %v1239_v7 = vpop.f32.mrf.mxu0 }
  0xdc   : > { %v370_v8 = vpop.f32.mrf.mxu0 }
  0xdd   : > { %v379_v9 = vsel %vm378_vm4, %v370_v8, -inf }
  0xde   : > { %380 = vmax.xlane.f32.xlu0 %v379_v9  ;;  %v1240_v10 = vpop.f32.mrf.mxu0 }
  0xf4   : > { %482 = vrot.lane.b32.xlu0 %v1338_v1, %s1405_s23 }
 0x163   : > { %v377_v13 = vpop.xlane.xlu0 %376 }
 0x164   : > { %v1486_v14 = vmax.f32 %v1483_v12, %v377_v13 }
 0x166   : > { %392 = vperm.xlu1 %1320, %v1486_v14  }
 0x167   : > { %v381_v16 = vpop.xlane.xlu0 %380 }
 0x168   : > { %v1492_v17 = vmax.f32 %v1488_v15, %v381_v16  ;;  %v1410_v16 = vmov 3  }
 0x16a   : > { %397 = vperm.xlu1 %1320, %v1492_v17  }
 0x16b   : > { %v483_v27 = vpop.permute.xlu0 %482 }
 0x16c   : > { %v488_v30 = vsel %vm326_vm1, %v483_v27, 0 }
 0x16e   : > { %480 = vrot.lane.b32.xlu1 %v1339_v3, %s1405_s23 }
 0x16f   : > { %1322 = vset.pattern.permute.xlu1 %v1408_v53 }
 0x172   : > { %633 = vrot.lane.b32.xlu1 %v1338_v1, %s1406_s27 }
 0x176   : > { %631 = vrot.lane.b32.xlu1 %v1339_v3, %s1406_s27 }
 0x17a   : > { %784 = vrot.lane.b32.xlu1 %v1338_v1, %s1407_s28 }
 0x17e   : > { %782 = vrot.lane.b32.xlu1 %v1339_v3, %s1407_s28  ;;  %v1409_v3 = vmov 2  }
 0x1e1   : > { %v393_v20 = vpop.permute.xlu1 %392 }
 0x1e2   : > { %v400_v21 = vsub.f32 %v367_v5, %v393_v20 }
 0x1e4   : > { %v402_v22 = vmul.f32 1.442695, %v400_v21 }
 0x1e5   : > { %v398_v23 = vpop.permute.xlu1 %397 }
 0x1e6   : > { %v401_v24 = vsub.f32 %v370_v8, %v398_v23  ;;  %1341 = vpow2.f32 %v402_v22 }
 0x1e8   : > { %v404_v25 = vmul.f32 1.442695, %v401_v24 }
 0x1e9   : > { %v481_v26 = vpop.permute.xlu1 %480 }
 0x1ea   : > { %1343 = vpow2.f32 %v404_v25  ;;  %v385_v25 = vsub.f32 %v1488_v15, %v1492_v17 }
 0x1ed   : > { %v634_v32 = vpop.permute.xlu1 %633 }
 0x1ee   : > { %v639_v34 = vsel %vm326_vm1, %v634_v32, 0 }
 0x1f1   : > { %v632_v33 = vpop.permute.xlu1 %631 }
 0x1f3   : > { %v1509_v28 = vpop.eup %1341 }
 0x1f4   : > { %v408_v27 = vsel %vm374_vm3, %v1509_v28, 0.0 }
 0x1f5   : > { %v785_v35 = vpop.permute.xlu1 %784 }
 0x1f6   : > { %v790_v36 = vsel %vm326_vm1, %v785_v35, 0 }
 0x1f7   : > { %v1511_v29 = vpop.eup %1343 }
 0x1f8   : > { %v426_v31 = vpack.c.bf16 %v1511_v29, %v1509_v28  ;;  %v411_v24 = vsel %vm378_vm4, %v1511_v29, 0.0 }
 0x1f9   : > { %v783_v37 = vpop.permute.xlu1 %782 }
 0x1fa   : > { %1244 = vmatmul.mubr.msk.bf16.vlgmr.msra.gmra.mxu1 %vm374_vm3, %v426_v31 }
 0x1fb   : > { %1248 = vmatpush3.bf16.xpose.msra.mxu1 %v488_v30  ;;  %1249 = vmatprep.mubr.msk.bf16.mxu1 %vm1402_vm0, %v1401_v0 }
 0x1fc   : > { %1259 = vmatprep.subr.bf16.mxu1 %v1401_v0 }
 0x202   : > { %1250 = vmatmul.mubr.msk.bf16.vlgmr.msra.gmra.mxu1 %vm326_vm1, %v481_v26  ;;  %v388_v26 = vmul.f32 1.442695, %v385_v25 }
 0x203   : > { %1260 = vmatpush3.bf16.xpose.msra.mxu1 %v639_v34  ;;  %1261 = vmatprep.mubr.msk.bf16.mxu1 %vm1402_vm0, %v1401_v0 }
 0x204   : > { %1271 = vmatprep.subr.bf16.mxu1 %v1401_v0  ;;  %1345 = vpow2.f32 %v388_v26 }
 0x20a   : > { %1262 = vmatmul.mubr.msk.bf16.vlgmr.msra.gmra.mxu1 %vm326_vm1, %v632_v33 }
 0x20b   : > { %1272 = vmatpush3.bf16.xpose.msra.mxu1 %v790_v36  ;;  %1273 = vmatprep.mubr.msk.bf16.mxu1 %vm1402_vm0, %v1401_v0 }
 0x211   : > { %v1610_v33 = vpop.eup %1345 }
 0x212   : > { %1274 = vmatmul.mubr.msk.bf16.vlgmr.msra.gmra.mxu1 %vm326_vm1, %v783_v37 }
 0x2ba   : > { %v1530_v38 = vpop.f32.mrf.mxu1 }
 0x2bc   : > { %v1245_v39 = vpop.f32.mrf.mxu1 }
 0x2be   : > { %v1532_v40 = vpop.f32.mrf.mxu1 }
 0x2c0   : > { %v1246_v41 = vpop.f32.mrf.mxu1 }
 0x2c2   : > { %v1534_v42 = vpop.f32.mrf.mxu1 }
 0x2c3   : > { %v531_v43 = vsel %vm374_vm3, %v1534_v42, -inf }
 0x2c4   : > { %532 = vmax.xlane.f32.xlu1 %v531_v43  ;;  %v1251_v44 = vpop.f32.mrf.mxu1 }
 0x2c6   : > { %v1538_v45 = vpop.f32.mrf.mxu1 }
 0x2c7   : > { %v534_v46 = vsel %vm378_vm4, %v1538_v45, -inf }
 0x2c8   : > { %535 = vmax.xlane.f32.xlu0 %v534_v46  ;;  %v1252_v47 = vpop.f32.mrf.mxu1 }
 0x2ca   : > { %v1542_v48 = vpop.f32.mrf.mxu1 }
 0x2cb   : > { %v682_v49 = vsel %vm374_vm3, %v1542_v48, -inf }
 0x2cc   : > { %683 = vmax.xlane.f32.xlu0 %v682_v49  ;;  %v1263_v50 = vpop.f32.mrf.mxu1 }
 0x2ce   : > { %v1546_v51 = vpop.f32.mrf.mxu1 }
 0x2cf   : > { %v685_v52 = vsel %vm378_vm4, %v1546_v51, -inf }
 0x2d0   : > { %686 = vmax.xlane.f32.xlu1 %v685_v52  ;;  %v1264_v54 = vpop.f32.mrf.mxu1 }
 0x2d2   : > { %v1552_v55 = vpop.f32.mrf.mxu1 }
 0x2d3   : > { %v833_v56 = vsel %vm374_vm3, %v1552_v55, -inf }
 0x2d4   : > { %834 = vmax.xlane.f32.xlu0 %v833_v56  ;;  %v1275_v57 = vpop.f32.mrf.mxu1 }
 0x2d6   : > { %v1556_v58 = vpop.f32.mrf.mxu1 }
 0x2d7   : > { %v836_v59 = vsel %vm378_vm4, %v1556_v58, -inf }
 0x2d8   : > { %837 = vmax.xlane.f32.xlu1 %v836_v59  ;;  %v1276_v60 = vpop.f32.mrf.mxu1 }
 0x34d   : > { %v533_v61 = vpop.xlane.xlu1 %532 }
 0x34e   : > { %v537_v62 = vmax.f32 %v1483_v12, %v533_v61 }
 0x350   : > { %547 = vperm.xlu0 %1321, %v537_v62   ;;  %v934_v8 = vsel %vm933_vm7, %v1486_v14, %v537_v62  ;;  %v539_v30 = vsub.f32 %v1483_v12, %v537_v62 }
 0x351   : > { %v536_v63 = vpop.xlane.xlu0 %535 }
 0x352   : > { %v538_v1 = vmax.f32 %v1488_v15, %v536_v63  ;;  %v541_v31 = vmul.f32 1.442695, %v539_v30  ;;  %v384_v30 = vsub.f32 %v1483_v12, %v1486_v14 }
 0x354   : > { %884 = vrot.lane.b32.xlu0 %v1499_v18, %s1407_s28  ;;  %552 = vperm.xlu1 %1322, %v538_v1   ;;  %v935_v20 = vsel %vm933_vm7, %v1492_v17, %v538_v1  ;;  %v540_v32 = vsub.f32 %v1488_v15, %v538_v1  ;;  %1347 = vpow2.f32 %v541_v31 }
 0x355   : > { %v684_v2 = vpop.xlane.xlu0 %683  ;;  %1327 = vset.pattern.permute.xlu0 %v1409_v3 }
 0x356   : > { %v1566_v4 = vmax.f32 %v1483_v12, %v684_v2 }
 0x358   : > { %1323 = vset.pattern.permute.xlu1 %v1409_v3  ;;  %v937_v10 = vsel %vm936_vm8, %v934_v8, %v1566_v4 }
 0x359   : > { %v687_v5 = vpop.xlane.xlu1 %686  ;;  %698 = vperm.xlu1 %1323, %v1566_v4  }
 0x35a   : > { %v1571_v6 = vmax.f32 %v1488_v15, %v687_v5 }
 0x35c   : > { %v938_v22 = vsel %vm936_vm8, %v935_v20, %v1571_v6 }
 0x35d   : > { %v835_v7 = vpop.xlane.xlu0 %834  ;;  %703 = vperm.xlu1 %1323, %v1571_v6  }
 0x35e   : > { %v1577_v9 = vmax.f32 %v1483_v12, %v835_v7 }
 0x360   : > { %v940_v13 = vsel %vm939_vm9, %v937_v10, %v1577_v9 }
 0x361   : > { %943 = vst.msk [vmem:[#allocation2] sm:$0xff] %vm294_vm2, %v940_v13  ;;  %1324 = vset.pattern.permute.xlu1 %v1410_v16  ;;  %v838_v19 = vpop.xlane.xlu1 %837  ;;  %v1613_v29 = vpop.eup %1347 }
 0x362   : > { %v1588_v21 = vmax.f32 %v1488_v15, %v838_v19  ;;  %849 = vperm.xlu1 %1324, %v1577_v9   ;;  %v691_v19 = vsub.f32 %v1488_v15, %v1571_v6 }
 0x364   : > { %v941_v23 = vsel %vm939_vm9, %v938_v22, %v1588_v21  ;;  %v842_v25 = vsub.f32 %v1488_v15, %v1588_v21  ;;  %v386_v15 = vmul.f32 1.442695, %v384_v30 }
 0x365   : > { %945 = vst.msk [vmem:[#allocation2 + $0x8] sm:$0x3] %vm296_vm5, %v941_v23 }
 0x366   : > { %854 = vperm.xlu1 %1324, %v1588_v21  }
 0x36a   : > { %582 = vrot.lane.b32.xlu1 %v1499_v18, %s1405_s23 }
 0x36b   : > { %1325 = vset.pattern.permute.xlu1 %v1404_v11 }
 0x36e   : > { %733 = vrot.lane.b32.xlu1 %v1499_v18, %s1406_s27  ;;  %v543_v18 = vmul.f32 1.442695, %v540_v32 }
 0x370   : > { %1349 = vpow2.f32 %v543_v18 }
 0x373   : > { %412 = vadd.xlane.f32.xlu0 %v411_v24 }
 0x37d   : > { %v1617_v17 = vpop.eup %1349 }
 0x392   : > { %409 = vadd.xlane.f32.xlu1 %v408_v27  ;;  %v845_v27 = vmul.f32 1.442695, %v842_v25 }
 0x3a3   : > { %423 = vperm.xlu1 %1325, %v1610_v33  }
 0x3a7   : > { %1326 = vset.pattern.permute.xlu1 %v1408_v53 }
 0x3a8   : > { %573 = vperm.xlu1 %1326, %v1613_v29  }
 0x3ac   : > { %578 = vperm.xlu1 %1326, %v1617_v17  }
 0x3b0   : > { %1328 = vset.pattern.permute.xlu1 %v1409_v3 }
 0x3cb   : > { %v548_v28 = vpop.permute.xlu0 %547 }
 0x3cc   : > { %v555_v34 = vsub.f32 %v1534_v42, %v548_v28 }
 0x3ce   : > { %v557_v35 = vmul.f32 1.442695, %v555_v34 }
 0x3cf   : > { %v553_v36 = vpop.permute.xlu1 %552  ;;  %v885_v10 = vpop.permute.xlu0 %884 }
 0x3d0   : > { %1351 = vpow2.f32 %v557_v35  ;;  %v556_v37 = vsub.f32 %v1538_v45, %v553_v36  ;;  %v890_v23 = vsel %vm435_vm6, %v885_v10, 0 }
 0x3d2   : > { %v559_v39 = vmul.f32 1.442695, %v556_v37 }
 0x3d4   : > { %1353 = vpow2.f32 %v559_v39  ;;  %v699_v41 = vpop.permute.xlu1 %698 }
 0x3d5   : > { %v706_v43 = vsub.f32 %v1542_v48, %v699_v41 }
 0x3d7   : > { %v708_v44 = vmul.f32 1.442695, %v706_v43  ;;  %v312_v43 = vld [vmem:[#allocation3] sm:$0xff] }
 0x3d8   : > { %v704_v46 = vpop.permute.xlu1 %703 }
 0x3d9   : > { %1355 = vpow2.f32 %v708_v44  ;;  %v707_v47 = vsub.f32 %v1546_v51, %v704_v46  ;;  %v561_v44 = vmul.f32 %v1613_v29, %v312_v43 }
 0x3db   : > { %v710_v49 = vmul.f32 1.442695, %v707_v47 }
 0x3dd   : > { %v1352_v50 = vpop.eup %1351  ;;  %1357 = vpow2.f32 %v710_v49  ;;  %v850_v52 = vpop.permute.xlu1 %849 }
 0x3de   : > { %v857_v42 = vsub.f32 %v1552_v55, %v850_v52  ;;  %v563_v54 = vsel %vm374_vm3, %v1352_v50, 0.0  ;;  %v690_v55 = vsub.f32 %v1483_v12, %v1566_v4  ;;  %v841_v4 = vsub.f32 %v1483_v12, %v1577_v9 }
 0x3df   : > { %564 = vadd.xlane.f32.xlu1 %v563_v54  ;;  %v694_v9 = vmul.f32 1.442695, %v691_v19 }
 0x3e0   : > { %v859_v45 = vmul.f32 1.442695, %v857_v42  ;;  %v692_v7 = vmul.f32 1.442695, %v690_v55  ;;  %v843_v24 = vmul.f32 1.442695, %v841_v4 }
 0x3e1   : > { %v1354_v56 = vpop.eup %1353  ;;  %v855_v57 = vpop.permute.xlu1 %854  ;;  %v313_v42 = vld [vmem:[#allocation3 + $0x8] sm:$0x3] }
 0x3e2   : > { %1359 = vpow2.f32 %v859_v45  ;;  %v858_v48 = vsub.f32 %v1556_v58, %v855_v57  ;;  %v566_v59 = vsel %vm378_vm4, %v1354_v56, 0.0  ;;  %v581_v1 = vpack.c.bf16 %v1354_v56, %v1352_v50 }
 0x3e3   : > { %567 = vadd.xlane.f32.xlu0 %v566_v59  ;;  %v562_v56 = vmul.f32 %v1617_v17, %v313_v42 }
 0x3e4   : > { %v861_v60 = vmul.f32 1.442695, %v858_v48 }
 0x3e5   : > { %v583_v51 = vpop.permute.xlu1 %582 }
 0x3e6   : > { %v1356_v61 = vpop.eup %1355  ;;  %1361 = vpow2.f32 %v861_v60  ;;  %v588_v62 = vsel %vm435_vm6, %v583_v51, 0  ;;  %v407_v60 = vmul.f32 %v1610_v33, %v313_v42 }
 0x3e7   : > { %1254 = vmatpush3.bf16.msra.mxu0 %v588_v62  ;;  %v714_v63 = vsel %vm374_vm3, %v1356_v61, 0.0  ;;  %1363 = vpow2.f32 %v692_v7 }
 0x3e8   : > { %715 = vadd.xlane.f32.xlu0 %v714_v63  ;;  %1265 = vmatprep.subr.bf16.mxu0 %v1401_v0  ;;  %1365 = vpow2.f32 %v843_v24 }
 0x3e9   : > { %v734_v58 = vpop.permute.xlu1 %733  ;;  %1367 = vpow2.f32 %v694_v9 }
 0x3ea   : > { %v1358_v2 = vpop.eup %1357  ;;  %1256 = vmatmul.mubr.msk.bf16.vlgmr.msra.gmra.mxu0 %vm374_vm3, %v581_v1  ;;  %v739_v5 = vsel %vm435_vm6, %v734_v58, 0  ;;  %1369 = vpow2.f32 %v845_v27 }
 0x3eb   : > { %v717_v8 = vsel %vm378_vm4, %v1358_v2, 0.0  ;;  %1266 = vmatpush3.bf16.msra.mxu0 %v739_v5  ;;  %1267 = vmatprep.mubr.msk.bf16.mxu0 %vm1402_vm0, %v1401_v0  ;;  %v732_v22 = vpack.c.bf16 %v1358_v2, %v1356_v61  ;;  %1371 = vpow2.f32 %v386_v15 }
 0x3ec   : > { %718 = vadd.xlane.f32.xlu1 %v717_v8  ;;  %1277 = vmatprep.subr.bf16.mxu0 %v1401_v0 }
 0x3ef   : > { %v1360_v13 = vpop.eup %1359 }
 0x3f0   : > { %v865_v20 = vsel %vm374_vm3, %v1360_v13, 0.0 }
 0x3f1   : > { %866 = vadd.xlane.f32.xlu1 %v865_v20 }
 0x3f2   : > { %1268 = vmatmul.mubr.msk.bf16.vlgmr.msra.gmra.mxu0 %vm374_vm3, %v732_v22 }
 0x3f3   : > { %v1362_v26 = vpop.eup %1361  ;;  %1278 = vmatpush3.bf16.msra.mxu0 %v890_v23  ;;  %1279 = vmatprep.mubr.msk.bf16.mxu0 %vm1402_vm0, %v1401_v0 }
 0x3f4   : > { %v868_v6 = vsel %vm378_vm4, %v1362_v26, 0.0  ;;  %v883_v31 = vpack.c.bf16 %v1362_v26, %v1360_v13  ;;  %v1364_v21 = vpop.eup %1363 }
 0x3f5   : > { %869 = vadd.xlane.f32.xlu1 %v868_v6  ;;  %v1366_v32 = vpop.eup %1365  ;;  %v712_v49 = vmul.f32 %v1364_v21, %v312_v43 }
 0x3f6   : > { %v1368_v12 = vpop.eup %1367  ;;  %v863_v57 = vmul.f32 %v1366_v32, %v312_v43 }
 0x3f7   : > { %v1370_v14 = vpop.eup %1369  ;;  %v713_v48 = vmul.f32 %v1368_v12, %v313_v42 }
 0x3f8   : > { %v1372_v18 = vpop.eup %1371  ;;  %v864_v58 = vmul.f32 %v1370_v14, %v313_v42  ;;  %v315_v42 = vld [vmem:[#allocation4 + $0x8] sm:$0x3] }
 0x3f9   : > { %v406_v50 = vmul.f32 %v1372_v18, %v312_v43 }
 0x3fa   : > { %1280 = vmatmul.mubr.msk.bf16.vlgmr.msra.gmra.mxu0 %vm374_vm3, %v883_v31 }
 0x3fc   : > { %v413_v39 = vpop.xlane.xlu0 %412 }
 0x3fd   : > { %v415_v63 = vadd.f32 %v413_v39, %v407_v60 }
 0x3fe   : > { %724 = vperm.xlu0 %1327, %v1364_v21  }
 0x402   : > { %1329 = vset.pattern.permute.xlu0 %v1410_v16 }
 0x403   : > { %875 = vperm.xlu0 %1329, %v1366_v32  }
 0x406   : > { %729 = vperm.xlu1 %1328, %v1368_v12  }
 0x407   : > { %880 = vperm.xlu0 %1329, %v1370_v14  }
 0x40a   : > { %1331 = vset.pattern.permute.xlu1 %v1408_v53 }
 0x40b   : > { %1330 = vset.pattern.permute.xlu0 %v1404_v11 }
 0x40c   : > { %418 = vperm.xlu0 %1330, %v1372_v18  }
 0x41b   : > { %v410_v28 = vpop.xlane.xlu1 %409 }
 0x41c   : > { %v414_v45 = vadd.f32 %v410_v28, %v406_v50 }
 0x41f   : > { %v424_v34 = vpop.permute.xlu1 %423 }
 0x423   : > { %v1662_v35 = vpop.permute.xlu1 %573 }
 0x427   : > { %v579_v36 = vpop.permute.xlu1 %578 }
 0x428   : > { %v1665_v37 = vsel %vm326_vm1, %v424_v34, %v579_v36 }
 0x468   : > { %v565_v41 = vpop.xlane.xlu1 %564 }
 0x469   : > { %v569_v52 = vadd.f32 %v565_v41, %v561_v44 }
 0x46b   : > { %v946_v51 = vsel %vm933_vm7, %v414_v45, %v569_v52 }
 0x46c   : > { %v568_v0 = vpop.xlane.xlu0 %567 }
 0x46d   : > { %v570_v61 = vadd.f32 %v568_v0, %v562_v56  ;;  %v314_v0 = vld [vmem:[#allocation4] sm:$0xff] }
 0x46f   : > { %v947_v2 = vsel %vm933_vm7, %v415_v63, %v570_v61 }
 0x471   : > { %v716_v46 = vpop.xlane.xlu0 %715 }
 0x472   : > { %v720_v54 = vadd.f32 %v716_v46, %v712_v49 }
 0x474   : > { %v948_v29 = vsel %vm936_vm8, %v946_v51, %v720_v54 }
 0x475   : > { %v719_v47 = vpop.xlane.xlu1 %718 }
 0x476   : > { %v721_v55 = vadd.f32 %v719_v47, %v713_v48 }
 0x478   : > { %v949_v33 = vsel %vm936_vm8, %v947_v2, %v721_v55 }
 0x479   : > { %v725_v26 = vpop.permute.xlu0 %724 }
 0x47a   : > { %v867_v59 = vpop.xlane.xlu1 %866 }
 0x47b   : > { %v871_v62 = vadd.f32 %v867_v59, %v863_v57 }
 0x47d   : > { %v950_v1 = vsel %vm939_vm9, %v948_v29, %v871_v62 }
 0x47e   : > { %952 = vst.msk [vmem:[#allocation3] sm:$0xff] %vm294_vm2, %v950_v1  ;;  %1373 = vrcp.f32 %v950_v1  ;;  %v870_v17 = vpop.xlane.xlu1 %869  ;;  %v876_v9 = vpop.permute.xlu0 %875 }
 0x47f   : > { %v872_v5 = vadd.f32 %v870_v17, %v864_v58 }
 0x481   : > { %v951_v7 = vsel %vm939_vm9, %v949_v33, %v872_v5 }
 0x482   : > { %953 = vst.msk [vmem:[#allocation3 + $0x8] sm:$0x3] %vm296_vm5, %v951_v7  ;;  %1375 = vrcp.f32 %v951_v7  ;;  %v730_v6 = vpop.permute.xlu1 %729  ;;  %v881_v27 = vpop.permute.xlu0 %880 }
 0x483   : > { %v958_v43 = vsel %vm956_vm12, %v1665_v37, %v730_v6 }
 0x484   : > { %v961_v50 = vsel %vm959_vm13, %v958_v43, %v881_v27 }
 0x487   : > { %v419_v31 = vpop.permute.xlu0 %418 }
 0x488   : > { %v954_v14 = vsel %vm326_vm1, %v419_v31, %v1662_v35 }
 0x489   : > { %v957_v34 = vsel %vm956_vm12, %v954_v14, %v725_v26 }
 0x48a   : > { %v960_v41 = vsel %vm959_vm13, %v957_v34, %v876_v9 }
 0x48b   : > { %v1374_v8 = vpop.eup %1373  ;;  %v962_v47 = vmul.f32 %v960_v41, %v314_v0 }
 0x48c   : > { %1016 = vperm.xlu1 %1331, %v1374_v8   ;;  %1007 = vperm.xlu0 %1330, %v1374_v8  }
 0x48f   : > { %v1376_v4 = vpop.eup %1375 }
 0x490   : > { %1332 = vset.pattern.permute.xlu1 %v1409_v3  ;;  %1334 = vset.pattern.permute.xlu0 %v1408_v53 }
 0x491   : > { %1024 = vperm.xlu1 %1332, %v1374_v8   ;;  %1020 = vperm.xlu0 %1334, %v1376_v4  }
 0x495   : > { %1333 = vset.pattern.permute.xlu1 %v1404_v11  ;;  %1336 = vset.pattern.permute.xlu0 %v1410_v16 }
 0x496   : > { %1012 = vperm.xlu1 %1333, %v1376_v4  }
 0x49a   : > { %1335 = vset.pattern.permute.xlu1 %v1409_v3 }
 0x49b   : > { %1028 = vperm.xlu1 %1335, %v1376_v4  }
 0x49f   : > { %1337 = vset.pattern.permute.xlu1 %v1410_v16 }
 0x4aa   : > { %v624_v10 = vpop.f32.mrf.mxu0 }
 0x4ab   : > { %966 = vrot.lane.b32.xlu0 %v624_v10, %s1411_s29 }
 0x4ac   : > { %v1257_v13 = vpop.f32.mrf.mxu0 }
 0x4ae   : > { %v627_v19 = vpop.f32.mrf.mxu0 }
 0x4af   : > { %968 = vrot.lane.b32.xlu1 %v627_v19, %s1411_s29 }
 0x4b0   : > { %v1258_v20 = vpop.f32.mrf.mxu0 }
 0x4b2   : > { %v775_v53 = vpop.f32.mrf.mxu0 }
 0x4b3   : > { %974 = vrot.lane.b32.xlu0 %v775_v53, %s1412_s30 }
 0x4b4   : > { %v1269_v22 = vpop.f32.mrf.mxu0 }
 0x4b6   : > { %v778_v11 = vpop.f32.mrf.mxu0 }
 0x4b7   : > { %976 = vrot.lane.b32.xlu1 %v778_v11, %s1412_s30 }
 0x4b8   : > { %v1270_v23 = vpop.f32.mrf.mxu0 }
 0x4ba   : > { %v926_v24 = vpop.f32.mrf.mxu0 }
 0x4bb   : > { %982 = vrot.lane.b32.xlu0 %v926_v24, %s1413_s4 }
 0x4bc   : > { %v1281_v3 = vpop.f32.mrf.mxu0 }
 0x4be   : > { %v929_v25 = vpop.f32.mrf.mxu0 }
 0x4bf   : > { %1032 = vperm.xlu0 %1336, %v1374_v8   ;;  %984 = vrot.lane.b32.xlu1 %v929_v25, %s1413_s4 }
 0x4c0   : > { %v1282_v16 = vpop.f32.mrf.mxu0 }
 0x4c3   : > { %1036 = vperm.xlu1 %1337, %v1376_v4  }
 0x507   : > { %v1017_v30 = vpop.permute.xlu1 %1016  ;;  %v1008_v21 = vpop.permute.xlu0 %1007 }
 0x508   : > { %v1039_v59 = vsel %vm326_vm1, %v1008_v21, %v1017_v30 }
 0x50c   : > { %v1025_v15 = vpop.permute.xlu1 %1024  ;;  %v1021_v12 = vpop.permute.xlu0 %1020 }
 0x50d   : > { %v1041_v60 = vsel %vm956_vm12, %v1039_v59, %v1025_v15 }
 0x511   : > { %v1013_v32 = vpop.permute.xlu1 %1012 }
 0x516   : > { %v1029_v18 = vpop.permute.xlu1 %1028 }
 0x51d   : > { %v967_v28 = vpop.permute.xlu0 %966 }
 0x51e   : > { %v988_v44 = vsel %vm326_vm1, %v1530_v38, %v967_v28  ;;  %v963_v38 = vmul.f32 %v961_v50, %v315_v42 }
 0x521   : > { %v969_v36 = vpop.permute.xlu1 %968 }
 0x522   : > { %v989_v45 = vsel %vm326_vm1, %v1532_v40, %v969_v36  ;;  %v1040_v40 = vsel %vm326_vm1, %v1013_v32, %v1021_v12 }
 0x523   : > { %v1042_v29 = vsel %vm956_vm12, %v1040_v40, %v1029_v18 }
 0x525   : > { %v975_v39 = vpop.permute.xlu0 %974 }
 0x526   : > { %v990_v46 = vsel %vm956_vm12, %v988_v44, %v975_v39 }
 0x529   : > { %v977_v35 = vpop.permute.xlu1 %976 }
 0x52a   : > { %v991_v37 = vsel %vm956_vm12, %v989_v45, %v977_v35 }
 0x52d   : > { %v983_v49 = vpop.permute.xlu0 %982 }
 0x52e   : > { %v992_v52 = vsel %vm959_vm13, %v990_v46, %v983_v49 }
 0x52f   : > { %v994_v54 = vadd.f32 %v992_v52, %v962_v47 }
 0x531   : > { %997 = vst.msk [vmem:[#allocation4] sm:$0xff] %vm300_vm11, %v994_v54  ;;  %v985_v56 = vpop.permute.xlu1 %984 }
 0x532   : > { %v993_v57 = vsel %vm959_vm13, %v991_v37, %v985_v56 }
 0x533   : > { %v995_v48 = vadd.f32 %v993_v57, %v963_v38 }
 0x535   : > { %999 = vst.msk [vmem:[#allocation4 + $0x8] sm:$0x3] %vm302_vm10, %v995_v48 }
 0x53a   : > { %v1033_v51 = vpop.permute.xlu0 %1032 }
 0x53b   : > { %v1043_v61 = vsel %vm959_vm13, %v1041_v60, %v1033_v51 }
 0x53c   : > { %v1045_v62 = vmul.f32 %v1043_v61, %v994_v54 }
 0x53e   : > { %v1217_v55 = vpack.c.bf16 %v1045_v62, %v1045_v62  ;;  %v1037_v63 = vpop.permute.xlu1 %1036 }
 0x53f   : > { %v1044_v1 = vsel %vm959_vm13, %v1042_v29, %v1037_v63 }
 0x540   : > { %1056 = vst.msk [vmem:[%s287_s7] sm:$0xf] %vm1055_vm14, %v1217_v55  ;;  %v1046_v58 = vmul.f32 %v1044_v1, %v995_v48 }
 0x542   : > { %v1218_v17 = vpack.c.bf16 %v1046_v58, %v1046_v58 }
 0x544   : > { %1058 = vst.msk [vmem:[%s287_s7 + $0x4] sm:$0x1] %vm1057_vm15, %v1218_v17 }
 0x545 PF: > { %s13_s14 = sadd.s32 1, %s1399_s14   ;;  %s1724_s12 = smov %s1395_s13 }
 0x546   : > { %p10_p5 = scmp.ge.s32.totalorder %s13_s14, 4   ;;  %s1725_s13 = smov %s1727_s15 }
 0x548   :  { %12 = sbr.rel (!%p10_p5) target bundleno = 2 (0x2), region = 76 }

</bundles_post_ra>
